<compile_context>
chip_gen: v6e
topology: v6e:2x2x1
jax: 0.10.0
libtpu: 0.0.40
codegen_flags: <defaults>
</compile_context>

<pallas_src>
import functools
import math

import jax
import jax.numpy as jnp
from jax.experimental import pallas as pl
from jax.experimental.pallas import tpu as pltpu

# ---------------- small config consistent with the module's forward ----------------
BATCH = 2
SEQ = 8
HIDDEN = 128          # stand-in for 768
HEADS = 4             # stand-in for 12
HEAD_DIM = HIDDEN // HEADS
INTERMEDIATE = 512    # stand-in for 3072
LAYERS = 2            # stand-in for 12
VOCAB = 512           # stand-in for 32000
MAX_POS = 64
TYPE_VOCAB = 2
NUM_LABELS = 9
NUM_LABELS_PAD = 128  # lane-dense classifier output, sliced back to 9 in plain JAX
LN_EPS = 1e-12


# ----------------------------- in-kernel helpers -----------------------------
def _layernorm(y, gamma, beta):
    """f32 LayerNorm over the last dim (gamma/beta are (1, H))."""
    mu = jnp.mean(y, axis=-1, keepdims=True)
    var = jnp.mean((y - mu) * (y - mu), axis=-1, keepdims=True)
    return (y - mu) * jax.lax.rsqrt(var + LN_EPS) * gamma + beta


def _gelu(y):
    # TODO(synk): HF BERT checkpoints use exact erf GELU; tanh approximation used here.
    c = math.sqrt(2.0 / math.pi)
    return 0.5 * y * (1.0 + jnp.tanh(c * (y + 0.044715 * y * y * y)))


# ----------------------------- fused per-layer kernel -----------------------------
def _layer_kernel(*refs, heads, head_dim, scale, fuse_emb_ln, fuse_pooler):
    """One full encoder layer for one batch element (grid over batch).

    Optionally prepends the embedding LayerNorm (layer 0) and appends the
    pooler + classifier on the [CLS] row (final layer)."""
    it = iter(refs)
    mask_ref = next(it)                                   # (1, 1, S) additive mask
    x_ref = next(it)                                      # (S, H) bf16
    if fuse_emb_ln:
        emb_g_ref = next(it)
        emb_b_ref = next(it)
    qkvw_ref = next(it); qkvb_ref = next(it)
    aow_ref = next(it); aob_ref = next(it)
    attn_g_ref = next(it); attn_b_ref = next(it)
    iw_ref = next(it); ib_ref = next(it)
    ow_ref = next(it); ob_ref = next(it)
    ffn_g_ref = next(it); ffn_b_ref = next(it)
    if fuse_pooler:
        pw_ref = next(it); pb_ref = next(it)
        cw_ref = next(it); cb_ref = next(it)
    o_ref = next(it)                                      # (S, H) bf16 out
    if fuse_pooler:
        logits_ref = next(it)                             # (1, 1, NUM_LABELS_PAD) f32 out

    hidden = heads * head_dim
    seq = x_ref.shape[0]

    # ---- (optional) embedding LayerNorm, then attention residual in f32 ----
    x32 = x_ref[...].astype(jnp.float32)
    if fuse_emb_ln:
        x32 = _layernorm(x32, emb_g_ref[...], emb_b_ref[...])
    x_bf = x32.astype(jnp.bfloat16)

    # ---- fused QKV projection (one MXU push over the full 3H output) ----
    qkv = jnp.dot(x_bf, qkvw_ref[...],
                  preferred_element_type=jnp.float32) + qkvb_ref[...]    # (S, 3H) f32
    add_mask = mask_ref[...].reshape(1, seq)                             # (1, S)

    # ---- per-head attention with per-head accumulation of the output projection
    #      (no lane-dim concatenate; aow row-slices are cheap sublane slices) ----
    attn = None
    for h in range(heads):                                # static unroll
        lo = h * head_dim
        qh = qkv[:, lo:lo + head_dim].astype(jnp.bfloat16)
        kh = qkv[:, hidden + lo:hidden + lo + head_dim].astype(jnp.bfloat16)
        vh = qkv[:, 2 * hidden + lo:2 * hidden + lo + head_dim].astype(jnp.bfloat16)

        s = jax.lax.dot_general(qh, kh, (((1,), (1,)), ((), ())),
                                preferred_element_type=jnp.float32) * scale
        s = s + add_mask                                  # broadcast over query rows
        s = s - jnp.max(s, axis=-1, keepdims=True)
        p = jnp.exp(s)
        p = p * pl.reciprocal(jnp.sum(p, axis=-1, keepdims=True), approx=True)

        ctx_h = jnp.dot(p.astype(jnp.bfloat16), vh,
                        preferred_element_type=jnp.float32).astype(jnp.bfloat16)
        part = jnp.dot(ctx_h, aow_ref[lo:lo + head_dim, :],
                       preferred_element_type=jnp.float32)               # (S, H)
        attn = part if attn is None else attn + part

    attn = attn + aob_ref[...]
    # TODO(synk): attention/hidden dropouts are identity (inference mode)
    y1 = _layernorm(attn + x32, attn_g_ref[...], attn_b_ref[...])        # (S, H) f32

    # ---- FFN sub-layer, intermediate never leaves VMEM/vregs ----
    hmid = jnp.dot(y1.astype(jnp.bfloat16), iw_ref[...],
                   preferred_element_type=jnp.float32) + ib_ref[...]     # (S, I) f32
    hmid = _gelu(hmid)
    y2 = jnp.dot(hmid.astype(jnp.bfloat16), ow_ref[...],
                 preferred_element_type=jnp.float32) + ob_ref[...]
    y2 = _layernorm(y2 + y1, ffn_g_ref[...], ffn_b_ref[...])
    o_ref[...] = y2.astype(o_ref.dtype)

    # ---- (optional, final layer) pooler(tanh) + classifier on the CLS row ----
    if fuse_pooler:
        cls = y2[0:1, :].astype(jnp.bfloat16)             # [CLS] token hidden state
        pooled = jnp.tanh(jnp.dot(cls, pw_ref[...],
                                  preferred_element_type=jnp.float32) + pb_ref[...])
        # TODO(synk): nn.Dropout(0.3) on pooled output treated as identity (inference)
        logits = jnp.dot(pooled.astype(jnp.bfloat16), cw_ref[...],
                         preferred_element_type=jnp.float32) + cb_ref[...]
        logits_ref[...] = logits.reshape(logits_ref.shape).astype(logits_ref.dtype)


# ----------------------------- Pallas wrapper -----------------------------
def encoder_layer(x, add_mask3d, p, B, S, *, emb_ln=None, pooler=None):
    """x: (B*S, H) bf16; add_mask3d: (B, 1, S) f32 additive mask."""
    H = HIDDEN
    fuse_emb_ln = emb_ln is not None
    fuse_pooler = pooler is not None

    kernel = functools.partial(
        _layer_kernel, heads=HEADS, head_dim=HEAD_DIM,
        scale=1.0 / math.sqrt(HEAD_DIM),
        fuse_emb_ln=fuse_emb_ln, fuse_pooler=fuse_pooler)

    def full(shape):
        return pl.BlockSpec(shape, lambda b, _s=len(shape): (0,) * _s)

    in_specs = [
        pl.BlockSpec((1, 1, S), lambda b: (b, 0, 0)),   # additive mask for batch b
        pl.BlockSpec((S, H), lambda b: (b, 0)),         # activation rows for batch b
    ]
    args = [add_mask3d, x]
    if fuse_emb_ln:
        in_specs += [full((1, H)), full((1, H))]
        args += [emb_ln[0], emb_ln[1]]
    in_specs += [
        full((H, 3 * H)), full((1, 3 * H)),             # fused QKV weight / bias
        full((H, H)), full((1, H)),                     # attn output proj
        full((1, H)), full((1, H)),                     # attn LN gamma / beta
        full((H, INTERMEDIATE)), full((1, INTERMEDIATE)),
        full((INTERMEDIATE, H)), full((1, H)),
        full((1, H)), full((1, H)),                     # FFN LN gamma / beta
    ]
    args += [p["qkv_w"], p["qkv_b"], p["ao_w"], p["ao_b"],
             p["attn_ln_g"], p["attn_ln_b"],
             p["i_w"], p["i_b"], p["o_w"], p["o_b"],
             p["out_ln_g"], p["out_ln_b"]]

    out_shape = [jax.ShapeDtypeStruct((B * S, H), jnp.bfloat16)]
    out_specs = [pl.BlockSpec((S, H), lambda b: (b, 0))]
    if fuse_pooler:
        in_specs += [full((H, H)), full((1, H)),
                     full((H, NUM_LABELS_PAD)), full((1, NUM_LABELS_PAD))]
        args += [pooler["p_w"], pooler["p_b"], pooler["c_w"], pooler["c_b"]]
        out_shape.append(jax.ShapeDtypeStruct((B, 1, NUM_LABELS_PAD), jnp.float32))
        out_specs.append(pl.BlockSpec((1, 1, NUM_LABELS_PAD), lambda b: (b, 0, 0)))

    outs = pl.pallas_call(
        kernel,
        out_shape=out_shape,
        grid=(B,),
        in_specs=in_specs,
        out_specs=out_specs,
        compiler_params=pltpu.CompilerParams(
            dimension_semantics=("parallel",)),       # 2 steps -> both v7x TCs busy
    )(*args)

    if fuse_pooler:
        return outs[0], outs[1]
    return outs[0]


# ----------------------------- model forward -----------------------------
def forward(params, ids, mask, token_type_ids):
    B, S = ids.shape
    # embeddings (gather is plain-JAX glue); inter-kernel activations are bf16
    emb = (
        params["word_emb"][ids]
        + params["pos_emb"][jnp.arange(S)][None, :, :]
        + params["type_emb"][token_type_ids]
    )
    x = emb.reshape(B * S, HIDDEN).astype(jnp.bfloat16)

    # additive attention mask: 0 for real tokens, -10000 for padding; (B, 1, S)
    add_mask = ((1.0 - mask.astype(jnp.float32)) * -10000.0).reshape(B, 1, S)

    n_layers = len(params["layers"])
    logits_pad = None
    for li, p in enumerate(params["layers"]):
        emb_ln = (params["emb_ln_g"], params["emb_ln_b"]) if li == 0 else None
        pooler = None
        if li == n_layers - 1:
            pooler = {"p_w": params["pooler_w"], "p_b": params["pooler_b"],
                      "c_w": params["out_w_pad"], "c_b": params["out_b_pad"]}
        res = encoder_layer(x, add_mask, p, B, S, emb_ln=emb_ln, pooler=pooler)
        if pooler is not None:
            x, logits_pad = res
        else:
            x = res

    return logits_pad.reshape(B, NUM_LABELS_PAD)[:, :NUM_LABELS]


# ----------------------------- deterministic params -----------------------------
def init_params(key):
    keys = iter(jax.random.split(key, 256))

    def nrm_bf16(shape):                 # matmul weights stored in bf16 (MXU-native)
        return (jax.random.normal(next(keys), shape, jnp.float32) * 0.02).astype(jnp.bfloat16)

    def nrm_f32(shape):
        return jax.random.normal(next(keys), shape, jnp.float32) * 0.02

    def ones2d(n):
        return jnp.ones((1, n), jnp.float32)

    def zeros2d(n):
        return jnp.zeros((1, n), jnp.float32)

    out_w = nrm_f32((HIDDEN, NUM_LABELS))
    out_b = jnp.zeros((NUM_LABELS,), jnp.float32)
    out_w_pad = jnp.zeros((HIDDEN, NUM_LABELS_PAD), jnp.float32).at[:, :NUM_LABELS].set(out_w)
    out_b_pad = jnp.zeros((1, NUM_LABELS_PAD), jnp.float32).at[0, :NUM_LABELS].set(out_b)

    params = {
        "word_emb": nrm_f32((VOCAB, HIDDEN)),
        "pos_emb": nrm_f32((MAX_POS, HIDDEN)),
        "type_emb": nrm_f32((TYPE_VOCAB, HIDDEN)),
        "emb_ln_g": ones2d(HIDDEN),
        "emb_ln_b": zeros2d(HIDDEN),
        "pooler_w": nrm_bf16((HIDDEN, HIDDEN)),
        "pooler_b": zeros2d(HIDDEN),
        "out_w_pad": out_w_pad.astype(jnp.bfloat16),
        "out_b_pad": out_b_pad,
        "layers": [],
    }
    for _ in range(LAYERS):
        params["layers"].append(
            {
                # fused QKV projection: weight (H, 3H), bias (1, 3H)
                "qkv_w": nrm_bf16((HIDDEN, 3 * HIDDEN)),
                "qkv_b": zeros2d(3 * HIDDEN),
                "ao_w": nrm_bf16((HIDDEN, HIDDEN)), "ao_b": zeros2d(HIDDEN),
                "attn_ln_g": ones2d(HIDDEN), "attn_ln_b": zeros2d(HIDDEN),
                "i_w": nrm_bf16((HIDDEN, INTERMEDIATE)), "i_b": zeros2d(INTERMEDIATE),
                "o_w": nrm_bf16((INTERMEDIATE, HIDDEN)), "o_b": zeros2d(HIDDEN),
                "out_ln_g": ones2d(HIDDEN), "out_ln_b": zeros2d(HIDDEN),
            }
        )
    return params


if __name__ == "__main__":
    key = jax.random.PRNGKey(0)
    pkey, ikey = jax.random.split(key, 2)
    params = init_params(pkey)

    ids = jax.random.randint(ikey, (BATCH, SEQ), 0, VOCAB, dtype=jnp.int32)
    mask = jnp.ones((BATCH, SEQ), jnp.int32).at[1, -2:].set(0)   # pad last 2 tokens of batch 1
    token_type_ids = jnp.zeros((BATCH, SEQ), jnp.int32)

    logits = jax.jit(forward)(params, ids, mask, token_type_ids)
    logits = jax.block_until_ready(logits)
    assert logits.shape == (BATCH, NUM_LABELS)
    assert bool(jnp.all(jnp.isfinite(logits)))
    print("KERNEL_OK")
</pallas_src>

<mosaic_0001>
module attributes {stable_mosaic.version = 11 : i64} {
  func.func @_layer_kernel(%arg0: i32, %arg1: memref<1x1x8xf32, #tpu.memory_space<vmem>>, %arg2: memref<8x128xbf16, #tpu.memory_space<vmem>>, %arg3: memref<128x384xbf16, #tpu.memory_space<vmem>>, %arg4: memref<1x384xf32, #tpu.memory_space<vmem>>, %arg5: memref<128x128xbf16, #tpu.memory_space<vmem>>, %arg6: memref<1x128xf32, #tpu.memory_space<vmem>>, %arg7: memref<1x128xf32, #tpu.memory_space<vmem>>, %arg8: memref<1x128xf32, #tpu.memory_space<vmem>>, %arg9: memref<128x512xbf16, #tpu.memory_space<vmem>>, %arg10: memref<1x512xf32, #tpu.memory_space<vmem>>, %arg11: memref<512x128xbf16, #tpu.memory_space<vmem>>, %arg12: memref<1x128xf32, #tpu.memory_space<vmem>>, %arg13: memref<1x128xf32, #tpu.memory_space<vmem>>, %arg14: memref<1x128xf32, #tpu.memory_space<vmem>>, %arg15: memref<128x128xbf16, #tpu.memory_space<vmem>>, %arg16: memref<1x128xf32, #tpu.memory_space<vmem>>, %arg17: memref<128x128xbf16, #tpu.memory_space<vmem>>, %arg18: memref<1x128xf32, #tpu.memory_space<vmem>>, %arg19: memref<8x128xbf16, #tpu.memory_space<vmem>>, %arg20: memref<1x1x128xf32, #tpu.memory_space<vmem>>) attributes {dimension_semantics = [#tpu.dimension_semantics<parallel>], iteration_bounds = array<i64: 2>, scalar_prefetch = 0 : i64, scratch_operands = 0 : i64, tpu.core_type = #tpu.core_type<tc>, window_params = [{transform_indices = @transform_0, window_bounds = array<i64: 1, 1, 8>}, {transform_indices = @transform_1, window_bounds = array<i64: 8, 128>}, {pipeline_mode = #tpu.pipeline_mode<synchronous>, transform_indices = @transform_2, window_bounds = array<i64: 128, 384>}, {pipeline_mode = #tpu.pipeline_mode<synchronous>, transform_indices = @transform_3, window_bounds = array<i64: 1, 384>}, {pipeline_mode = #tpu.pipeline_mode<synchronous>, transform_indices = @transform_4, window_bounds = array<i64: 128, 128>}, {pipeline_mode = #tpu.pipeline_mode<synchronous>, transform_indices = @transform_5, window_bounds = array<i64: 1, 128>}, {pipeline_mode = #tpu.pipeline_mode<synchronous>, transform_indices = @transform_6, window_bounds = array<i64: 1, 128>}, {pipeline_mode = #tpu.pipeline_mode<synchronous>, transform_indices = @transform_7, window_bounds = array<i64: 1, 128>}, {pipeline_mode = #tpu.pipeline_mode<synchronous>, transform_indices = @transform_8, window_bounds = array<i64: 128, 512>}, {pipeline_mode = #tpu.pipeline_mode<synchronous>, transform_indices = @transform_9, window_bounds = array<i64: 1, 512>}, {pipeline_mode = #tpu.pipeline_mode<synchronous>, transform_indices = @transform_10, window_bounds = array<i64: 512, 128>}, {pipeline_mode = #tpu.pipeline_mode<synchronous>, transform_indices = @transform_11, window_bounds = array<i64: 1, 128>}, {pipeline_mode = #tpu.pipeline_mode<synchronous>, transform_indices = @transform_12, window_bounds = array<i64: 1, 128>}, {pipeline_mode = #tpu.pipeline_mode<synchronous>, transform_indices = @transform_13, window_bounds = array<i64: 1, 128>}, {pipeline_mode = #tpu.pipeline_mode<synchronous>, transform_indices = @transform_14, window_bounds = array<i64: 128, 128>}, {pipeline_mode = #tpu.pipeline_mode<synchronous>, transform_indices = @transform_15, window_bounds = array<i64: 1, 128>}, {pipeline_mode = #tpu.pipeline_mode<synchronous>, transform_indices = @transform_16, window_bounds = array<i64: 128, 128>}, {pipeline_mode = #tpu.pipeline_mode<synchronous>, transform_indices = @transform_17, window_bounds = array<i64: 1, 128>}, {transform_indices = @transform_18, window_bounds = array<i64: 8, 128>}, {transform_indices = @transform_19, window_bounds = array<i64: 1, 1, 128>}]} {
    %c0 = arith.constant 0 : index
    %c0_0 = arith.constant 0 : index
    %0 = vector.load %arg2[%c0, %c0_0] : memref<8x128xbf16, #tpu.memory_space<vmem>>, vector<8x128xbf16>
    %1 = arith.extf %0 : vector<8x128xbf16> to vector<8x128xf32>
    %2 = arith.truncf %1 : vector<8x128xf32> to vector<8x128xbf16>
    %c0_1 = arith.constant 0 : index
    %c0_2 = arith.constant 0 : index
    %3 = vector.load %arg3[%c0_1, %c0_2] : memref<128x384xbf16, #tpu.memory_space<vmem>>, vector<128x384xbf16>
    %cst = arith.constant dense<0.000000e+00> : vector<8x384xf32>
    %4 = tpu.matmul %2, %3, %cst {dimension_numbers = #tpu.dot_dimension_numbers<[1], [0], [0], [1], [0, 0, 1, 1], [], []>} : vector<8x128xbf16>, vector<128x384xbf16>, vector<8x384xf32> -> vector<8x384xf32>
    %c0_3 = arith.constant 0 : index
    %c0_4 = arith.constant 0 : index
    %5 = vector.load %arg4[%c0_3, %c0_4] : memref<1x384xf32, #tpu.memory_space<vmem>>, vector<1x384xf32>
    %6 = vector.broadcast %5 : vector<1x384xf32> to vector<8x384xf32>
    %7 = arith.addf %4, %6 : vector<8x384xf32>
    %c0_5 = arith.constant 0 : index
    %c0_6 = arith.constant 0 : index
    %c0_7 = arith.constant 0 : index
    %8 = vector.load %arg1[%c0_5, %c0_6, %c0_7] : memref<1x1x8xf32, #tpu.memory_space<vmem>>, vector<1x1x8xf32>
    %9 = vector.shape_cast %8 : vector<1x1x8xf32> to vector<1x8xf32>
    %10 = vector.extract_strided_slice %7 {offsets = [0, 0], sizes = [8, 32], strides = [1, 1]} : vector<8x384xf32> to vector<8x32xf32>
    %11 = arith.truncf %10 : vector<8x32xf32> to vector<8x32xbf16>
    %12 = vector.extract_strided_slice %7 {offsets = [0, 128], sizes = [8, 32], strides = [1, 1]} : vector<8x384xf32> to vector<8x32xf32>
    %13 = arith.truncf %12 : vector<8x32xf32> to vector<8x32xbf16>
    %14 = vector.extract_strided_slice %7 {offsets = [0, 256], sizes = [8, 32], strides = [1, 1]} : vector<8x384xf32> to vector<8x32xf32>
    %15 = arith.truncf %14 : vector<8x32xf32> to vector<8x32xbf16>
    %cst_8 = arith.constant dense<0.000000e+00> : vector<8x8xf32>
    %16 = tpu.matmul %11, %13, %cst_8 {dimension_numbers = #tpu.dot_dimension_numbers<[1], [1], [0], [0], [0, 0, 1, 0], [], []>} : vector<8x32xbf16>, vector<8x32xbf16>, vector<8x8xf32> -> vector<8x8xf32>
    %cst_9 = arith.constant 0.176776692 : f32
    %17 = vector.broadcast %cst_9 : f32 to vector<8x8xf32>
    %18 = arith.mulf %16, %17 : vector<8x8xf32>
    %19 = vector.broadcast %9 : vector<1x8xf32> to vector<8x8xf32>
    %20 = arith.addf %18, %19 : vector<8x8xf32>
    %cst_10 = arith.constant dense<0xFF800000> : vector<8xf32>
    %21 = vector.multi_reduction <maximumf>, %20, %cst_10 [1] : vector<8x8xf32> to vector<8xf32>
    %22 = vector.shape_cast %21 : vector<8xf32> to vector<8x1xf32>
    %23 = vector.broadcast %22 : vector<8x1xf32> to vector<8x8xf32>
    %24 = arith.subf %20, %23 : vector<8x8xf32>
    %25 = math.exp %24 : vector<8x8xf32>
    %cst_11 = arith.constant dense<0.000000e+00> : vector<8xf32>
    %26 = vector.multi_reduction <add>, %25, %cst_11 [1] : vector<8x8xf32> to vector<8xf32>
    %27 = vector.shape_cast %26 : vector<8xf32> to vector<8x1xf32>
    %28 = tpu.reciprocal %27 {approx = true} : vector<8x1xf32> -> vector<8x1xf32>
    %29 = vector.broadcast %28 : vector<8x1xf32> to vector<8x8xf32>
    %30 = arith.mulf %25, %29 : vector<8x8xf32>
    %31 = arith.truncf %30 : vector<8x8xf32> to vector<8x8xbf16>
    %cst_12 = arith.constant dense<0.000000e+00> : vector<8x32xf32>
    %32 = tpu.matmul %31, %15, %cst_12 {dimension_numbers = #tpu.dot_dimension_numbers<[1], [0], [0], [1], [0, 0, 1, 1], [], []>} : vector<8x8xbf16>, vector<8x32xbf16>, vector<8x32xf32> -> vector<8x32xf32>
    %33 = arith.truncf %32 : vector<8x32xf32> to vector<8x32xbf16>
    %c0_13 = arith.constant 0 : index
    %c0_14 = arith.constant 0 : index
    %34 = vector.load %arg5[%c0_13, %c0_14] : memref<128x128xbf16, #tpu.memory_space<vmem>>, vector<32x128xbf16>
    %cst_15 = arith.constant dense<0.000000e+00> : vector<8x128xf32>
    %35 = tpu.matmul %33, %34, %cst_15 {dimension_numbers = #tpu.dot_dimension_numbers<[1], [0], [0], [1], [0, 0, 1, 1], [], []>} : vector<8x32xbf16>, vector<32x128xbf16>, vector<8x128xf32> -> vector<8x128xf32>
    %36 = vector.extract_strided_slice %7 {offsets = [0, 32], sizes = [8, 32], strides = [1, 1]} : vector<8x384xf32> to vector<8x32xf32>
    %37 = arith.truncf %36 : vector<8x32xf32> to vector<8x32xbf16>
    %38 = vector.extract_strided_slice %7 {offsets = [0, 160], sizes = [8, 32], strides = [1, 1]} : vector<8x384xf32> to vector<8x32xf32>
    %39 = arith.truncf %38 : vector<8x32xf32> to vector<8x32xbf16>
    %40 = vector.extract_strided_slice %7 {offsets = [0, 288], sizes = [8, 32], strides = [1, 1]} : vector<8x384xf32> to vector<8x32xf32>
    %41 = arith.truncf %40 : vector<8x32xf32> to vector<8x32xbf16>
    %cst_16 = arith.constant dense<0.000000e+00> : vector<8x8xf32>
    %42 = tpu.matmul %37, %39, %cst_16 {dimension_numbers = #tpu.dot_dimension_numbers<[1], [1], [0], [0], [0, 0, 1, 0], [], []>} : vector<8x32xbf16>, vector<8x32xbf16>, vector<8x8xf32> -> vector<8x8xf32>
    %cst_17 = arith.constant 0.176776692 : f32
    %43 = vector.broadcast %cst_17 : f32 to vector<8x8xf32>
    %44 = arith.mulf %42, %43 : vector<8x8xf32>
    %45 = vector.broadcast %9 : vector<1x8xf32> to vector<8x8xf32>
    %46 = arith.addf %44, %45 : vector<8x8xf32>
    %cst_18 = arith.constant dense<0xFF800000> : vector<8xf32>
    %47 = vector.multi_reduction <maximumf>, %46, %cst_18 [1] : vector<8x8xf32> to vector<8xf32>
    %48 = vector.shape_cast %47 : vector<8xf32> to vector<8x1xf32>
    %49 = vector.broadcast %48 : vector<8x1xf32> to vector<8x8xf32>
    %50 = arith.subf %46, %49 : vector<8x8xf32>
    %51 = math.exp %50 : vector<8x8xf32>
    %cst_19 = arith.constant dense<0.000000e+00> : vector<8xf32>
    %52 = vector.multi_reduction <add>, %51, %cst_19 [1] : vector<8x8xf32> to vector<8xf32>
    %53 = vector.shape_cast %52 : vector<8xf32> to vector<8x1xf32>
    %54 = tpu.reciprocal %53 {approx = true} : vector<8x1xf32> -> vector<8x1xf32>
    %55 = vector.broadcast %54 : vector<8x1xf32> to vector<8x8xf32>
    %56 = arith.mulf %51, %55 : vector<8x8xf32>
    %57 = arith.truncf %56 : vector<8x8xf32> to vector<8x8xbf16>
    %cst_20 = arith.constant dense<0.000000e+00> : vector<8x32xf32>
    %58 = tpu.matmul %57, %41, %cst_20 {dimension_numbers = #tpu.dot_dimension_numbers<[1], [0], [0], [1], [0, 0, 1, 1], [], []>} : vector<8x8xbf16>, vector<8x32xbf16>, vector<8x32xf32> -> vector<8x32xf32>
    %59 = arith.truncf %58 : vector<8x32xf32> to vector<8x32xbf16>
    %c32 = arith.constant 32 : index
    %c0_21 = arith.constant 0 : index
    %60 = vector.load %arg5[%c32, %c0_21] : memref<128x128xbf16, #tpu.memory_space<vmem>>, vector<32x128xbf16>
    %cst_22 = arith.constant dense<0.000000e+00> : vector<8x128xf32>
    %61 = tpu.matmul %59, %60, %cst_22 {dimension_numbers = #tpu.dot_dimension_numbers<[1], [0], [0], [1], [0, 0, 1, 1], [], []>} : vector<8x32xbf16>, vector<32x128xbf16>, vector<8x128xf32> -> vector<8x128xf32>
    %62 = arith.addf %35, %61 : vector<8x128xf32>
    %63 = vector.extract_strided_slice %7 {offsets = [0, 64], sizes = [8, 32], strides = [1, 1]} : vector<8x384xf32> to vector<8x32xf32>
    %64 = arith.truncf %63 : vector<8x32xf32> to vector<8x32xbf16>
    %65 = vector.extract_strided_slice %7 {offsets = [0, 192], sizes = [8, 32], strides = [1, 1]} : vector<8x384xf32> to vector<8x32xf32>
    %66 = arith.truncf %65 : vector<8x32xf32> to vector<8x32xbf16>
    %67 = vector.extract_strided_slice %7 {offsets = [0, 320], sizes = [8, 32], strides = [1, 1]} : vector<8x384xf32> to vector<8x32xf32>
    %68 = arith.truncf %67 : vector<8x32xf32> to vector<8x32xbf16>
    %cst_23 = arith.constant dense<0.000000e+00> : vector<8x8xf32>
    %69 = tpu.matmul %64, %66, %cst_23 {dimension_numbers = #tpu.dot_dimension_numbers<[1], [1], [0], [0], [0, 0, 1, 0], [], []>} : vector<8x32xbf16>, vector<8x32xbf16>, vector<8x8xf32> -> vector<8x8xf32>
    %cst_24 = arith.constant 0.176776692 : f32
    %70 = vector.broadcast %cst_24 : f32 to vector<8x8xf32>
    %71 = arith.mulf %69, %70 : vector<8x8xf32>
    %72 = vector.broadcast %9 : vector<1x8xf32> to vector<8x8xf32>
    %73 = arith.addf %71, %72 : vector<8x8xf32>
    %cst_25 = arith.constant dense<0xFF800000> : vector<8xf32>
    %74 = vector.multi_reduction <maximumf>, %73, %cst_25 [1] : vector<8x8xf32> to vector<8xf32>
    %75 = vector.shape_cast %74 : vector<8xf32> to vector<8x1xf32>
    %76 = vector.broadcast %75 : vector<8x1xf32> to vector<8x8xf32>
    %77 = arith.subf %73, %76 : vector<8x8xf32>
    %78 = math.exp %77 : vector<8x8xf32>
    %cst_26 = arith.constant dense<0.000000e+00> : vector<8xf32>
    %79 = vector.multi_reduction <add>, %78, %cst_26 [1] : vector<8x8xf32> to vector<8xf32>
    %80 = vector.shape_cast %79 : vector<8xf32> to vector<8x1xf32>
    %81 = tpu.reciprocal %80 {approx = true} : vector<8x1xf32> -> vector<8x1xf32>
    %82 = vector.broadcast %81 : vector<8x1xf32> to vector<8x8xf32>
    %83 = arith.mulf %78, %82 : vector<8x8xf32>
    %84 = arith.truncf %83 : vector<8x8xf32> to vector<8x8xbf16>
    %cst_27 = arith.constant dense<0.000000e+00> : vector<8x32xf32>
    %85 = tpu.matmul %84, %68, %cst_27 {dimension_numbers = #tpu.dot_dimension_numbers<[1], [0], [0], [1], [0, 0, 1, 1], [], []>} : vector<8x8xbf16>, vector<8x32xbf16>, vector<8x32xf32> -> vector<8x32xf32>
    %86 = arith.truncf %85 : vector<8x32xf32> to vector<8x32xbf16>
    %c64 = arith.constant 64 : index
    %c0_28 = arith.constant 0 : index
    %87 = vector.load %arg5[%c64, %c0_28] : memref<128x128xbf16, #tpu.memory_space<vmem>>, vector<32x128xbf16>
    %cst_29 = arith.constant dense<0.000000e+00> : vector<8x128xf32>
    %88 = tpu.matmul %86, %87, %cst_29 {dimension_numbers = #tpu.dot_dimension_numbers<[1], [0], [0], [1], [0, 0, 1, 1], [], []>} : vector<8x32xbf16>, vector<32x128xbf16>, vector<8x128xf32> -> vector<8x128xf32>
    %89 = arith.addf %62, %88 : vector<8x128xf32>
    %90 = vector.extract_strided_slice %7 {offsets = [0, 96], sizes = [8, 32], strides = [1, 1]} : vector<8x384xf32> to vector<8x32xf32>
    %91 = arith.truncf %90 : vector<8x32xf32> to vector<8x32xbf16>
    %92 = vector.extract_strided_slice %7 {offsets = [0, 224], sizes = [8, 32], strides = [1, 1]} : vector<8x384xf32> to vector<8x32xf32>
    %93 = arith.truncf %92 : vector<8x32xf32> to vector<8x32xbf16>
    %94 = vector.extract_strided_slice %7 {offsets = [0, 352], sizes = [8, 32], strides = [1, 1]} : vector<8x384xf32> to vector<8x32xf32>
    %95 = arith.truncf %94 : vector<8x32xf32> to vector<8x32xbf16>
    %cst_30 = arith.constant dense<0.000000e+00> : vector<8x8xf32>
    %96 = tpu.matmul %91, %93, %cst_30 {dimension_numbers = #tpu.dot_dimension_numbers<[1], [1], [0], [0], [0, 0, 1, 0], [], []>} : vector<8x32xbf16>, vector<8x32xbf16>, vector<8x8xf32> -> vector<8x8xf32>
    %cst_31 = arith.constant 0.176776692 : f32
    %97 = vector.broadcast %cst_31 : f32 to vector<8x8xf32>
    %98 = arith.mulf %96, %97 : vector<8x8xf32>
    %99 = vector.broadcast %9 : vector<1x8xf32> to vector<8x8xf32>
    %100 = arith.addf %98, %99 : vector<8x8xf32>
    %cst_32 = arith.constant dense<0xFF800000> : vector<8xf32>
    %101 = vector.multi_reduction <maximumf>, %100, %cst_32 [1] : vector<8x8xf32> to vector<8xf32>
    %102 = vector.shape_cast %101 : vector<8xf32> to vector<8x1xf32>
    %103 = vector.broadcast %102 : vector<8x1xf32> to vector<8x8xf32>
    %104 = arith.subf %100, %103 : vector<8x8xf32>
    %105 = math.exp %104 : vector<8x8xf32>
    %cst_33 = arith.constant dense<0.000000e+00> : vector<8xf32>
    %106 = vector.multi_reduction <add>, %105, %cst_33 [1] : vector<8x8xf32> to vector<8xf32>
    %107 = vector.shape_cast %106 : vector<8xf32> to vector<8x1xf32>
    %108 = tpu.reciprocal %107 {approx = true} : vector<8x1xf32> -> vector<8x1xf32>
    %109 = vector.broadcast %108 : vector<8x1xf32> to vector<8x8xf32>
    %110 = arith.mulf %105, %109 : vector<8x8xf32>
    %111 = arith.truncf %110 : vector<8x8xf32> to vector<8x8xbf16>
    %cst_34 = arith.constant dense<0.000000e+00> : vector<8x32xf32>
    %112 = tpu.matmul %111, %95, %cst_34 {dimension_numbers = #tpu.dot_dimension_numbers<[1], [0], [0], [1], [0, 0, 1, 1], [], []>} : vector<8x8xbf16>, vector<8x32xbf16>, vector<8x32xf32> -> vector<8x32xf32>
    %113 = arith.truncf %112 : vector<8x32xf32> to vector<8x32xbf16>
    %c96 = arith.constant 96 : index
    %c0_35 = arith.constant 0 : index
    %114 = vector.load %arg5[%c96, %c0_35] : memref<128x128xbf16, #tpu.memory_space<vmem>>, vector<32x128xbf16>
    %cst_36 = arith.constant dense<0.000000e+00> : vector<8x128xf32>
    %115 = tpu.matmul %113, %114, %cst_36 {dimension_numbers = #tpu.dot_dimension_numbers<[1], [0], [0], [1], [0, 0, 1, 1], [], []>} : vector<8x32xbf16>, vector<32x128xbf16>, vector<8x128xf32> -> vector<8x128xf32>
    %116 = arith.addf %89, %115 : vector<8x128xf32>
    %c0_37 = arith.constant 0 : index
    %c0_38 = arith.constant 0 : index
    %117 = vector.load %arg6[%c0_37, %c0_38] : memref<1x128xf32, #tpu.memory_space<vmem>>, vector<1x128xf32>
    %118 = vector.broadcast %117 : vector<1x128xf32> to vector<8x128xf32>
    %119 = arith.addf %116, %118 : vector<8x128xf32>
    %120 = arith.addf %119, %1 : vector<8x128xf32>
    %c0_39 = arith.constant 0 : index
    %c0_40 = arith.constant 0 : index
    %121 = vector.load %arg7[%c0_39, %c0_40] : memref<1x128xf32, #tpu.memory_space<vmem>>, vector<1x128xf32>
    %c0_41 = arith.constant 0 : index
    %c0_42 = arith.constant 0 : index
    %122 = vector.load %arg8[%c0_41, %c0_42] : memref<1x128xf32, #tpu.memory_space<vmem>>, vector<1x128xf32>
    %cst_43 = arith.constant dense<0.000000e+00> : vector<8xf32>
    %123 = vector.multi_reduction <add>, %120, %cst_43 [1] : vector<8x128xf32> to vector<8xf32>
    %124 = vector.shape_cast %123 : vector<8xf32> to vector<8x1xf32>
    %cst_44 = arith.constant 1.280000e+02 : f32
    %125 = vector.broadcast %cst_44 : f32 to vector<8x1xf32>
    %126 = arith.divf %124, %125 : vector<8x1xf32>
    %127 = vector.broadcast %126 : vector<8x1xf32> to vector<8x128xf32>
    %128 = arith.subf %120, %127 : vector<8x128xf32>
    %129 = vector.broadcast %126 : vector<8x1xf32> to vector<8x128xf32>
    %130 = arith.subf %120, %129 : vector<8x128xf32>
    %131 = arith.mulf %128, %130 : vector<8x128xf32>
    %cst_45 = arith.constant dense<0.000000e+00> : vector<8xf32>
    %132 = vector.multi_reduction <add>, %131, %cst_45 [1] : vector<8x128xf32> to vector<8xf32>
    %133 = vector.shape_cast %132 : vector<8xf32> to vector<8x1xf32>
    %cst_46 = arith.constant 1.280000e+02 : f32
    %134 = vector.broadcast %cst_46 : f32 to vector<8x1xf32>
    %135 = arith.divf %133, %134 : vector<8x1xf32>
    %136 = vector.broadcast %126 : vector<8x1xf32> to vector<8x128xf32>
    %137 = arith.subf %120, %136 : vector<8x128xf32>
    %cst_47 = arith.constant 9.99999996E-13 : f32
    %138 = vector.broadcast %cst_47 : f32 to vector<8x1xf32>
    %139 = arith.addf %135, %138 : vector<8x1xf32>
    %140 = math.rsqrt %139 : vector<8x1xf32>
    %141 = vector.broadcast %140 : vector<8x1xf32> to vector<8x128xf32>
    %142 = arith.mulf %137, %141 : vector<8x128xf32>
    %143 = vector.broadcast %121 : vector<1x128xf32> to vector<8x128xf32>
    %144 = arith.mulf %142, %143 : vector<8x128xf32>
    %145 = vector.broadcast %122 : vector<1x128xf32> to vector<8x128xf32>
    %146 = arith.addf %144, %145 : vector<8x128xf32>
    %147 = arith.truncf %146 : vector<8x128xf32> to vector<8x128xbf16>
    %c0_48 = arith.constant 0 : index
    %c0_49 = arith.constant 0 : index
    %148 = vector.load %arg9[%c0_48, %c0_49] : memref<128x512xbf16, #tpu.memory_space<vmem>>, vector<128x512xbf16>
    %cst_50 = arith.constant dense<0.000000e+00> : vector<8x512xf32>
    %149 = tpu.matmul %147, %148, %cst_50 {dimension_numbers = #tpu.dot_dimension_numbers<[1], [0], [0], [1], [0, 0, 1, 1], [], []>} : vector<8x128xbf16>, vector<128x512xbf16>, vector<8x512xf32> -> vector<8x512xf32>
    %c0_51 = arith.constant 0 : index
    %c0_52 = arith.constant 0 : index
    %150 = vector.load %arg10[%c0_51, %c0_52] : memref<1x512xf32, #tpu.memory_space<vmem>>, vector<1x512xf32>
    %151 = vector.broadcast %150 : vector<1x512xf32> to vector<8x512xf32>
    %152 = arith.addf %149, %151 : vector<8x512xf32>
    %cst_53 = arith.constant 5.000000e-01 : f32
    %153 = vector.broadcast %cst_53 : f32 to vector<8x512xf32>
    %154 = arith.mulf %153, %152 : vector<8x512xf32>
    %cst_54 = arith.constant 4.471500e-02 : f32
    %155 = vector.broadcast %cst_54 : f32 to vector<8x512xf32>
    %156 = arith.mulf %155, %152 : vector<8x512xf32>
    %157 = arith.mulf %156, %152 : vector<8x512xf32>
    %158 = arith.mulf %157, %152 : vector<8x512xf32>
    %159 = arith.addf %152, %158 : vector<8x512xf32>
    %cst_55 = arith.constant 0.797884583 : f32
    %160 = vector.broadcast %cst_55 : f32 to vector<8x512xf32>
    %161 = arith.mulf %160, %159 : vector<8x512xf32>
    %162 = math.tanh %161 : vector<8x512xf32>
    %cst_56 = arith.constant 1.000000e+00 : f32
    %163 = vector.broadcast %cst_56 : f32 to vector<8x512xf32>
    %164 = arith.addf %163, %162 : vector<8x512xf32>
    %165 = arith.mulf %154, %164 : vector<8x512xf32>
    %166 = arith.truncf %165 : vector<8x512xf32> to vector<8x512xbf16>
    %c0_57 = arith.constant 0 : index
    %c0_58 = arith.constant 0 : index
    %167 = vector.load %arg11[%c0_57, %c0_58] : memref<512x128xbf16, #tpu.memory_space<vmem>>, vector<512x128xbf16>
    %cst_59 = arith.constant dense<0.000000e+00> : vector<8x128xf32>
    %168 = tpu.matmul %166, %167, %cst_59 {dimension_numbers = #tpu.dot_dimension_numbers<[1], [0], [0], [1], [0, 0, 1, 1], [], []>} : vector<8x512xbf16>, vector<512x128xbf16>, vector<8x128xf32> -> vector<8x128xf32>
    %c0_60 = arith.constant 0 : index
    %c0_61 = arith.constant 0 : index
    %169 = vector.load %arg12[%c0_60, %c0_61] : memref<1x128xf32, #tpu.memory_space<vmem>>, vector<1x128xf32>
    %170 = vector.broadcast %169 : vector<1x128xf32> to vector<8x128xf32>
    %171 = arith.addf %168, %170 : vector<8x128xf32>
    %172 = arith.addf %171, %146 : vector<8x128xf32>
    %c0_62 = arith.constant 0 : index
    %c0_63 = arith.constant 0 : index
    %173 = vector.load %arg13[%c0_62, %c0_63] : memref<1x128xf32, #tpu.memory_space<vmem>>, vector<1x128xf32>
    %c0_64 = arith.constant 0 : index
    %c0_65 = arith.constant 0 : index
    %174 = vector.load %arg14[%c0_64, %c0_65] : memref<1x128xf32, #tpu.memory_space<vmem>>, vector<1x128xf32>
    %cst_66 = arith.constant dense<0.000000e+00> : vector<8xf32>
    %175 = vector.multi_reduction <add>, %172, %cst_66 [1] : vector<8x128xf32> to vector<8xf32>
    %176 = vector.shape_cast %175 : vector<8xf32> to vector<8x1xf32>
    %cst_67 = arith.constant 1.280000e+02 : f32
    %177 = vector.broadcast %cst_67 : f32 to vector<8x1xf32>
    %178 = arith.divf %176, %177 : vector<8x1xf32>
    %179 = vector.broadcast %178 : vector<8x1xf32> to vector<8x128xf32>
    %180 = arith.subf %172, %179 : vector<8x128xf32>
    %181 = vector.broadcast %178 : vector<8x1xf32> to vector<8x128xf32>
    %182 = arith.subf %172, %181 : vector<8x128xf32>
    %183 = arith.mulf %180, %182 : vector<8x128xf32>
    %cst_68 = arith.constant dense<0.000000e+00> : vector<8xf32>
    %184 = vector.multi_reduction <add>, %183, %cst_68 [1] : vector<8x128xf32> to vector<8xf32>
    %185 = vector.shape_cast %184 : vector<8xf32> to vector<8x1xf32>
    %cst_69 = arith.constant 1.280000e+02 : f32
    %186 = vector.broadcast %cst_69 : f32 to vector<8x1xf32>
    %187 = arith.divf %185, %186 : vector<8x1xf32>
    %188 = vector.broadcast %178 : vector<8x1xf32> to vector<8x128xf32>
    %189 = arith.subf %172, %188 : vector<8x128xf32>
    %cst_70 = arith.constant 9.99999996E-13 : f32
    %190 = vector.broadcast %cst_70 : f32 to vector<8x1xf32>
    %191 = arith.addf %187, %190 : vector<8x1xf32>
    %192 = math.rsqrt %191 : vector<8x1xf32>
    %193 = vector.broadcast %192 : vector<8x1xf32> to vector<8x128xf32>
    %194 = arith.mulf %189, %193 : vector<8x128xf32>
    %195 = vector.broadcast %173 : vector<1x128xf32> to vector<8x128xf32>
    %196 = arith.mulf %194, %195 : vector<8x128xf32>
    %197 = vector.broadcast %174 : vector<1x128xf32> to vector<8x128xf32>
    %198 = arith.addf %196, %197 : vector<8x128xf32>
    %199 = arith.truncf %198 : vector<8x128xf32> to vector<8x128xbf16>
    %c0_71 = arith.constant 0 : index
    %c0_72 = arith.constant 0 : index
    %200 = vector.load %arg19[%c0_71, %c0_72] : memref<8x128xbf16, #tpu.memory_space<vmem>>, vector<8x128xbf16>
    tpu.vector_store %arg19[%c0_71, %c0_72], %199 {strides = array<i32>} : memref<8x128xbf16, #tpu.memory_space<vmem>>, vector<8x128xbf16>,
    %201 = vector.extract_strided_slice %198 {offsets = [0, 0], sizes = [1, 128], strides = [1, 1]} : vector<8x128xf32> to vector<1x128xf32>
    %202 = arith.truncf %201 : vector<1x128xf32> to vector<1x128xbf16>
    %c0_73 = arith.constant 0 : index
    %c0_74 = arith.constant 0 : index
    %203 = vector.load %arg15[%c0_73, %c0_74] : memref<128x128xbf16, #tpu.memory_space<vmem>>, vector<128x128xbf16>
    %cst_75 = arith.constant dense<0.000000e+00> : vector<1x128xf32>
    %204 = tpu.matmul %202, %203, %cst_75 {dimension_numbers = #tpu.dot_dimension_numbers<[1], [0], [0], [1], [0, 0, 1, 1], [], []>} : vector<1x128xbf16>, vector<128x128xbf16>, vector<1x128xf32> -> vector<1x128xf32>
    %c0_76 = arith.constant 0 : index
    %c0_77 = arith.constant 0 : index
    %205 = vector.load %arg16[%c0_76, %c0_77] : memref<1x128xf32, #tpu.memory_space<vmem>>, vector<1x128xf32>
    %206 = arith.addf %204, %205 : vector<1x128xf32>
    %207 = math.tanh %206 : vector<1x128xf32>
    %208 = arith.truncf %207 : vector<1x128xf32> to vector<1x128xbf16>
    %c0_78 = arith.constant 0 : index
    %c0_79 = arith.constant 0 : index
    %209 = vector.load %arg17[%c0_78, %c0_79] : memref<128x128xbf16, #tpu.memory_space<vmem>>, vector<128x128xbf16>
    %cst_80 = arith.constant dense<0.000000e+00> : vector<1x128xf32>
    %210 = tpu.matmul %208, %209, %cst_80 {dimension_numbers = #tpu.dot_dimension_numbers<[1], [0], [0], [1], [0, 0, 1, 1], [], []>} : vector<1x128xbf16>, vector<128x128xbf16>, vector<1x128xf32> -> vector<1x128xf32>
    %c0_81 = arith.constant 0 : index
    %c0_82 = arith.constant 0 : index
    %211 = vector.load %arg18[%c0_81, %c0_82] : memref<1x128xf32, #tpu.memory_space<vmem>>, vector<1x128xf32>
    %212 = arith.addf %210, %211 : vector<1x128xf32>
    %213 = vector.shape_cast %212 : vector<1x128xf32> to vector<1x1x128xf32>
    %c0_83 = arith.constant 0 : index
    %c0_84 = arith.constant 0 : index
    %c0_85 = arith.constant 0 : index
    %214 = vector.load %arg20[%c0_83, %c0_84, %c0_85] : memref<1x1x128xf32, #tpu.memory_space<vmem>>, vector<1x1x128xf32>
    tpu.vector_store %arg20[%c0_83, %c0_84, %c0_85], %213 {strides = array<i32>} : memref<1x1x128xf32, #tpu.memory_space<vmem>>, vector<1x1x128xf32>,
    return
  }
  func.func @transform_0(%arg0: i32) -> (i32, i32, i32) {
    %c0_i32 = arith.constant 0 : i32
    %c0_i32_0 = arith.constant 0 : i32
    %c0_i32_1 = arith.constant 0 : i32
    return %arg0, %c0_i32, %c0_i32_0 : i32, i32, i32
  }
  func.func @transform_1(%arg0: i32) -> (i32, i32) {
    %c0_i32 = arith.constant 0 : i32
    %c0_i32_0 = arith.constant 0 : i32
    return %arg0, %c0_i32 : i32, i32
  }
  func.func @transform_2(%arg0: i32) -> (i32, i32) {
    %c0_i32 = arith.constant 0 : i32
    %c0_i32_0 = arith.constant 0 : i32
    %c0_i32_1 = arith.constant 0 : i32
    return %c0_i32, %c0_i32_0 : i32, i32
  }
  func.func @transform_3(%arg0: i32) -> (i32, i32) {
    %c0_i32 = arith.constant 0 : i32
    %c0_i32_0 = arith.constant 0 : i32
    %c0_i32_1 = arith.constant 0 : i32
    return %c0_i32, %c0_i32_0 : i32, i32
  }
  func.func @transform_4(%arg0: i32) -> (i32, i32) {
    %c0_i32 = arith.constant 0 : i32
    %c0_i32_0 = arith.constant 0 : i32
    %c0_i32_1 = arith.constant 0 : i32
    return %c0_i32, %c0_i32_0 : i32, i32
  }
  func.func @transform_5(%arg0: i32) -> (i32, i32) {
    %c0_i32 = arith.constant 0 : i32
    %c0_i32_0 = arith.constant 0 : i32
    %c0_i32_1 = arith.constant 0 : i32
    return %c0_i32, %c0_i32_0 : i32, i32
  }
  func.func @transform_6(%arg0: i32) -> (i32, i32) {
    %c0_i32 = arith.constant 0 : i32
    %c0_i32_0 = arith.constant 0 : i32
    %c0_i32_1 = arith.constant 0 : i32
    return %c0_i32, %c0_i32_0 : i32, i32
  }
  func.func @transform_7(%arg0: i32) -> (i32, i32) {
    %c0_i32 = arith.constant 0 : i32
    %c0_i32_0 = arith.constant 0 : i32
    %c0_i32_1 = arith.constant 0 : i32
    return %c0_i32, %c0_i32_0 : i32, i32
  }
  func.func @transform_8(%arg0: i32) -> (i32, i32) {
    %c0_i32 = arith.constant 0 : i32
    %c0_i32_0 = arith.constant 0 : i32
    %c0_i32_1 = arith.constant 0 : i32
    return %c0_i32, %c0_i32_0 : i32, i32
  }
  func.func @transform_9(%arg0: i32) -> (i32, i32) {
    %c0_i32 = arith.constant 0 : i32
    %c0_i32_0 = arith.constant 0 : i32
    %c0_i32_1 = arith.constant 0 : i32
    return %c0_i32, %c0_i32_0 : i32, i32
  }
  func.func @transform_10(%arg0: i32) -> (i32, i32) {
    %c0_i32 = arith.constant 0 : i32
    %c0_i32_0 = arith.constant 0 : i32
    %c0_i32_1 = arith.constant 0 : i32
    return %c0_i32, %c0_i32_0 : i32, i32
  }
  func.func @transform_11(%arg0: i32) -> (i32, i32) {
    %c0_i32 = arith.constant 0 : i32
    %c0_i32_0 = arith.constant 0 : i32
    %c0_i32_1 = arith.constant 0 : i32
    return %c0_i32, %c0_i32_0 : i32, i32
  }
  func.func @transform_12(%arg0: i32) -> (i32, i32) {
    %c0_i32 = arith.constant 0 : i32
    %c0_i32_0 = arith.constant 0 : i32
    %c0_i32_1 = arith.constant 0 : i32
    return %c0_i32, %c0_i32_0 : i32, i32
  }
  func.func @transform_13(%arg0: i32) -> (i32, i32) {
    %c0_i32 = arith.constant 0 : i32
    %c0_i32_0 = arith.constant 0 : i32
    %c0_i32_1 = arith.constant 0 : i32
    return %c0_i32, %c0_i32_0 : i32, i32
  }
  func.func @transform_14(%arg0: i32) -> (i32, i32) {
    %c0_i32 = arith.constant 0 : i32
    %c0_i32_0 = arith.constant 0 : i32
    %c0_i32_1 = arith.constant 0 : i32
    return %c0_i32, %c0_i32_0 : i32, i32
  }
  func.func @transform_15(%arg0: i32) -> (i32, i32) {
    %c0_i32 = arith.constant 0 : i32
    %c0_i32_0 = arith.constant 0 : i32
    %c0_i32_1 = arith.constant 0 : i32
    return %c0_i32, %c0_i32_0 : i32, i32
  }
  func.func @transform_16(%arg0: i32) -> (i32, i32) {
    %c0_i32 = arith.constant 0 : i32
    %c0_i32_0 = arith.constant 0 : i32
    %c0_i32_1 = arith.constant 0 : i32
    return %c0_i32, %c0_i32_0 : i32, i32
  }
  func.func @transform_17(%arg0: i32) -> (i32, i32) {
    %c0_i32 = arith.constant 0 : i32
    %c0_i32_0 = arith.constant 0 : i32
    %c0_i32_1 = arith.constant 0 : i32
    return %c0_i32, %c0_i32_0 : i32, i32
  }
  func.func @transform_18(%arg0: i32) -> (i32, i32) {
    %c0_i32 = arith.constant 0 : i32
    %c0_i32_0 = arith.constant 0 : i32
    return %arg0, %c0_i32 : i32, i32
  }
  func.func @transform_19(%arg0: i32) -> (i32, i32, i32) {
    %c0_i32 = arith.constant 0 : i32
    %c0_i32_0 = arith.constant 0 : i32
    %c0_i32_1 = arith.constant 0 : i32
    return %arg0, %c0_i32, %c0_i32_0 : i32, i32, i32
  }
}

module attributes {stable_mosaic.version = 11 : i64} {
  func.func @_layer_kernel(%arg0: i32, %arg1: memref<1x1x8xf32, #tpu.memory_space<vmem>>, %arg2: memref<8x128xbf16, #tpu.memory_space<vmem>>, %arg3: memref<1x128xf32, #tpu.memory_space<vmem>>, %arg4: memref<1x128xf32, #tpu.memory_space<vmem>>, %arg5: memref<128x384xbf16, #tpu.memory_space<vmem>>, %arg6: memref<1x384xf32, #tpu.memory_space<vmem>>, %arg7: memref<128x128xbf16, #tpu.memory_space<vmem>>, %arg8: memref<1x128xf32, #tpu.memory_space<vmem>>, %arg9: memref<1x128xf32, #tpu.memory_space<vmem>>, %arg10: memref<1x128xf32, #tpu.memory_space<vmem>>, %arg11: memref<128x512xbf16, #tpu.memory_space<vmem>>, %arg12: memref<1x512xf32, #tpu.memory_space<vmem>>, %arg13: memref<512x128xbf16, #tpu.memory_space<vmem>>, %arg14: memref<1x128xf32, #tpu.memory_space<vmem>>, %arg15: memref<1x128xf32, #tpu.memory_space<vmem>>, %arg16: memref<1x128xf32, #tpu.memory_space<vmem>>, %arg17: memref<8x128xbf16, #tpu.memory_space<vmem>>) attributes {dimension_semantics = [#tpu.dimension_semantics<parallel>], iteration_bounds = array<i64: 2>, scalar_prefetch = 0 : i64, scratch_operands = 0 : i64, tpu.core_type = #tpu.core_type<tc>, window_params = [{transform_indices = @transform_0, window_bounds = array<i64: 1, 1, 8>}, {transform_indices = @transform_1, window_bounds = array<i64: 8, 128>}, {pipeline_mode = #tpu.pipeline_mode<synchronous>, transform_indices = @transform_2, window_bounds = array<i64: 1, 128>}, {pipeline_mode = #tpu.pipeline_mode<synchronous>, transform_indices = @transform_3, window_bounds = array<i64: 1, 128>}, {pipeline_mode = #tpu.pipeline_mode<synchronous>, transform_indices = @transform_4, window_bounds = array<i64: 128, 384>}, {pipeline_mode = #tpu.pipeline_mode<synchronous>, transform_indices = @transform_5, window_bounds = array<i64: 1, 384>}, {pipeline_mode = #tpu.pipeline_mode<synchronous>, transform_indices = @transform_6, window_bounds = array<i64: 128, 128>}, {pipeline_mode = #tpu.pipeline_mode<synchronous>, transform_indices = @transform_7, window_bounds = array<i64: 1, 128>}, {pipeline_mode = #tpu.pipeline_mode<synchronous>, transform_indices = @transform_8, window_bounds = array<i64: 1, 128>}, {pipeline_mode = #tpu.pipeline_mode<synchronous>, transform_indices = @transform_9, window_bounds = array<i64: 1, 128>}, {pipeline_mode = #tpu.pipeline_mode<synchronous>, transform_indices = @transform_10, window_bounds = array<i64: 128, 512>}, {pipeline_mode = #tpu.pipeline_mode<synchronous>, transform_indices = @transform_11, window_bounds = array<i64: 1, 512>}, {pipeline_mode = #tpu.pipeline_mode<synchronous>, transform_indices = @transform_12, window_bounds = array<i64: 512, 128>}, {pipeline_mode = #tpu.pipeline_mode<synchronous>, transform_indices = @transform_13, window_bounds = array<i64: 1, 128>}, {pipeline_mode = #tpu.pipeline_mode<synchronous>, transform_indices = @transform_14, window_bounds = array<i64: 1, 128>}, {pipeline_mode = #tpu.pipeline_mode<synchronous>, transform_indices = @transform_15, window_bounds = array<i64: 1, 128>}, {transform_indices = @transform_16, window_bounds = array<i64: 8, 128>}]} {
    %c0 = arith.constant 0 : index
    %c0_0 = arith.constant 0 : index
    %0 = vector.load %arg2[%c0, %c0_0] : memref<8x128xbf16, #tpu.memory_space<vmem>>, vector<8x128xbf16>
    %1 = arith.extf %0 : vector<8x128xbf16> to vector<8x128xf32>
    %c0_1 = arith.constant 0 : index
    %c0_2 = arith.constant 0 : index
    %2 = vector.load %arg3[%c0_1, %c0_2] : memref<1x128xf32, #tpu.memory_space<vmem>>, vector<1x128xf32>
    %c0_3 = arith.constant 0 : index
    %c0_4 = arith.constant 0 : index
    %3 = vector.load %arg4[%c0_3, %c0_4] : memref<1x128xf32, #tpu.memory_space<vmem>>, vector<1x128xf32>
    %cst = arith.constant dense<0.000000e+00> : vector<8xf32>
    %4 = vector.multi_reduction <add>, %1, %cst [1] : vector<8x128xf32> to vector<8xf32>
    %5 = vector.shape_cast %4 : vector<8xf32> to vector<8x1xf32>
    %cst_5 = arith.constant 1.280000e+02 : f32
    %6 = vector.broadcast %cst_5 : f32 to vector<8x1xf32>
    %7 = arith.divf %5, %6 : vector<8x1xf32>
    %8 = vector.broadcast %7 : vector<8x1xf32> to vector<8x128xf32>
    %9 = arith.subf %1, %8 : vector<8x128xf32>
    %10 = vector.broadcast %7 : vector<8x1xf32> to vector<8x128xf32>
    %11 = arith.subf %1, %10 : vector<8x128xf32>
    %12 = arith.mulf %9, %11 : vector<8x128xf32>
    %cst_6 = arith.constant dense<0.000000e+00> : vector<8xf32>
    %13 = vector.multi_reduction <add>, %12, %cst_6 [1] : vector<8x128xf32> to vector<8xf32>
    %14 = vector.shape_cast %13 : vector<8xf32> to vector<8x1xf32>
    %cst_7 = arith.constant 1.280000e+02 : f32
    %15 = vector.broadcast %cst_7 : f32 to vector<8x1xf32>
    %16 = arith.divf %14, %15 : vector<8x1xf32>
    %17 = vector.broadcast %7 : vector<8x1xf32> to vector<8x128xf32>
    %18 = arith.subf %1, %17 : vector<8x128xf32>
    %cst_8 = arith.constant 9.99999996E-13 : f32
    %19 = vector.broadcast %cst_8 : f32 to vector<8x1xf32>
    %20 = arith.addf %16, %19 : vector<8x1xf32>
    %21 = math.rsqrt %20 : vector<8x1xf32>
    %22 = vector.broadcast %21 : vector<8x1xf32> to vector<8x128xf32>
    %23 = arith.mulf %18, %22 : vector<8x128xf32>
    %24 = vector.broadcast %2 : vector<1x128xf32> to vector<8x128xf32>
    %25 = arith.mulf %23, %24 : vector<8x128xf32>
    %26 = vector.broadcast %3 : vector<1x128xf32> to vector<8x128xf32>
    %27 = arith.addf %25, %26 : vector<8x128xf32>
    %28 = arith.truncf %27 : vector<8x128xf32> to vector<8x128xbf16>
    %c0_9 = arith.constant 0 : index
    %c0_10 = arith.constant 0 : index
    %29 = vector.load %arg5[%c0_9, %c0_10] : memref<128x384xbf16, #tpu.memory_space<vmem>>, vector<128x384xbf16>
    %cst_11 = arith.constant dense<0.000000e+00> : vector<8x384xf32>
    %30 = tpu.matmul %28, %29, %cst_11 {dimension_numbers = #tpu.dot_dimension_numbers<[1], [0], [0], [1], [0, 0, 1, 1], [], []>} : vector<8x128xbf16>, vector<128x384xbf16>, vector<8x384xf32> -> vector<8x384xf32>
    %c0_12 = arith.constant 0 : index
    %c0_13 = arith.constant 0 : index
    %31 = vector.load %arg6[%c0_12, %c0_13] : memref<1x384xf32, #tpu.memory_space<vmem>>, vector<1x384xf32>
    %32 = vector.broadcast %31 : vector<1x384xf32> to vector<8x384xf32>
    %33 = arith.addf %30, %32 : vector<8x384xf32>
    %c0_14 = arith.constant 0 : index
    %c0_15 = arith.constant 0 : index
    %c0_16 = arith.constant 0 : index
    %34 = vector.load %arg1[%c0_14, %c0_15, %c0_16] : memref<1x1x8xf32, #tpu.memory_space<vmem>>, vector<1x1x8xf32>
    %35 = vector.shape_cast %34 : vector<1x1x8xf32> to vector<1x8xf32>
    %36 = vector.extract_strided_slice %33 {offsets = [0, 0], sizes = [8, 32], strides = [1, 1]} : vector<8x384xf32> to vector<8x32xf32>
    %37 = arith.truncf %36 : vector<8x32xf32> to vector<8x32xbf16>
    %38 = vector.extract_strided_slice %33 {offsets = [0, 128], sizes = [8, 32], strides = [1, 1]} : vector<8x384xf32> to vector<8x32xf32>
    %39 = arith.truncf %38 : vector<8x32xf32> to vector<8x32xbf16>
    %40 = vector.extract_strided_slice %33 {offsets = [0, 256], sizes = [8, 32], strides = [1, 1]} : vector<8x384xf32> to vector<8x32xf32>
    %41 = arith.truncf %40 : vector<8x32xf32> to vector<8x32xbf16>
    %cst_17 = arith.constant dense<0.000000e+00> : vector<8x8xf32>
    %42 = tpu.matmul %37, %39, %cst_17 {dimension_numbers = #tpu.dot_dimension_numbers<[1], [1], [0], [0], [0, 0, 1, 0], [], []>} : vector<8x32xbf16>, vector<8x32xbf16>, vector<8x8xf32> -> vector<8x8xf32>
    %cst_18 = arith.constant 0.176776692 : f32
    %43 = vector.broadcast %cst_18 : f32 to vector<8x8xf32>
    %44 = arith.mulf %42, %43 : vector<8x8xf32>
    %45 = vector.broadcast %35 : vector<1x8xf32> to vector<8x8xf32>
    %46 = arith.addf %44, %45 : vector<8x8xf32>
    %cst_19 = arith.constant dense<0xFF800000> : vector<8xf32>
    %47 = vector.multi_reduction <maximumf>, %46, %cst_19 [1] : vector<8x8xf32> to vector<8xf32>
    %48 = vector.shape_cast %47 : vector<8xf32> to vector<8x1xf32>
    %49 = vector.broadcast %48 : vector<8x1xf32> to vector<8x8xf32>
    %50 = arith.subf %46, %49 : vector<8x8xf32>
    %51 = math.exp %50 : vector<8x8xf32>
    %cst_20 = arith.constant dense<0.000000e+00> : vector<8xf32>
    %52 = vector.multi_reduction <add>, %51, %cst_20 [1] : vector<8x8xf32> to vector<8xf32>
    %53 = vector.shape_cast %52 : vector<8xf32> to vector<8x1xf32>
    %54 = tpu.reciprocal %53 {approx = true} : vector<8x1xf32> -> vector<8x1xf32>
    %55 = vector.broadcast %54 : vector<8x1xf32> to vector<8x8xf32>
    %56 = arith.mulf %51, %55 : vector<8x8xf32>
    %57 = arith.truncf %56 : vector<8x8xf32> to vector<8x8xbf16>
    %cst_21 = arith.constant dense<0.000000e+00> : vector<8x32xf32>
    %58 = tpu.matmul %57, %41, %cst_21 {dimension_numbers = #tpu.dot_dimension_numbers<[1], [0], [0], [1], [0, 0, 1, 1], [], []>} : vector<8x8xbf16>, vector<8x32xbf16>, vector<8x32xf32> -> vector<8x32xf32>
    %59 = arith.truncf %58 : vector<8x32xf32> to vector<8x32xbf16>
    %c0_22 = arith.constant 0 : index
    %c0_23 = arith.constant 0 : index
    %60 = vector.load %arg7[%c0_22, %c0_23] : memref<128x128xbf16, #tpu.memory_space<vmem>>, vector<32x128xbf16>
    %cst_24 = arith.constant dense<0.000000e+00> : vector<8x128xf32>
    %61 = tpu.matmul %59, %60, %cst_24 {dimension_numbers = #tpu.dot_dimension_numbers<[1], [0], [0], [1], [0, 0, 1, 1], [], []>} : vector<8x32xbf16>, vector<32x128xbf16>, vector<8x128xf32> -> vector<8x128xf32>
    %62 = vector.extract_strided_slice %33 {offsets = [0, 32], sizes = [8, 32], strides = [1, 1]} : vector<8x384xf32> to vector<8x32xf32>
    %63 = arith.truncf %62 : vector<8x32xf32> to vector<8x32xbf16>
    %64 = vector.extract_strided_slice %33 {offsets = [0, 160], sizes = [8, 32], strides = [1, 1]} : vector<8x384xf32> to vector<8x32xf32>
    %65 = arith.truncf %64 : vector<8x32xf32> to vector<8x32xbf16>
    %66 = vector.extract_strided_slice %33 {offsets = [0, 288], sizes = [8, 32], strides = [1, 1]} : vector<8x384xf32> to vector<8x32xf32>
    %67 = arith.truncf %66 : vector<8x32xf32> to vector<8x32xbf16>
    %cst_25 = arith.constant dense<0.000000e+00> : vector<8x8xf32>
    %68 = tpu.matmul %63, %65, %cst_25 {dimension_numbers = #tpu.dot_dimension_numbers<[1], [1], [0], [0], [0, 0, 1, 0], [], []>} : vector<8x32xbf16>, vector<8x32xbf16>, vector<8x8xf32> -> vector<8x8xf32>
    %cst_26 = arith.constant 0.176776692 : f32
    %69 = vector.broadcast %cst_26 : f32 to vector<8x8xf32>
    %70 = arith.mulf %68, %69 : vector<8x8xf32>
    %71 = vector.broadcast %35 : vector<1x8xf32> to vector<8x8xf32>
    %72 = arith.addf %70, %71 : vector<8x8xf32>
    %cst_27 = arith.constant dense<0xFF800000> : vector<8xf32>
    %73 = vector.multi_reduction <maximumf>, %72, %cst_27 [1] : vector<8x8xf32> to vector<8xf32>
    %74 = vector.shape_cast %73 : vector<8xf32> to vector<8x1xf32>
    %75 = vector.broadcast %74 : vector<8x1xf32> to vector<8x8xf32>
    %76 = arith.subf %72, %75 : vector<8x8xf32>
    %77 = math.exp %76 : vector<8x8xf32>
    %cst_28 = arith.constant dense<0.000000e+00> : vector<8xf32>
    %78 = vector.multi_reduction <add>, %77, %cst_28 [1] : vector<8x8xf32> to vector<8xf32>
    %79 = vector.shape_cast %78 : vector<8xf32> to vector<8x1xf32>
    %80 = tpu.reciprocal %79 {approx = true} : vector<8x1xf32> -> vector<8x1xf32>
    %81 = vector.broadcast %80 : vector<8x1xf32> to vector<8x8xf32>
    %82 = arith.mulf %77, %81 : vector<8x8xf32>
    %83 = arith.truncf %82 : vector<8x8xf32> to vector<8x8xbf16>
    %cst_29 = arith.constant dense<0.000000e+00> : vector<8x32xf32>
    %84 = tpu.matmul %83, %67, %cst_29 {dimension_numbers = #tpu.dot_dimension_numbers<[1], [0], [0], [1], [0, 0, 1, 1], [], []>} : vector<8x8xbf16>, vector<8x32xbf16>, vector<8x32xf32> -> vector<8x32xf32>
    %85 = arith.truncf %84 : vector<8x32xf32> to vector<8x32xbf16>
    %c32 = arith.constant 32 : index
    %c0_30 = arith.constant 0 : index
    %86 = vector.load %arg7[%c32, %c0_30] : memref<128x128xbf16, #tpu.memory_space<vmem>>, vector<32x128xbf16>
    %cst_31 = arith.constant dense<0.000000e+00> : vector<8x128xf32>
    %87 = tpu.matmul %85, %86, %cst_31 {dimension_numbers = #tpu.dot_dimension_numbers<[1], [0], [0], [1], [0, 0, 1, 1], [], []>} : vector<8x32xbf16>, vector<32x128xbf16>, vector<8x128xf32> -> vector<8x128xf32>
    %88 = arith.addf %61, %87 : vector<8x128xf32>
    %89 = vector.extract_strided_slice %33 {offsets = [0, 64], sizes = [8, 32], strides = [1, 1]} : vector<8x384xf32> to vector<8x32xf32>
    %90 = arith.truncf %89 : vector<8x32xf32> to vector<8x32xbf16>
    %91 = vector.extract_strided_slice %33 {offsets = [0, 192], sizes = [8, 32], strides = [1, 1]} : vector<8x384xf32> to vector<8x32xf32>
    %92 = arith.truncf %91 : vector<8x32xf32> to vector<8x32xbf16>
    %93 = vector.extract_strided_slice %33 {offsets = [0, 320], sizes = [8, 32], strides = [1, 1]} : vector<8x384xf32> to vector<8x32xf32>
    %94 = arith.truncf %93 : vector<8x32xf32> to vector<8x32xbf16>
    %cst_32 = arith.constant dense<0.000000e+00> : vector<8x8xf32>
    %95 = tpu.matmul %90, %92, %cst_32 {dimension_numbers = #tpu.dot_dimension_numbers<[1], [1], [0], [0], [0, 0, 1, 0], [], []>} : vector<8x32xbf16>, vector<8x32xbf16>, vector<8x8xf32> -> vector<8x8xf32>
    %cst_33 = arith.constant 0.176776692 : f32
    %96 = vector.broadcast %cst_33 : f32 to vector<8x8xf32>
    %97 = arith.mulf %95, %96 : vector<8x8xf32>
    %98 = vector.broadcast %35 : vector<1x8xf32> to vector<8x8xf32>
    %99 = arith.addf %97, %98 : vector<8x8xf32>
    %cst_34 = arith.constant dense<0xFF800000> : vector<8xf32>
    %100 = vector.multi_reduction <maximumf>, %99, %cst_34 [1] : vector<8x8xf32> to vector<8xf32>
    %101 = vector.shape_cast %100 : vector<8xf32> to vector<8x1xf32>
    %102 = vector.broadcast %101 : vector<8x1xf32> to vector<8x8xf32>
    %103 = arith.subf %99, %102 : vector<8x8xf32>
    %104 = math.exp %103 : vector<8x8xf32>
    %cst_35 = arith.constant dense<0.000000e+00> : vector<8xf32>
    %105 = vector.multi_reduction <add>, %104, %cst_35 [1] : vector<8x8xf32> to vector<8xf32>
    %106 = vector.shape_cast %105 : vector<8xf32> to vector<8x1xf32>
    %107 = tpu.reciprocal %106 {approx = true} : vector<8x1xf32> -> vector<8x1xf32>
    %108 = vector.broadcast %107 : vector<8x1xf32> to vector<8x8xf32>
    %109 = arith.mulf %104, %108 : vector<8x8xf32>
    %110 = arith.truncf %109 : vector<8x8xf32> to vector<8x8xbf16>
    %cst_36 = arith.constant dense<0.000000e+00> : vector<8x32xf32>
    %111 = tpu.matmul %110, %94, %cst_36 {dimension_numbers = #tpu.dot_dimension_numbers<[1], [0], [0], [1], [0, 0, 1, 1], [], []>} : vector<8x8xbf16>, vector<8x32xbf16>, vector<8x32xf32> -> vector<8x32xf32>
    %112 = arith.truncf %111 : vector<8x32xf32> to vector<8x32xbf16>
    %c64 = arith.constant 64 : index
    %c0_37 = arith.constant 0 : index
    %113 = vector.load %arg7[%c64, %c0_37] : memref<128x128xbf16, #tpu.memory_space<vmem>>, vector<32x128xbf16>
    %cst_38 = arith.constant dense<0.000000e+00> : vector<8x128xf32>
    %114 = tpu.matmul %112, %113, %cst_38 {dimension_numbers = #tpu.dot_dimension_numbers<[1], [0], [0], [1], [0, 0, 1, 1], [], []>} : vector<8x32xbf16>, vector<32x128xbf16>, vector<8x128xf32> -> vector<8x128xf32>
    %115 = arith.addf %88, %114 : vector<8x128xf32>
    %116 = vector.extract_strided_slice %33 {offsets = [0, 96], sizes = [8, 32], strides = [1, 1]} : vector<8x384xf32> to vector<8x32xf32>
    %117 = arith.truncf %116 : vector<8x32xf32> to vector<8x32xbf16>
    %118 = vector.extract_strided_slice %33 {offsets = [0, 224], sizes = [8, 32], strides = [1, 1]} : vector<8x384xf32> to vector<8x32xf32>
    %119 = arith.truncf %118 : vector<8x32xf32> to vector<8x32xbf16>
    %120 = vector.extract_strided_slice %33 {offsets = [0, 352], sizes = [8, 32], strides = [1, 1]} : vector<8x384xf32> to vector<8x32xf32>
    %121 = arith.truncf %120 : vector<8x32xf32> to vector<8x32xbf16>
    %cst_39 = arith.constant dense<0.000000e+00> : vector<8x8xf32>
    %122 = tpu.matmul %117, %119, %cst_39 {dimension_numbers = #tpu.dot_dimension_numbers<[1], [1], [0], [0], [0, 0, 1, 0], [], []>} : vector<8x32xbf16>, vector<8x32xbf16>, vector<8x8xf32> -> vector<8x8xf32>
    %cst_40 = arith.constant 0.176776692 : f32
    %123 = vector.broadcast %cst_40 : f32 to vector<8x8xf32>
    %124 = arith.mulf %122, %123 : vector<8x8xf32>
    %125 = vector.broadcast %35 : vector<1x8xf32> to vector<8x8xf32>
    %126 = arith.addf %124, %125 : vector<8x8xf32>
    %cst_41 = arith.constant dense<0xFF800000> : vector<8xf32>
    %127 = vector.multi_reduction <maximumf>, %126, %cst_41 [1] : vector<8x8xf32> to vector<8xf32>
    %128 = vector.shape_cast %127 : vector<8xf32> to vector<8x1xf32>
    %129 = vector.broadcast %128 : vector<8x1xf32> to vector<8x8xf32>
    %130 = arith.subf %126, %129 : vector<8x8xf32>
    %131 = math.exp %130 : vector<8x8xf32>
    %cst_42 = arith.constant dense<0.000000e+00> : vector<8xf32>
    %132 = vector.multi_reduction <add>, %131, %cst_42 [1] : vector<8x8xf32> to vector<8xf32>
    %133 = vector.shape_cast %132 : vector<8xf32> to vector<8x1xf32>
    %134 = tpu.reciprocal %133 {approx = true} : vector<8x1xf32> -> vector<8x1xf32>
    %135 = vector.broadcast %134 : vector<8x1xf32> to vector<8x8xf32>
    %136 = arith.mulf %131, %135 : vector<8x8xf32>
    %137 = arith.truncf %136 : vector<8x8xf32> to vector<8x8xbf16>
    %cst_43 = arith.constant dense<0.000000e+00> : vector<8x32xf32>
    %138 = tpu.matmul %137, %121, %cst_43 {dimension_numbers = #tpu.dot_dimension_numbers<[1], [0], [0], [1], [0, 0, 1, 1], [], []>} : vector<8x8xbf16>, vector<8x32xbf16>, vector<8x32xf32> -> vector<8x32xf32>
    %139 = arith.truncf %138 : vector<8x32xf32> to vector<8x32xbf16>
    %c96 = arith.constant 96 : index
    %c0_44 = arith.constant 0 : index
    %140 = vector.load %arg7[%c96, %c0_44] : memref<128x128xbf16, #tpu.memory_space<vmem>>, vector<32x128xbf16>
    %cst_45 = arith.constant dense<0.000000e+00> : vector<8x128xf32>
    %141 = tpu.matmul %139, %140, %cst_45 {dimension_numbers = #tpu.dot_dimension_numbers<[1], [0], [0], [1], [0, 0, 1, 1], [], []>} : vector<8x32xbf16>, vector<32x128xbf16>, vector<8x128xf32> -> vector<8x128xf32>
    %142 = arith.addf %115, %141 : vector<8x128xf32>
    %c0_46 = arith.constant 0 : index
    %c0_47 = arith.constant 0 : index
    %143 = vector.load %arg8[%c0_46, %c0_47] : memref<1x128xf32, #tpu.memory_space<vmem>>, vector<1x128xf32>
    %144 = vector.broadcast %143 : vector<1x128xf32> to vector<8x128xf32>
    %145 = arith.addf %142, %144 : vector<8x128xf32>
    %146 = arith.addf %145, %27 : vector<8x128xf32>
    %c0_48 = arith.constant 0 : index
    %c0_49 = arith.constant 0 : index
    %147 = vector.load %arg9[%c0_48, %c0_49] : memref<1x128xf32, #tpu.memory_space<vmem>>, vector<1x128xf32>
    %c0_50 = arith.constant 0 : index
    %c0_51 = arith.constant 0 : index
    %148 = vector.load %arg10[%c0_50, %c0_51] : memref<1x128xf32, #tpu.memory_space<vmem>>, vector<1x128xf32>
    %cst_52 = arith.constant dense<0.000000e+00> : vector<8xf32>
    %149 = vector.multi_reduction <add>, %146, %cst_52 [1] : vector<8x128xf32> to vector<8xf32>
    %150 = vector.shape_cast %149 : vector<8xf32> to vector<8x1xf32>
    %cst_53 = arith.constant 1.280000e+02 : f32
    %151 = vector.broadcast %cst_53 : f32 to vector<8x1xf32>
    %152 = arith.divf %150, %151 : vector<8x1xf32>
    %153 = vector.broadcast %152 : vector<8x1xf32> to vector<8x128xf32>
    %154 = arith.subf %146, %153 : vector<8x128xf32>
    %155 = vector.broadcast %152 : vector<8x1xf32> to vector<8x128xf32>
    %156 = arith.subf %146, %155 : vector<8x128xf32>
    %157 = arith.mulf %154, %156 : vector<8x128xf32>
    %cst_54 = arith.constant dense<0.000000e+00> : vector<8xf32>
    %158 = vector.multi_reduction <add>, %157, %cst_54 [1] : vector<8x128xf32> to vector<8xf32>
    %159 = vector.shape_cast %158 : vector<8xf32> to vector<8x1xf32>
    %cst_55 = arith.constant 1.280000e+02 : f32
    %160 = vector.broadcast %cst_55 : f32 to vector<8x1xf32>
    %161 = arith.divf %159, %160 : vector<8x1xf32>
    %162 = vector.broadcast %152 : vector<8x1xf32> to vector<8x128xf32>
    %163 = arith.subf %146, %162 : vector<8x128xf32>
    %cst_56 = arith.constant 9.99999996E-13 : f32
    %164 = vector.broadcast %cst_56 : f32 to vector<8x1xf32>
    %165 = arith.addf %161, %164 : vector<8x1xf32>
    %166 = math.rsqrt %165 : vector<8x1xf32>
    %167 = vector.broadcast %166 : vector<8x1xf32> to vector<8x128xf32>
    %168 = arith.mulf %163, %167 : vector<8x128xf32>
    %169 = vector.broadcast %147 : vector<1x128xf32> to vector<8x128xf32>
    %170 = arith.mulf %168, %169 : vector<8x128xf32>
    %171 = vector.broadcast %148 : vector<1x128xf32> to vector<8x128xf32>
    %172 = arith.addf %170, %171 : vector<8x128xf32>
    %173 = arith.truncf %172 : vector<8x128xf32> to vector<8x128xbf16>
    %c0_57 = arith.constant 0 : index
    %c0_58 = arith.constant 0 : index
    %174 = vector.load %arg11[%c0_57, %c0_58] : memref<128x512xbf16, #tpu.memory_space<vmem>>, vector<128x512xbf16>
    %cst_59 = arith.constant dense<0.000000e+00> : vector<8x512xf32>
    %175 = tpu.matmul %173, %174, %cst_59 {dimension_numbers = #tpu.dot_dimension_numbers<[1], [0], [0], [1], [0, 0, 1, 1], [], []>} : vector<8x128xbf16>, vector<128x512xbf16>, vector<8x512xf32> -> vector<8x512xf32>
    %c0_60 = arith.constant 0 : index
    %c0_61 = arith.constant 0 : index
    %176 = vector.load %arg12[%c0_60, %c0_61] : memref<1x512xf32, #tpu.memory_space<vmem>>, vector<1x512xf32>
    %177 = vector.broadcast %176 : vector<1x512xf32> to vector<8x512xf32>
    %178 = arith.addf %175, %177 : vector<8x512xf32>
    %cst_62 = arith.constant 5.000000e-01 : f32
    %179 = vector.broadcast %cst_62 : f32 to vector<8x512xf32>
    %180 = arith.mulf %179, %178 : vector<8x512xf32>
    %cst_63 = arith.constant 4.471500e-02 : f32
    %181 = vector.broadcast %cst_63 : f32 to vector<8x512xf32>
    %182 = arith.mulf %181, %178 : vector<8x512xf32>
    %183 = arith.mulf %182, %178 : vector<8x512xf32>
    %184 = arith.mulf %183, %178 : vector<8x512xf32>
    %185 = arith.addf %178, %184 : vector<8x512xf32>
    %cst_64 = arith.constant 0.797884583 : f32
    %186 = vector.broadcast %cst_64 : f32 to vector<8x512xf32>
    %187 = arith.mulf %186, %185 : vector<8x512xf32>
    %188 = math.tanh %187 : vector<8x512xf32>
    %cst_65 = arith.constant 1.000000e+00 : f32
    %189 = vector.broadcast %cst_65 : f32 to vector<8x512xf32>
    %190 = arith.addf %189, %188 : vector<8x512xf32>
    %191 = arith.mulf %180, %190 : vector<8x512xf32>
    %192 = arith.truncf %191 : vector<8x512xf32> to vector<8x512xbf16>
    %c0_66 = arith.constant 0 : index
    %c0_67 = arith.constant 0 : index
    %193 = vector.load %arg13[%c0_66, %c0_67] : memref<512x128xbf16, #tpu.memory_space<vmem>>, vector<512x128xbf16>
    %cst_68 = arith.constant dense<0.000000e+00> : vector<8x128xf32>
    %194 = tpu.matmul %192, %193, %cst_68 {dimension_numbers = #tpu.dot_dimension_numbers<[1], [0], [0], [1], [0, 0, 1, 1], [], []>} : vector<8x512xbf16>, vector<512x128xbf16>, vector<8x128xf32> -> vector<8x128xf32>
    %c0_69 = arith.constant 0 : index
    %c0_70 = arith.constant 0 : index
    %195 = vector.load %arg14[%c0_69, %c0_70] : memref<1x128xf32, #tpu.memory_space<vmem>>, vector<1x128xf32>
    %196 = vector.broadcast %195 : vector<1x128xf32> to vector<8x128xf32>
    %197 = arith.addf %194, %196 : vector<8x128xf32>
    %198 = arith.addf %197, %172 : vector<8x128xf32>
    %c0_71 = arith.constant 0 : index
    %c0_72 = arith.constant 0 : index
    %199 = vector.load %arg15[%c0_71, %c0_72] : memref<1x128xf32, #tpu.memory_space<vmem>>, vector<1x128xf32>
    %c0_73 = arith.constant 0 : index
    %c0_74 = arith.constant 0 : index
    %200 = vector.load %arg16[%c0_73, %c0_74] : memref<1x128xf32, #tpu.memory_space<vmem>>, vector<1x128xf32>
    %cst_75 = arith.constant dense<0.000000e+00> : vector<8xf32>
    %201 = vector.multi_reduction <add>, %198, %cst_75 [1] : vector<8x128xf32> to vector<8xf32>
    %202 = vector.shape_cast %201 : vector<8xf32> to vector<8x1xf32>
    %cst_76 = arith.constant 1.280000e+02 : f32
    %203 = vector.broadcast %cst_76 : f32 to vector<8x1xf32>
    %204 = arith.divf %202, %203 : vector<8x1xf32>
    %205 = vector.broadcast %204 : vector<8x1xf32> to vector<8x128xf32>
    %206 = arith.subf %198, %205 : vector<8x128xf32>
    %207 = vector.broadcast %204 : vector<8x1xf32> to vector<8x128xf32>
    %208 = arith.subf %198, %207 : vector<8x128xf32>
    %209 = arith.mulf %206, %208 : vector<8x128xf32>
    %cst_77 = arith.constant dense<0.000000e+00> : vector<8xf32>
    %210 = vector.multi_reduction <add>, %209, %cst_77 [1] : vector<8x128xf32> to vector<8xf32>
    %211 = vector.shape_cast %210 : vector<8xf32> to vector<8x1xf32>
    %cst_78 = arith.constant 1.280000e+02 : f32
    %212 = vector.broadcast %cst_78 : f32 to vector<8x1xf32>
    %213 = arith.divf %211, %212 : vector<8x1xf32>
    %214 = vector.broadcast %204 : vector<8x1xf32> to vector<8x128xf32>
    %215 = arith.subf %198, %214 : vector<8x128xf32>
    %cst_79 = arith.constant 9.99999996E-13 : f32
    %216 = vector.broadcast %cst_79 : f32 to vector<8x1xf32>
    %217 = arith.addf %213, %216 : vector<8x1xf32>
    %218 = math.rsqrt %217 : vector<8x1xf32>
    %219 = vector.broadcast %218 : vector<8x1xf32> to vector<8x128xf32>
    %220 = arith.mulf %215, %219 : vector<8x128xf32>
    %221 = vector.broadcast %199 : vector<1x128xf32> to vector<8x128xf32>
    %222 = arith.mulf %220, %221 : vector<8x128xf32>
    %223 = vector.broadcast %200 : vector<1x128xf32> to vector<8x128xf32>
    %224 = arith.addf %222, %223 : vector<8x128xf32>
    %225 = arith.truncf %224 : vector<8x128xf32> to vector<8x128xbf16>
    %c0_80 = arith.constant 0 : index
    %c0_81 = arith.constant 0 : index
    %226 = vector.load %arg17[%c0_80, %c0_81] : memref<8x128xbf16, #tpu.memory_space<vmem>>, vector<8x128xbf16>
    tpu.vector_store %arg17[%c0_80, %c0_81], %225 {strides = array<i32>} : memref<8x128xbf16, #tpu.memory_space<vmem>>, vector<8x128xbf16>,
    return
  }
  func.func @transform_0(%arg0: i32) -> (i32, i32, i32) {
    %c0_i32 = arith.constant 0 : i32
    %c0_i32_0 = arith.constant 0 : i32
    %c0_i32_1 = arith.constant 0 : i32
    return %arg0, %c0_i32, %c0_i32_0 : i32, i32, i32
  }
  func.func @transform_1(%arg0: i32) -> (i32, i32) {
    %c0_i32 = arith.constant 0 : i32
    %c0_i32_0 = arith.constant 0 : i32
    return %arg0, %c0_i32 : i32, i32
  }
  func.func @transform_2(%arg0: i32) -> (i32, i32) {
    %c0_i32 = arith.constant 0 : i32
    %c0_i32_0 = arith.constant 0 : i32
    %c0_i32_1 = arith.constant 0 : i32
    return %c0_i32, %c0_i32_0 : i32, i32
  }
  func.func @transform_3(%arg0: i32) -> (i32, i32) {
    %c0_i32 = arith.constant 0 : i32
    %c0_i32_0 = arith.constant 0 : i32
    %c0_i32_1 = arith.constant 0 : i32
    return %c0_i32, %c0_i32_0 : i32, i32
  }
  func.func @transform_4(%arg0: i32) -> (i32, i32) {
    %c0_i32 = arith.constant 0 : i32
    %c0_i32_0 = arith.constant 0 : i32
    %c0_i32_1 = arith.constant 0 : i32
    return %c0_i32, %c0_i32_0 : i32, i32
  }
  func.func @transform_5(%arg0: i32) -> (i32, i32) {
    %c0_i32 = arith.constant 0 : i32
    %c0_i32_0 = arith.constant 0 : i32
    %c0_i32_1 = arith.constant 0 : i32
    return %c0_i32, %c0_i32_0 : i32, i32
  }
  func.func @transform_6(%arg0: i32) -> (i32, i32) {
    %c0_i32 = arith.constant 0 : i32
    %c0_i32_0 = arith.constant 0 : i32
    %c0_i32_1 = arith.constant 0 : i32
    return %c0_i32, %c0_i32_0 : i32, i32
  }
  func.func @transform_7(%arg0: i32) -> (i32, i32) {
    %c0_i32 = arith.constant 0 : i32
    %c0_i32_0 = arith.constant 0 : i32
    %c0_i32_1 = arith.constant 0 : i32
    return %c0_i32, %c0_i32_0 : i32, i32
  }
  func.func @transform_8(%arg0: i32) -> (i32, i32) {
    %c0_i32 = arith.constant 0 : i32
    %c0_i32_0 = arith.constant 0 : i32
    %c0_i32_1 = arith.constant 0 : i32
    return %c0_i32, %c0_i32_0 : i32, i32
  }
  func.func @transform_9(%arg0: i32) -> (i32, i32) {
    %c0_i32 = arith.constant 0 : i32
    %c0_i32_0 = arith.constant 0 : i32
    %c0_i32_1 = arith.constant 0 : i32
    return %c0_i32, %c0_i32_0 : i32, i32
  }
  func.func @transform_10(%arg0: i32) -> (i32, i32) {
    %c0_i32 = arith.constant 0 : i32
    %c0_i32_0 = arith.constant 0 : i32
    %c0_i32_1 = arith.constant 0 : i32
    return %c0_i32, %c0_i32_0 : i32, i32
  }
  func.func @transform_11(%arg0: i32) -> (i32, i32) {
    %c0_i32 = arith.constant 0 : i32
    %c0_i32_0 = arith.constant 0 : i32
    %c0_i32_1 = arith.constant 0 : i32
    return %c0_i32, %c0_i32_0 : i32, i32
  }
  func.func @transform_12(%arg0: i32) -> (i32, i32) {
    %c0_i32 = arith.constant 0 : i32
    %c0_i32_0 = arith.constant 0 : i32
    %c0_i32_1 = arith.constant 0 : i32
    return %c0_i32, %c0_i32_0 : i32, i32
  }
  func.func @transform_13(%arg0: i32) -> (i32, i32) {
    %c0_i32 = arith.constant 0 : i32
    %c0_i32_0 = arith.constant 0 : i32
    %c0_i32_1 = arith.constant 0 : i32
    return %c0_i32, %c0_i32_0 : i32, i32
  }
  func.func @transform_14(%arg0: i32) -> (i32, i32) {
    %c0_i32 = arith.constant 0 : i32
    %c0_i32_0 = arith.constant 0 : i32
    %c0_i32_1 = arith.constant 0 : i32
    return %c0_i32, %c0_i32_0 : i32, i32
  }
  func.func @transform_15(%arg0: i32) -> (i32, i32) {
    %c0_i32 = arith.constant 0 : i32
    %c0_i32_0 = arith.constant 0 : i32
    %c0_i32_1 = arith.constant 0 : i32
    return %c0_i32, %c0_i32_0 : i32, i32
  }
  func.func @transform_16(%arg0: i32) -> (i32, i32) {
    %c0_i32 = arith.constant 0 : i32
    %c0_i32_0 = arith.constant 0 : i32
    return %arg0, %c0_i32 : i32, i32
  }
}

</mosaic_0001>

<bundles_post_ra>
// kernel: forward.2
= control target key start
LH: loop header
LB: loop body
LE: loop exit
PB: predicated region body
PF: predicated region fallthrough
CT: control target
= control target key end

     0   :  { %s4039_s0 = inlined_call_operand.vmem [shape: f32[2,1,8], index: 0, kind: input, shape index: {}]   ;;  %s4040_s1 = inlined_call_operand.vmem [shape: bf16[16,128], index: 1, kind: input, shape index: {}]   ;;  %s4041_s2 = inlined_call_operand.vmem [shape: f32[1,128], index: 2, kind: input, shape index: {}]   ;;  %s4042_s3 = inlined_call_operand.vmem [shape: f32[1,128], index: 3, kind: input, shape index: {}]   ;;  %s4043_s4 = inlined_call_operand.vmem [shape: bf16[128,384], index: 4, kind: input, shape index: {}]   ;;  %s4044_s5 = inlined_call_operand.hbm [shape: f32[1,384], index: 5, kind: input, shape index: {}]   ;;  %s4045_s6 = inlined_call_operand.hbm [shape: bf16[128,128], index: 6, kind: input, shape index: {}]   ;;  %s4046_s7 = inlined_call_operand.hbm [shape: f32[1,128], index: 7, kind: input, shape index: {}]   ;;  %s4047_s8 = inlined_call_operand.hbm [shape: f32[1,128], index: 8, kind: input, shape index: {}]   ;;  %s4048_s9 = inlined_call_operand.hbm [shape: f32[1,128], index: 9, kind: input, shape index: {}]   ;;  %s4049_s10 = inlined_call_operand.vmem [shape: bf16[128,512], index: 10, kind: input, shape index: {}]   ;;  %s4050_s11 = inlined_call_operand.hbm [shape: f32[1,512], index: 11, kind: input, shape index: {}]   ;;  %s4051_s12 = inlined_call_operand.hbm [shape: bf16[512,128], index: 12, kind: input, shape index: {}]   ;;  %s4052_s13 = inlined_call_operand.hbm [shape: f32[1,128], index: 13, kind: input, shape index: {}]   ;;  %s4053_s14 = inlined_call_operand.hbm [shape: f32[1,128], index: 14, kind: input, shape index: {}]   ;;  %s4054_s15 = inlined_call_operand.hbm [shape: f32[1,128], index: 15, kind: input, shape index: {}]   ;;  %s4055_s16 = inlined_call_operand.vmem [shape: bf16[16,128], index: 16, kind: output, shape index: {}]  }
   0x1   :  { %4059 = sst [smem:[#allocation25_spill]] %s4039_s0 }
   0x2   :  { %4060 = sst [smem:[#allocation26_spill]] %s4055_s16 }
   0x3   :  { %21 = vsyncpa [#allocation3], 0 }
   0x4   :  { %22 = vsyncpa [#allocation5], 0 }
   0x5   :  { %23 = vsyncpa [#allocation8], 0 }
   0x6   :  { %24 = vsyncpa [#allocation11], 0 }
   0x7   :  { %25 = vsyncpa [#allocation14], 0 }
   0x8   :  { %26 = vsyncpa [#allocation17], 0  ;;  %s3546_s21 = smov 0  }
   0x9 LB: > { %4061 = sst [smem:[#allocation24_spill]] %s3441_s21  ;;  %s3443_s22 = smov [#allocation4]   ;;  %s3441_s21 = sphi %s3546_s21, %s32_s21  }
   0xa   : > { %s441_s23 = sshll.u32 %s3443_s22, 4  ;;  %s3552_s24 = sadd.s32 4294967295, %s3441_s21   ;;  %s442_s23 = int_to_ptr.vmem [resolvable:$true] %s441_s23 }
   0xb   : > { %p2559_p0 = scmp.ge.s32.totalorder %s3441_s21, 1  ;;  %p409_p1 = scmp.lt.s32.totalorder %s3441_s21, 3 }
   0xc   : > { %p4057_p2 = scmp.eq.s32.totalorder %s3552_s24, 0  ;;  %s3444_s26 = smov [#allocation7]  }
   0xd   : > { %p3557_p3 = pnand %p2559_p0, %p409_p1  ;;  %s466_s27 = sshll.u32 %s3444_s26, 4  ;;  %s3563_s27 = int_to_ptr.vmem [resolvable:$true] %s466_s27 }
   0xe   : > { %s3445_s29 = smov [#allocation10]   ;;  %s3446_s0 = smov [#allocation13]  }
   0xf   : > { %s4062_s25 = scalar_select %p3557_p3, 1, 0 }
  0x10   : > { %p2924_p4 = pneg %p3557_p3  ;;  %s491_s30 = sshll.u32 %s3445_s29, 4  ;;  %s3571_s30 = int_to_ptr.vmem [resolvable:$true] %s491_s30 }
  0x11   : > { %s3573_s17 = sshll.u32 %s3446_s0, 4  ;;  %s3162_s19 = scalar_lea.vmem %s442_s23, 1024  ;;  %s516_s17 = int_to_ptr.vmem [resolvable:$true] %s3573_s17 }
  0x12   : > { %p3567_p5 = pnand %p4057_p2, %p2924_p4  ;;  %p3163_p7 = scmp.ne.s32.totalorder %s442_s23, %s3162_s19 }
  0x13   : > { %p3170_p10 = scmp.lt.s32.totalorder %s442_s23, %s442_s23  ;;  %p3171_p11 = scmp.lt.s32.totalorder %s3162_s19, %s3162_s19 }
  0x14   : > { %p3577_p6 = pneg %p3567_p5 }
  0x15   : > { %p3172_p12 = por %p3171_p11, %p3170_p10 }
  0x16   : > { %p3165_p8 = pnand %p3163_p7, %p3577_p6 }
  0x18   : > { %p3166_p9 = pneg %p3165_p8 }
  0x1a   : > { %p3173_p13 = pnand %p3172_p12, %p3166_p9 }
  0x1c   : > { %3176 = shalt.err (!%p3173_p13)
}
  0x1d   : > { %s3447_s20 = smov 64   ;;  %s3448_s22 = smov 4  }
  0x1e   : > { %2930 = dma.hbm_to_vmem [thread:$0]  (!%p3567_p5), %s4045_s6, 1024, %s442_s23, [#allocation5], %s3447_s20, %s3447_s20, %s3448_s22  }
  0x1f   : > { %s3188_s0 = scalar_lea.vmem %s3563_s27, 16  ;;  %s3195_s19 = scalar_lea.vmem %s3563_s27, 32 }
  0x20   : > { %p3189_p0 = scmp.ne.s32.totalorder %s3563_s27, %s3188_s0  ;;  %p3196_p7 = scmp.lt.s32.totalorder %s3563_s27, %s3563_s27 }
  0x21   : > { %p3197_p8 = scmp.lt.s32.totalorder %s3195_s19, %s3188_s0 }
  0x22   : > { %p3191_p1 = pnand %p3189_p0, %p3577_p6 }
  0x23   : > { %p3198_p9 = por %p3197_p8, %p3196_p7 }
  0x24   : > { %p3192_p4 = pneg %p3191_p1 }
  0x26   : > { %p3199_p10 = pnand %p3198_p9, %p3192_p4 }
  0x28   : > { %3202 = shalt.err (!%p3199_p10)
}
  0x29   : > { %2936 = dma.hbm_to_vmem [thread:$0]  (!%p3567_p5), %s4047_s8, 16, %s3563_s27, [#allocation8]  }
  0x2a   : > { %s3214_s23 = scalar_lea.vmem %s3571_s30, 64  ;;  %p3222_p0 = scmp.lt.s32.totalorder %s3571_s30, %s3571_s30 }
  0x2b   : > { %p3215_p11 = scmp.ne.s32.totalorder %s3571_s30, %s3214_s23  ;;  %p3223_p1 = scmp.lt.s32.totalorder %s3214_s23, %s3214_s23 }
  0x2d   : > { %p3217_p12 = pnand %p3215_p11, %p3577_p6  ;;  %p3224_p4 = por %p3223_p1, %p3222_p0 }
  0x2f   : > { %p3218_p13 = pneg %p3217_p12 }
  0x31   : > { %p3225_p7 = pnand %p3224_p4, %p3218_p13 }
  0x33   : > { %3228 = shalt.err (!%p3225_p7)
}
  0x34   : > { %2942 = dma.hbm_to_vmem [thread:$0]  (!%p3567_p5), %s4050_s11, 64, %s3571_s30, [#allocation11]  }
  0x35   : > { %s3240_s27 = scalar_lea.vmem %s516_s17, 16  ;;  %s3247_s26 = scalar_lea.vmem %s516_s17, 32 }
  0x36   : > { %p3241_p8 = scmp.ne.s32.totalorder %s516_s17, %s3240_s27  ;;  %p3248_p11 = scmp.lt.s32.totalorder %s516_s17, %s516_s17 }
  0x37   : > { %p3249_p12 = scmp.lt.s32.totalorder %s3247_s26, %s3240_s27 }
  0x38   : > { %p3243_p9 = pnand %p3241_p8, %p3577_p6 }
  0x39   : > { %p3250_p13 = por %p3249_p12, %p3248_p11 }
  0x3a   : > { %p3244_p10 = pneg %p3243_p9 }
  0x3c   : > { %p3251_p0 = pnand %p3250_p13, %p3244_p10 }
  0x3e   : > { %3254 = shalt.err (!%p3251_p0)
}
  0x3f   : > { %2948 = dma.hbm_to_vmem [thread:$0]  (!%p3567_p5), %s4052_s13, 16, %s516_s17, [#allocation14]  }
  0x40   : > { %s3449_s30 = smov [#allocation2]   ;;  %s3450_s23 = smov [#allocation6]  }
  0x41   : > { %s431_s19 = sshll.u32 %s3449_s30, 4  ;;  %s455_s16 = sshll.u32 %s3450_s23, 4  ;;  %s432_s19 = int_to_ptr.vmem [resolvable:$true] %s431_s19  ;;  %s456_s16 = int_to_ptr.vmem [resolvable:$true] %s455_s16 }
  0x42   : > { %s3266_s21 = scalar_lea.vmem %s432_s19, 48  ;;  %s3273_s27 = scalar_lea.vmem %s432_s19, 64 }
  0x43   : > { %p3267_p1 = scmp.ne.s32.totalorder %s432_s19, %s3266_s21  ;;  %p3274_p8 = scmp.lt.s32.totalorder %s432_s19, %s432_s19 }
  0x44   : > { %p3275_p9 = scmp.lt.s32.totalorder %s3273_s27, %s3266_s21 }
  0x45   : > { %p3269_p4 = pnand %p3267_p1, %p3577_p6 }
  0x46   : > { %p3276_p10 = por %p3275_p9, %p3274_p8 }
  0x47   : > { %p3270_p7 = pneg %p3269_p4 }
  0x49   : > { %p3277_p11 = pnand %p3276_p10, %p3270_p7 }
  0x4b   : > { %3280 = shalt.err (!%p3277_p11)
}
  0x4c   : > { %2927 = dma.hbm_to_vmem [thread:$0]  (!%p3567_p5), %s4044_s5, 48, %s432_s19, [#allocation3]  }
  0x4d   : > { %s3292_s29 = scalar_lea.vmem %s456_s16, 16  ;;  %s3299_s0 = scalar_lea.vmem %s456_s16, 32 }
  0x4e   : > { %p3293_p12 = scmp.ne.s32.totalorder %s456_s16, %s3292_s29  ;;  %p3300_p1 = scmp.lt.s32.totalorder %s456_s16, %s456_s16 }
  0x4f   : > { %p3301_p4 = scmp.lt.s32.totalorder %s3299_s0, %s3292_s29 }
  0x50   : > { %p3295_p13 = pnand %p3293_p12, %p3577_p6 }
  0x51   : > { %p3302_p2 = por %p3301_p4, %p3300_p1 }
  0x52   : > { %p3296_p0 = pneg %p3295_p13 }
  0x54   : > { %p3303_p8 = pnand %p3302_p2, %p3296_p0 }
  0x56   : > { %3306 = shalt.err (!%p3303_p8)
}
  0x57   : > { %2933 = dma.hbm_to_vmem [thread:$0]  (!%p3567_p5), %s4046_s7, 16, %s456_s16, [#allocation5]  }
  0x58   : > { %s3451_s19 = smov [#allocation9]   ;;  %s3452_s27 = smov [#allocation12]  }
  0x59   : > { %s477_s21 = sshll.u32 %s3451_s19, 4  ;;  %s501_s26 = sshll.u32 %s3452_s27, 4  ;;  %s478_s21 = int_to_ptr.vmem [resolvable:$true] %s477_s21  ;;  %s502_s26 = int_to_ptr.vmem [resolvable:$true] %s501_s26 }
  0x5a   : > { %s3318_s17 = scalar_lea.vmem %s478_s21, 16  ;;  %s3325_s29 = scalar_lea.vmem %s478_s21, 32 }
  0x5b   : > { %p3319_p7 = scmp.ne.s32.totalorder %s478_s21, %s3318_s17  ;;  %p3326_p2 = scmp.lt.s32.totalorder %s478_s21, %s478_s21 }
  0x5c   : > { %p3327_p11 = scmp.lt.s32.totalorder %s3325_s29, %s3318_s17 }
  0x5d   : > { %p3321_p9 = pnand %p3319_p7, %p3577_p6 }
  0x5e   : > { %p3328_p12 = por %p3327_p11, %p3326_p2 }
  0x5f   : > { %p3322_p10 = pneg %p3321_p9 }
  0x61   : > { %p3329_p13 = pnand %p3328_p12, %p3322_p10 }
  0x63   : > { %3332 = shalt.err (!%p3329_p13)
}
  0x64   : > { %2939 = dma.hbm_to_vmem [thread:$0]  (!%p3567_p5), %s4048_s9, 16, %s478_s21, [#allocation8]  }
  0x65   : > { %s3344_s30 = scalar_lea.vmem %s502_s26, 4096  ;;  %p3352_p8 = scmp.lt.s32.totalorder %s502_s26, %s502_s26 }
  0x66   : > { %p3345_p0 = scmp.ne.s32.totalorder %s502_s26, %s3344_s30  ;;  %p3353_p7 = scmp.lt.s32.totalorder %s3344_s30, %s3344_s30 }
  0x68   : > { %p3347_p1 = pnand %p3345_p0, %p3577_p6  ;;  %p3354_p9 = por %p3353_p7, %p3352_p8 }
  0x6a   : > { %p3348_p4 = pneg %p3347_p1 }
  0x6c   : > { %p3355_p3 = pnand %p3354_p9, %p3348_p4 }
  0x6e   : > { %3358 = shalt.err (!%p3355_p3)
}
  0x6f   : > { %2945 = dma.hbm_to_vmem [thread:$0]  (!%p3567_p5), %s4051_s12, 4096, %s502_s26, [#allocation11], %s3447_s20, %s3447_s20, %s3448_s22  }
  0x70   : > { %s3453_s21 = smov [#allocation15]   ;;  %s3454_s17 = smov [#allocation16]  }
  0x71   : > { %s526_s27 = sshll.u32 %s3453_s21, 4  ;;  %s537_s29 = sshll.u32 %s3454_s17, 4  ;;  %s527_s27 = int_to_ptr.vmem [resolvable:$true] %s526_s27  ;;  %s538_s29 = int_to_ptr.vmem [resolvable:$true] %s537_s29 }
  0x72   : > { %s3370_s0 = scalar_lea.vmem %s527_s27, 16  ;;  %s3377_s16 = scalar_lea.vmem %s527_s27, 32 }
  0x73   : > { %p3371_p10 = scmp.ne.s32.totalorder %s527_s27, %s3370_s0  ;;  %p3378_p11 = scmp.lt.s32.totalorder %s527_s27, %s527_s27 }
  0x74   : > { %p3379_p12 = scmp.lt.s32.totalorder %s3377_s16, %s3370_s0 }
  0x75   : > { %p3373_p2 = pnand %p3371_p10, %p3577_p6 }
  0x76   : > { %p3380_p13 = por %p3379_p12, %p3378_p11 }
  0x77   : > { %p3374_p3 = pneg %p3373_p2 }
  0x79   : > { %p3381_p0 = pnand %p3380_p13, %p3374_p3 }
  0x7b   : > { %3384 = shalt.err (!%p3381_p0)
}
  0x7c   : > { %2951 = dma.hbm_to_vmem [thread:$0]  (!%p3567_p5), %s4053_s14, 16, %s527_s27, [#allocation14]  }
  0x7d   : > { %s3396_s22 = scalar_lea.vmem %s538_s29, 16  ;;  %s3403_s26 = scalar_lea.vmem %s538_s29, 32 }
  0x7e   : > { %p3397_p1 = scmp.ne.s32.totalorder %s538_s29, %s3396_s22  ;;  %p3404_p7 = scmp.lt.s32.totalorder %s538_s29, %s538_s29 }
  0x7f   : > { %p3405_p9 = scmp.lt.s32.totalorder %s3403_s26, %s3396_s22 }
  0x80   : > { %p3399_p4 = pnand %p3397_p1, %p3577_p6 }
  0x81   : > { %p3406_p10 = por %p3405_p9, %p3404_p7 }
  0x82   : > { %p3400_p8 = pneg %p3399_p4 }
  0x84   : > { %p3407_p2 = pnand %p3406_p10, %p3400_p8 }
  0x86   : > { %3410 = shalt.err (!%p3407_p2)
}
  0x87   : > { %2954 = dma.hbm_to_vmem [thread:$0]  (!%p3567_p5), %s4054_s15, 16, %s538_s29, [#allocation17]  }
  0x88   : > { %p4065_p3 = scmp.ne.s32.totalorder %s4062_s25, 0 }
  0x89   : > { %p4066_p11 = scmp.eq.s32.totalorder (!%p4065_p3), %s3552_s24, 0 }
  0x8a   : > { %563 = sbr.rel (%p4065_p3) target bundleno = 3984 (0xf90), region = 84 }
  0x8f   : > { %3416 = dma.done.wait (%p4066_p11), [#allocation3], 48   ;;  %p4067_p6 = pmov %p4066_p11 }
  0x91   : > { %3418 = vsyncadd (%p4067_p6), [#allocation3], 4294967248  ;;  %p4068_p12 = pmov %p4067_p6 }
  0x92   : > { %p4069_p13 = pmov %p4067_p6 }
  0x93   : > { %3420 = dma.done.wait (%p4068_p12), [#allocation5], 1040  }
  0x94   : > { %3422 = vsyncadd (%p4069_p13), [#allocation5], 4294966256  ;;  %p4070_p0 = pmov %p4067_p6 }
  0x96   : > { %3424 = dma.done.wait (%p4070_p0), [#allocation8], 32   ;;  %p4071_p5 = pmov %p4070_p0 }
  0x97   : > { %p4072_p1 = pmov %p4070_p0 }
  0x98   : > { %3426 = vsyncadd (%p4071_p5), [#allocation8], 4294967264 }
  0x99   : > { %3428 = dma.done.wait (%p4072_p1), [#allocation11], 4160   ;;  %p4073_p4 = pmov %p4070_p0 }
  0x9a   : > { %p4074_p8 = pmov %p4070_p0 }
  0x9b   : > { %3430 = vsyncadd (%p4073_p4), [#allocation11], 4294963136 }
  0x9c   : > { %3432 = dma.done.wait (%p4074_p8), [#allocation14], 32   ;;  %p4075_p7 = pmov %p4070_p0 }
  0x9d   : > { %p4076_p9 = pmov %p4070_p0 }
  0x9e   : > { %3434 = vsyncadd (%p4075_p7), [#allocation14], 4294967264 }
  0x9f   : > { %3436 = dma.done.wait (%p4076_p9), [#allocation17], 16   ;;  %p4077_p10 = pmov %p4070_p0 }
  0xa0   : > { %p650_p2 = scmp.lt.s32.totalorder %s3552_s24, 1  ;;  %v3001_v2 = vld [vmem:[%s4043_s4 + $0xac] ss:$12 sps:$4 sm:$0xff]   ;;  %v3003_v3 = vld [vmem:[%s4043_s4 + $0xa8] ss:$12 sps:$4 sm:$0xff]   ;;  %v3455_v4 = vmov 0.0   ;;  %v727_v42 = vlaneseq }
  0xa1   : > { %3438 = vsyncadd (%p4077_p10), [#allocation17], 4294967280  ;;  %2784 = vmatprep.subr.bf16.mxu1 %v3455_v4  ;;  %v3004_v5 = vld [vmem:[%s4043_s4 + $0xb0] ss:$12 sps:$4 sm:$0xff]   ;;  %v3005_v6 = vld [vmem:[%s4043_s4 + $0x94] ss:$12 sps:$4 sm:$0xff]   ;;  %870 = vmatprep.subr.bf16.mxu0 %v3001_v2 }
  0xa2   : > { %s4082_s24 = smov (!%p650_p2, %s3552_s24), 1  ;;  %v3007_v7 = vld [vmem:[%s4043_s4 + $0x90] ss:$12 sps:$4 sm:$0xff]   ;;  %v3008_v8 = vld [vmem:[%s4043_s4 + $0x98] ss:$12 sps:$4 sm:$0xff]   ;;  %871 = vmatpush1.bf16.msra.mxu0 %v3003_v3  ;;  %2785 = vmatpush3.bf16.msra.mxu1 %v3004_v5  ;;  %v3456_v23 = vmov 0  }
  0xa3   : > { %s2582_s25 = sshll.u32 %s4082_s24, 2  ;;  %872 = vmatprep.subr.bf16.mxu0 %v3005_v6  ;;  %2786 = vmatprep.subr.bf16.mxu1 %v3455_v4  ;;  %v3009_v13 = vld [vmem:[%s4043_s4 + $0x7c] ss:$12 sps:$4 sm:$0xff]   ;;  %v3011_v14 = vld [vmem:[%s4043_s4 + $0x78] ss:$12 sps:$4 sm:$0xff]   ;;  %vm3457_vm0 = vmmov 0  }
  0xa4   : > { %s656_s21 = scalar_lea.vmem %s4040_s1, %s2582_s25  ;;  %v3012_v15 = vld [vmem:[%s4043_s4 + $0x80] ss:$12 sps:$4 sm:$0xff]   ;;  %v3013_v16 = vld [vmem:[%s4043_s4 + $0x64] ss:$12 sps:$4 sm:$0xff]   ;;  %v3016_v18 = vld [vmem:[%s4043_s4 + $0x68] ss:$12 sps:$4 sm:$0xff]   ;;  %902 = vmatprep.mubr.bf16.mxu0 %v3456_v23  ;;  %2800 = vmatprep.mubr.msk.bf16.mxu1 %vm3457_vm0, %v3455_v4 }
  0xa5   : > { %v662_v0 = vld [vmem:[%s656_s21] sm:$0xf]  ;;  %v3017_v19 = vld [vmem:[%s4043_s4 + $0x4c] ss:$12 sps:$4 sm:$0xff]   ;;  %v3019_v20 = vld [vmem:[%s4043_s4 + $0x48] ss:$12 sps:$4 sm:$0xff]  }
  0xa6   : > { %v663_v1 = vunpack.c.l.bf16 %v662_v0  ;;  %873 = vmatpush1.bf16.msra.mxu0 %v3007_v7  ;;  %2787 = vmatpush3.bf16.msra.mxu1 %v3008_v8  ;;  %v3015_v17 = vld [vmem:[%s4043_s4 + $0x60] ss:$12 sps:$4 sm:$0xff]   ;;  %v3020_v21 = vld [vmem:[%s4043_s4 + $0x50] ss:$12 sps:$4 sm:$0xff]   ;;  %v3024_v25 = vld [vmem:[%s4043_s4 + $0x38] ss:$12 sps:$4 sm:$0xff]  }
  0xa7   : > { %2788 = vmatprep.subr.bf16.mxu1 %v3455_v4  ;;  %874 = vmatprep.subr.bf16.mxu0 %v3009_v13  ;;  %v3021_v22 = vld [vmem:[%s4043_s4 + $0x34] ss:$12 sps:$4 sm:$0xff]   ;;  %v3023_v24 = vld [vmem:[%s4043_s4 + $0x30] ss:$12 sps:$4 sm:$0xff]   ;;  %v3027_v27 = vld [vmem:[%s4043_s4 + $0x18] ss:$12 sps:$4 sm:$0xff]  }
  0xa8   : > { %666 = vadd.xlane.f32.xlu0 %v663_v1  ;;  %v3025_v26 = vld [vmem:[%s4043_s4 + $0x1c] ss:$12 sps:$4 sm:$0xff]   ;;  %v3028_v28 = vld [vmem:[%s4043_s4 + $0x20] ss:$12 sps:$4 sm:$0xff]   ;;  %v3029_v29 = vld [vmem:[%s4043_s4 + $0x4] ss:$12 sps:$4 sm:$0xff]  }
  0xa9   : > { %v3031_v30 = vld [vmem:[%s4043_s4] ss:$12 sps:$4 sm:$0xff]   ;;  %v3032_v31 = vld [vmem:[%s4043_s4 + $0x8] ss:$12 sps:$4 sm:$0xff]   ;;  %v3804_v43 = vshrl.u32 %v727_v42, 7  ;;  %vm1026_vm1 = vcmask 1043456  }
  0xaa   : > { %875 = vmatpush1.bf16.msra.mxu0 %v3011_v14  ;;  %2789 = vmatpush3.bf16.msra.mxu1 %v3012_v15  ;;  %v2584_v36 = vld [vmem:[%s4041_s2] ss:$0 sm:$0xff]  ;;  %vm955_vm2 = vcmask 261120   ;;  %s3458_s19 = smov 96   ;;  %s4078_s21 = sld [smem:[#allocation25_spill]]  ;;  %vm1010_vm3 = vcmask 64512  }
  0xab   : > { %2790 = vmatprep.subr.bf16.mxu1 %v3455_v4  ;;  %876 = vmatprep.subr.bf16.mxu0 %v3013_v16  ;;  %v2585_v38 = vld [vmem:[%s4042_s3] ss:$0 sm:$0xff]  ;;  %v737_v44 = vsub.s32 2, %v3804_v43  ;;  %v733_v46 = vsub.s32 1, %v3804_v43  ;;  %v729_v47 = vsub.s32 0, %v3804_v43  ;;  %s3459_s17 = smov 64  }
  0xac   : > { %v725_v45 = vld [vmem:[#allocation2] sm:$0x7]  ;;  %s3460_s29 = smov 32  }
  0xad   : > { %v738_v48 = vrot.slane %v725_v45, %v737_v44  ;;  %v734_v49 = vrot.slane %v725_v45, %v733_v46  ;;  %v730_v52 = vrot.slane %v725_v45, %v729_v47 }
  0xae   : > { %877 = vmatpush1.bf16.msra.mxu0 %v3015_v17  ;;  %2791 = vmatpush3.bf16.msra.mxu1 %v3016_v18 }
  0xaf   : > { %878 = vmatprep.subr.bf16.mxu0 %v3017_v19  ;;  %2792 = vmatprep.subr.bf16.mxu1 %v3455_v4 }
  0xb0   : > { %s652_s27 = scalar_lea.vmem %s4078_s21, %s4082_s24  ;;  %s4079_s21 = sld [smem:[#allocation26_spill]] }
  0xb1   : > { %v3844_v8 = vld [vmem:[%s652_s27] ss:$0 sm:$0xff] }
  0xb2   : > { %879 = vmatpush1.bf16.msra.mxu0 %v3019_v20  ;;  %2793 = vmatpush3.bf16.msra.mxu1 %v3020_v21 }
  0xb3   : > { %880 = vmatprep.subr.bf16.mxu0 %v3021_v22  ;;  %2794 = vmatprep.subr.bf16.mxu1 %v3455_v4 }
  0xb6   : > { %881 = vmatpush1.bf16.msra.mxu0 %v3023_v24  ;;  %2795 = vmatpush3.bf16.msra.mxu1 %v3024_v25  ;;  %s660_s27 = scalar_lea.vmem %s4079_s21, %s2582_s25 }
  0xb7   : > { %882 = vmatprep.subr.bf16.mxu0 %v3025_v26  ;;  %2796 = vmatprep.subr.bf16.mxu1 %v3455_v4 }
  0xba   : > { %883 = vmatpush1.bf16.msra.mxu0 %v3027_v27  ;;  %2797 = vmatpush3.bf16.msra.mxu1 %v3028_v28 }
  0xbb   : > { %884 = vmatprep.subr.bf16.mxu0 %v3029_v29  ;;  %2798 = vmatprep.subr.bf16.mxu1 %v3455_v4 }
  0xbe   : > { %885 = vmatpush1.bf16.msra.mxu0 %v3031_v30  ;;  %2799 = vmatpush3.bf16.msra.mxu1 %v3032_v31 }
  0xbf   : > { %2810 = vmatprep.subr.bf16.mxu1 %v3455_v4  ;;  %2804 = vmatprep.subr.bf16.mxu0 %v3455_v4 }
 0x131   : > { %v667_v9 = vpop.xlane.xlu0 %666 }
 0x132   : > { %v669_v10 = vmul.f32 0.0078125, %v667_v9 }
 0x134   : > { %v670_v11 = vsub.f32 %v663_v1, %v669_v10 }
 0x136   : > { %v671_v12 = vmul.f32 %v670_v11, %v670_v11 }
 0x138   : > { %672 = vadd.xlane.f32.xlu0 %v671_v12 }
 0x1c1   : > { %v673_v32 = vpop.xlane.xlu0 %672 }
 0x1c2   : > { %v674_v33 = vmul.f32 0.0078125, %v673_v32 }
 0x1c4   : > { %v675_v34 = vadd.f32 1e-12, %v674_v33 }
 0x1c6   : > { %3121 = vrsqrt.f32 %v675_v34 }
 0x1d3   : > { %v3122_v35 = vpop.eup %3121 }
 0x1d4   : > { %v677_v37 = vmul.f32 %v3122_v35, %v670_v11 }
 0x1d6   : > { %v684_v39 = vmul.f32 %v2584_v36, %v677_v37  ;;  %v3035_v37 = vld [vmem:[#allocation4 + $0x18] sm:$0xff]  }
 0x1d8   : > { %v3796_v40 = vadd.f32 %v2585_v38, %v684_v39  ;;  %v3036_v38 = vld [vmem:[#allocation4 + $0x10] sm:$0xff]  }
 0x1da   : > { %v692_v41 = vpack.c.bf16 %v3796_v40, %v3796_v40 }
 0x1dc   : > { %903 = vmatmul.mubr.bf16.vlgmr.msra.gmra.mxu0 %v692_v41  ;;  %2801 = vmatmul.mubr.bf16.vlgmr.msra.gmra.mxu1 %v692_v41 }
 0x1dd   : > { %2806 = vmatprep.mubr.msk.bf16.mxu0 %vm3457_vm0, %v3455_v4  ;;  %2812 = vmatprep.mubr.msk.bf16.mxu1 %vm3457_vm0, %v3455_v4 }
 0x29c   : > { %v904_v50 = vpop.f32.mrf.mxu0  ;;  %v945_v51 = vpop.f32.mrf.mxu1 }
 0x29d   : > { %v946_v53 = vadd.f32 %v945_v51, %v738_v48  ;;  %v905_v60 = vadd.f32 %v904_v50, %v730_v52  ;;  %v3034_v51 = vld [vmem:[#allocation4] sm:$0xff]  }
 0x29e   : > { %v906_v54 = vpop.f32.mrf.mxu0  ;;  %v2802_v55 = vpop.f32.mrf.mxu1 }
 0x29f   : > { %v3815_v56 = vpack.c.bf16 %v946_v53, %v946_v53  ;;  %v907_v57 = vadd.f32 %v906_v54, %v734_v49  ;;  %v3826_v2 = vpack.c.bf16 %v905_v60, %v905_v60  ;;  %v3033_v49 = vld [vmem:[#allocation4 + $0x8] sm:$0xff]  }
 0x2a0   : > { %v908_v58 = vpop.f32.mrf.mxu0  ;;  %v948_v59 = vpop.f32.mrf.mxu1 }
 0x2a1   : > { %v3817_v61 = vpack.c.bf16 %v907_v57, %v907_v57  ;;  %v1028_v62 = vsel %vm1026_vm1, %v3815_v56, 0 }
 0x2a2   : > { %v909_v63 = vpop.f32.mrf.mxu0  ;;  %v2803_v0 = vpop.f32.mrf.mxu1  ;;  %2811 = vmatpush3.bf16.msra.mxu1 %v1028_v62 }
 0x2a3   : > { %1079 = vrot.lane.b32.xlu1 %v3817_v61, %s3458_s19  ;;  %v960_v1 = vsel %vm955_vm2, %v3817_v61, 0  ;;  %2822 = vmatprep.subr.bf16.mxu1 %v3455_v4 }
 0x2a4   : > { %2805 = vmatpush3.bf16.xpose.msra.mxu0 %v960_v1 }
 0x2a5   : > { %2816 = vmatprep.subr.bf16.mxu0 %v3455_v4 }
 0x2a7   : > { %1076 = vrot.lane.b32.xlu1 %v3826_v2, %s3458_s19 }
 0x2ab   : > { %2807 = vmatmul.mubr.msk.bf16.vlgmr.msra.gmra.mxu0 %vm955_vm2, %v3826_v2 }
 0x2ac   : > { %2818 = vmatprep.mubr.msk.bf16.mxu0 %vm3457_vm0, %v3455_v4 }
 0x315   : > { %v1080_v3 = vpop.permute.xlu1 %1079 }
 0x316   : > { %v1085_v5 = vsel %vm955_vm2, %v1080_v3, 0 }
 0x317   : > { %2817 = vmatpush3.bf16.xpose.msra.mxu0 %v1085_v5 }
 0x318   : > { %2828 = vmatprep.subr.bf16.mxu0 %v3455_v4 }
 0x319   : > { %v1077_v6 = vpop.permute.xlu1 %1076 }
 0x31e   : > { %2819 = vmatmul.mubr.msk.bf16.vlgmr.msra.gmra.mxu0 %vm955_vm2, %v1077_v6 }
 0x31f   : > { %2832 = vmatprep.mubr.msk.bf16.mxu0 %vm3457_vm0, %v3455_v4  ;;  %2829 = vmatpush3.bf16.msra.mxu0 %v3035_v37 }
 0x320   : > { %2830 = vmatprep.subr.bf16.mxu0 %v3455_v4 }
 0x323   : > { %2831 = vmatpush3.bf16.msra.mxu0 %v3036_v38 }
 0x324   : > { %2844 = vmatprep.subr.bf16.mxu0 %v3455_v4 }
 0x36b   : > { %v996_v7 = vpop.f32.mrf.mxu0 }
 0x36c   : > { %v1002_v9 = vmul.f32 0.17677669, %v996_v7 }
 0x36d   : > { %v2808_v10 = vpop.f32.mrf.mxu0 }
 0x36e   : > { %v1009_v11 = vadd.f32 %v3844_v8, %v1002_v9 }
 0x36f   : > { %v999_v12 = vpop.f32.mrf.mxu0 }
 0x370   : > { %v1011_v13 = vsel %vm1010_vm3, %v1009_v11, -inf }
 0x371   : > { %1012 = vmax.xlane.f32.xlu0 %v1011_v13  ;;  %v2809_v14 = vpop.f32.mrf.mxu0 }
 0x3de   : > { %v1121_v15 = vpop.f32.mrf.mxu0 }
 0x3df   : > { %v1127_v16 = vmul.f32 0.17677669, %v1121_v15 }
 0x3e0   : > { %v2820_v17 = vpop.f32.mrf.mxu0 }
 0x3e1   : > { %v1128_v18 = vadd.f32 %v3844_v8, %v1127_v16 }
 0x3e2   : > { %v1124_v19 = vpop.f32.mrf.mxu0 }
 0x3e3   : > { %v1129_v20 = vsel %vm1010_vm3, %v1128_v18, -inf }
 0x3e4   : > { %1130 = vmax.xlane.f32.xlu1 %v1129_v20  ;;  %v2821_v21 = vpop.f32.mrf.mxu0 }
 0x3f5   : > { %1305 = vrot.lane.b32.xlu1 %v3826_v2, %s3459_s17 }
 0x3fa   : > { %v1013_v22 = vpop.xlane.xlu0 %1012 }
 0x3fb   : > { %v1014_v24 = vsub.f32 %v1009_v11, %v1013_v22 }
 0x3fd   : > { %v1015_v25 = vmul.f32 1.442695, %v1014_v24 }
 0x3ff   : > { %3123 = vpow2.f32 %v1015_v25 }
 0x40c   : > { %v3124_v26 = vpop.eup %3123 }
 0x40d   : > { %v1017_v27 = vsel %vm1010_vm3, %v3124_v26, 0.0 }
 0x40e   : > { %1018 = vadd.xlane.f32.xlu0 %v1017_v27 }
 0x46d   : > { %v1131_v28 = vpop.xlane.xlu1 %1130 }
 0x46e   : > { %v1132_v29 = vsub.f32 %v1128_v18, %v1131_v28 }
 0x470   : > { %v1133_v30 = vmul.f32 1.442695, %v1132_v29  ;;  %v3037_v29 = vld [vmem:[#allocation4 + $0x28] sm:$0xff]  }
 0x471   : > { %v1306_v3 = vpop.permute.xlu1 %1305 }
 0x472   : > { %3125 = vpow2.f32 %v1133_v30 }
 0x47f   : > { %v3126_v31 = vpop.eup %3125 }
 0x480   : > { %v1135_v32 = vsel %vm1010_vm3, %v3126_v31, 0.0 }
 0x481   : > { %1136 = vadd.xlane.f32.xlu0 %v1135_v32 }
 0x497   : > { %v1019_v33 = vpop.xlane.xlu0 %1018  ;;  %1142 = vrot.lane.b32.xlu0 %v3815_v56, %s3458_s19 }
 0x498   : > { %3127 = vrcp.f32 %v1019_v33 }
 0x49b   : > { %1307 = vrot.lane.b32.xlu0 %v3817_v61, %s3459_s17 }
 0x4a5   : > { %v3128_v34 = vpop.eup %3127 }
 0x4a6   : > { %v1021_v35 = vmul.f32 %v3128_v34, %v3124_v26 }
 0x4a8   : > { %v1022_v36 = vpack.c.bf16 %v1021_v35, %v1021_v35  ;;  %v3038_v35 = vld [vmem:[#allocation4 + $0x20] sm:$0xff]  }
 0x4aa   : > { %2813 = vmatmul.mubr.msk.bf16.vlgmr.msra.gmra.mxu1 %vm1010_vm3, %v1022_v36 }
 0x4ab   : > { %2824 = vmatprep.mubr.msk.bf16.mxu1 %vm3457_vm0, %v3455_v4 }
 0x50a   : > { %v1137_v39 = vpop.xlane.xlu0 %1136 }
 0x50b   : > { %3129 = vrcp.f32 %v1137_v39 }
 0x50e   : > { %v1143_v41 = vpop.permute.xlu0 %1142 }
 0x50f   : > { %v1148_v42 = vsel %vm1026_vm1, %v1143_v41, 0 }
 0x510   : > { %2823 = vmatpush3.bf16.msra.mxu1 %v1148_v42 }
 0x511   : > { %2836 = vmatprep.subr.bf16.mxu1 %v3455_v4 }
 0x512   : > { %v1308_v58 = vpop.permute.xlu0 %1307 }
 0x513   : > { %v1313_v63 = vsel %vm955_vm2, %v1308_v58, 0 }
 0x518   : > { %v3130_v45 = vpop.eup %3129 }
 0x519   : > { %v1139_v48 = vmul.f32 %v3130_v45, %v3126_v31 }
 0x51b   : > { %v1140_v50 = vpack.c.bf16 %v1139_v48, %v1139_v48 }
 0x51d   : > { %2825 = vmatmul.mubr.msk.bf16.vlgmr.msra.gmra.mxu1 %vm1010_vm3, %v1140_v50 }
 0x51e   : > { %2837 = vmatpush3.bf16.msra.mxu1 %v3033_v49  ;;  %2840 = vmatprep.mubr.msk.bf16.mxu1 %vm3457_vm0, %v3455_v4 }
 0x51f   : > { %2838 = vmatprep.subr.bf16.mxu1 %v3455_v4 }
 0x522   : > { %2839 = vmatpush3.bf16.msra.mxu1 %v3034_v51 }
 0x523   : > { %2850 = vmatprep.subr.bf16.mxu1 %v3455_v4 }
 0x56a   : > { %v1064_v52 = vpop.f32.mrf.mxu1 }
 0x56b   : > { %v1070_v53 = vpack.c.bf16 %v1064_v52, %v1064_v52 }
 0x56c   : > { %v2814_v54 = vpop.f32.mrf.mxu1 }
 0x56d   : > { %2841 = vmatmul.mubr.msk.bf16.vlgmr.msra.gmra.mxu1 %vm955_vm2, %v1070_v53 }
 0x56e   : > { %v1067_v55 = vpop.f32.mrf.mxu1  ;;  %2852 = vmatprep.mubr.msk.bf16.mxu1 %vm3457_vm0, %v3455_v4 }
 0x570   : > { %v2815_v57 = vpop.f32.mrf.mxu1 }
 0x5dd   : > { %v1184_v59 = vpop.f32.mrf.mxu1 }
 0x5de   : > { %v1190_v60 = vpack.c.bf16 %v1184_v59, %v1184_v59 }
 0x5df   : > { %v2826_v62 = vpop.f32.mrf.mxu1 }
 0x5e0   : > { %2833 = vmatmul.mubr.msk.bf16.vlgmr.msra.gmra.mxu0 %vm955_vm2, %v1190_v60 }
 0x5e1   : > { %2845 = vmatpush3.bf16.xpose.msra.mxu0 %v1313_v63  ;;  %v1187_v0 = vpop.f32.mrf.mxu1  ;;  %2846 = vmatprep.mubr.msk.bf16.mxu0 %vm3457_vm0, %v3455_v4 }
 0x5e2   : > { %2856 = vmatprep.subr.bf16.mxu0 %v3455_v4 }
 0x5e3   : > { %v2827_v1 = vpop.f32.mrf.mxu1 }
 0x5e8   : > { %2847 = vmatmul.mubr.msk.bf16.vlgmr.msra.gmra.mxu0 %vm955_vm2, %v1306_v3 }
 0x5e9   : > { %2860 = vmatprep.mubr.msk.bf16.mxu0 %vm3457_vm0, %v3455_v4  ;;  %2857 = vmatpush3.bf16.msra.mxu0 %v3037_v29  ;;  %v3050_v29 = vld [vmem:[%s4049_s10 + $0xc8] ss:$16 sps:$4 sm:$0xff]  }
 0x5ea   : > { %2858 = vmatprep.subr.bf16.mxu0 %v3455_v4 }
 0x5ed   : > { %2859 = vmatpush3.bf16.msra.mxu0 %v3038_v35  ;;  %v3056_v35 = vld [vmem:[%s4049_s10 + $0xa8] ss:$16 sps:$4 sm:$0xff]  }
 0x5ee   : > { %2870 = vmatprep.subr.bf16.mxu0 %v3455_v4 }
 0x62d   : > { %v3881_v5 = vpop.f32.mrf.mxu1 }
 0x62f   : > { %v2842_v6 = vpop.f32.mrf.mxu1 }
 0x631   : > { %v1302_v7 = vpop.f32.mrf.mxu1 }
 0x633   : > { %v2843_v9 = vpop.f32.mrf.mxu1 }
 0x6a0   : > { %v3883_v10 = vpop.f32.mrf.mxu0 }
 0x6a2   : > { %v2834_v11 = vpop.f32.mrf.mxu0 }
 0x6a4   : > { %v1247_v12 = vpop.f32.mrf.mxu0 }
 0x6a5   : > { %v3040_v12 = vld [vmem:[#allocation4 + $0x30] sm:$0xff]  }
 0x6a6   : > { %v2835_v13 = vpop.f32.mrf.mxu0 }
 0x6a8   : > { %v1349_v14 = vpop.f32.mrf.mxu0 }
 0x6a9   : > { %v1355_v15 = vmul.f32 0.17677669, %v1349_v14 }
 0x6aa   : > { %v2848_v16 = vpop.f32.mrf.mxu0 }
 0x6ab   : > { %v1356_v17 = vadd.f32 %v3844_v8, %v1355_v15  ;;  %v2631_v16 = vld [vmem:[#allocation6] ss:$0 sm:$0xff] }
 0x6ac   : > { %v1352_v18 = vpop.f32.mrf.mxu0 }
 0x6ad   : > { %v1357_v19 = vsel %vm1010_vm3, %v1356_v17, -inf }
 0x6ae   : > { %1358 = vmax.xlane.f32.xlu0 %v1357_v19  ;;  %v2849_v20 = vpop.f32.mrf.mxu0 }
 0x6c4   : > { %1369 = vrot.lane.b32.xlu0 %v3815_v56, %s3459_s17 }
 0x6c8   : > { %1478 = vrot.lane.b32.xlu0 %v3826_v2, %s3460_s29 }
 0x737   : > { %v1359_v21 = vpop.xlane.xlu0 %1358 }
 0x738   : > { %v1360_v22 = vsub.f32 %v1356_v17, %v1359_v21 }
 0x73a   : > { %v1361_v24 = vmul.f32 1.442695, %v1360_v22 }
 0x73b   : > { %v1370_v25 = vpop.permute.xlu0 %1369 }
 0x73c   : > { %3131 = vpow2.f32 %v1361_v24  ;;  %v1375_v26 = vsel %vm1026_vm1, %v1370_v25, 0  ;;  %v3041_v24 = vld [vmem:[%s4049_s10 + $0xe0] ss:$16 sps:$4 sm:$0xff]   ;;  %v3043_v25 = vld [vmem:[%s4049_s10 + $0xe4] ss:$16 sps:$4 sm:$0xff]  }
 0x73d   : > { %2851 = vmatpush3.bf16.msra.mxu1 %v1375_v26  ;;  %v3046_v26 = vld [vmem:[%s4049_s10 + $0xec] ss:$16 sps:$4 sm:$0xff]  }
 0x73e   : > { %2864 = vmatprep.subr.bf16.mxu1 %v3455_v4 }
 0x749   : > { %v3132_v27 = vpop.eup %3131 }
 0x74a   : > { %v1363_v28 = vsel %vm1010_vm3, %v3132_v27, 0.0 }
 0x74b   : > { %1364 = vadd.xlane.f32.xlu1 %v1363_v28  ;;  %v3047_v28 = vld [vmem:[%s4049_s10 + $0xc0] ss:$16 sps:$4 sm:$0xff]  }
 0x75c   : > { %1480 = vrot.lane.b32.xlu1 %v3817_v61, %s3460_s29  ;;  %v1479_v61 = vpop.permute.xlu0 %1478 }
 0x7d4   : > { %v1365_v2 = vpop.xlane.xlu1 %1364 }
 0x7d5   : > { %3133 = vrcp.f32 %v1365_v2 }
 0x7d8   : > { %v1481_v32 = vpop.permute.xlu1 %1480 }
 0x7d9   : > { %v1486_v34 = vsel %vm955_vm2, %v1481_v32, 0 }
 0x7e2   : > { %v3134_v30 = vpop.eup %3133 }
 0x7e3   : > { %v1367_v31 = vmul.f32 %v3134_v30, %v3132_v27  ;;  %v3052_v27 = vld [vmem:[%s4049_s10 + $0xcc] ss:$16 sps:$4 sm:$0xff]  }
 0x7e5   : > { %v1368_v33 = vpack.c.bf16 %v1367_v31, %v1367_v31 }
 0x7e7   : > { %2853 = vmatmul.mubr.msk.bf16.vlgmr.msra.gmra.mxu1 %vm1010_vm3, %v1368_v33  ;;  %v3055_v33 = vld [vmem:[%s4049_s10 + $0xa4] ss:$16 sps:$4 sm:$0xff]  }
 0x7e8   : > { %2865 = vmatpush3.bf16.xpose.msra.mxu1 %v1486_v34  ;;  %2866 = vmatprep.mubr.msk.bf16.mxu1 %vm3457_vm0, %v3455_v4  ;;  %v3058_v34 = vld [vmem:[%s4049_s10 + $0xac] ss:$16 sps:$4 sm:$0xff]  }
 0x7e9   : > { %2876 = vmatprep.subr.bf16.mxu1 %v3455_v4 }
 0x7ef   : > { %2867 = vmatmul.mubr.msk.bf16.vlgmr.msra.gmra.mxu1 %vm955_vm2, %v1479_v61  ;;  %v3053_v61 = vld [vmem:[%s4049_s10 + $0xa0] ss:$16 sps:$4 sm:$0xff]  }
 0x7f0   : > { %2880 = vmatprep.mubr.msk.bf16.mxu1 %vm3457_vm0, %v3455_v4 }
 0x8a7   : > { %v1411_v36 = vpop.f32.mrf.mxu1 }
 0x8a8   : > { %v1417_v37 = vpack.c.bf16 %v1411_v36, %v1411_v36  ;;  %v3059_v36 = vld [vmem:[%s4049_s10 + $0x80] ss:$16 sps:$4 sm:$0xff]  }
 0x8a9   : > { %v2854_v38 = vpop.f32.mrf.mxu1 }
 0x8aa   : > { %2861 = vmatmul.mubr.msk.bf16.vlgmr.msra.gmra.mxu0 %vm955_vm2, %v1417_v37  ;;  %v3061_v37 = vld [vmem:[%s4049_s10 + $0x84] ss:$16 sps:$4 sm:$0xff]   ;;  %v3062_v38 = vld [vmem:[%s4049_s10 + $0x88] ss:$16 sps:$4 sm:$0xff]  }
 0x8ab   : > { %v1414_v39 = vpop.f32.mrf.mxu1  ;;  %2872 = vmatprep.mubr.msk.bf16.mxu0 %vm3457_vm0, %v3455_v4 }
 0x8ac   : > { %v3064_v39 = vld [vmem:[%s4049_s10 + $0x8c] ss:$16 sps:$4 sm:$0xff]  }
 0x8ad   : > { %v2855_v41 = vpop.f32.mrf.mxu1 }
 0x8ae   : > { %v3067_v41 = vld [vmem:[%s4049_s10 + $0x64] ss:$16 sps:$4 sm:$0xff]  }
 0x8af   : > { %v1522_v42 = vpop.f32.mrf.mxu1 }
 0x8b0   : > { %v1528_v45 = vmul.f32 0.17677669, %v1522_v42  ;;  %v3070_v42 = vld [vmem:[%s4049_s10 + $0x6c] ss:$16 sps:$4 sm:$0xff]  }
 0x8b1   : > { %v2868_v48 = vpop.f32.mrf.mxu1 }
 0x8b2   : > { %v1529_v49 = vadd.f32 %v3844_v8, %v1528_v45  ;;  %v1300_v8 = vadd.f32 %v3881_v5, %v3883_v10  ;;  %v3065_v45 = vld [vmem:[%s4049_s10 + $0x60] ss:$16 sps:$4 sm:$0xff]   ;;  %v3068_v48 = vld [vmem:[%s4049_s10 + $0x68] ss:$16 sps:$4 sm:$0xff]  }
 0x8b3   : > { %v1525_v50 = vpop.f32.mrf.mxu1 }
 0x8b4   : > { %v1530_v51 = vsel %vm1010_vm3, %v1529_v49, -inf  ;;  %v3076_v50 = vld [vmem:[%s4049_s10 + $0x4c] ss:$16 sps:$4 sm:$0xff]  }
 0x8b5   : > { %1531 = vmax.xlane.f32.xlu0 %v1530_v51  ;;  %v2869_v52 = vpop.f32.mrf.mxu1  ;;  %v3071_v51 = vld [vmem:[%s4049_s10 + $0x40] ss:$16 sps:$4 sm:$0xff]  }
 0x8b6   : > { %v3074_v52 = vld [vmem:[%s4049_s10 + $0x48] ss:$16 sps:$4 sm:$0xff]  }
 0x8cb   : > { %1542 = vrot.lane.b32.xlu0 %v3815_v56, %s3460_s29  ;;  %v3039_v56 = vld [vmem:[#allocation4 + $0x38] sm:$0xff]  }
 0x8cc   : > { %2877 = vmatpush3.bf16.msra.mxu1 %v3039_v56  ;;  %v2632_v56 = vld [vmem:[#allocation7] ss:$0 sm:$0xff] }
 0x8cd   : > { %2878 = vmatprep.subr.bf16.mxu1 %v3455_v4 }
 0x8d0   : > { %2879 = vmatpush3.bf16.msra.mxu1 %v3040_v12  ;;  %v3089_v12 = vld [vmem:[#allocation12 + $0x78] sm:$0xff]  }
 0x8d1   : > { %1943 = vmatprep.subr.bf16.mxu1 %v3046_v26  ;;  %v3106_v26 = vld [vmem:[#allocation12 + $0xd8] sm:$0xff]  }
 0x93e   : > { %v1532_v53 = vpop.xlane.xlu0 %1531 }
 0x93f   : > { %v1533_v54 = vsub.f32 %v1529_v49, %v1532_v53  ;;  %v3073_v49 = vld [vmem:[%s4049_s10 + $0x44] ss:$16 sps:$4 sm:$0xff]  }
 0x940   : > { %v3079_v53 = vld [vmem:[%s4049_s10 + $0x24] ss:$16 sps:$4 sm:$0xff]  }
 0x941   : > { %v1534_v55 = vmul.f32 1.442695, %v1533_v54  ;;  %v3082_v54 = vld [vmem:[%s4049_s10 + $0x2c] ss:$16 sps:$4 sm:$0xff]  }
 0x942   : > { %v1543_v57 = vpop.permute.xlu0 %1542 }
 0x943   : > { %3135 = vpow2.f32 %v1534_v55  ;;  %v1548_v58 = vsel %vm1026_vm1, %v1543_v57, 0  ;;  %v3077_v55 = vld [vmem:[%s4049_s10 + $0x20] ss:$16 sps:$4 sm:$0xff]   ;;  %v3080_v57 = vld [vmem:[%s4049_s10 + $0x28] ss:$16 sps:$4 sm:$0xff]  }
 0x944   : > { %2871 = vmatpush3.bf16.msra.mxu0 %v1548_v58  ;;  %v3085_v58 = vld [vmem:[%s4049_s10 + $0x4] ss:$16 sps:$4 sm:$0xff]  }
 0x945   : > { %1902 = vmatprep.subr.bf16.mxu0 %v3043_v25  ;;  %v3104_v25 = vld [vmem:[#allocation12 + $0xa0] sm:$0xff]  }
 0x950   : > { %v3136_v59 = vpop.eup %3135 }
 0x951   : > { %v1536_v60 = vsel %vm1010_vm3, %v3136_v59, 0.0 }
 0x952   : > { %1537 = vadd.xlane.f32.xlu1 %v1536_v60  ;;  %v3083_v60 = vld [vmem:[%s4049_s10] ss:$16 sps:$4 sm:$0xff]  }
 0x96a   : > { %v1471_v62 = vpop.f32.mrf.mxu0 }
 0x96b   : > { %v1477_v63 = vadd.f32 %v1471_v62, %v1300_v8  ;;  %v3086_v8 = vld [vmem:[%s4049_s10 + $0x8] ss:$16 sps:$4 sm:$0xff]  }
 0x96c   : > { %v2862_v0 = vpop.f32.mrf.mxu0 }
 0x96e   : > { %v1474_v1 = vpop.f32.mrf.mxu0 }
 0x970   : > { %v2863_v3 = vpop.f32.mrf.mxu0 }
 0x9db   : > { %v1538_v6 = vpop.xlane.xlu1 %1537 }
 0x9dc   : > { %3137 = vrcp.f32 %v1538_v6  ;;  %v2633_v6 = vld [vmem:[#allocation9] ss:$0 sm:$0xff] }
 0x9e9   : > { %v3138_v7 = vpop.eup %3137 }
 0x9ea   : > { %v1540_v9 = vmul.f32 %v3138_v7, %v3136_v59  ;;  %v3088_v59 = vld [vmem:[%s4049_s10 + $0xc] ss:$16 sps:$4 sm:$0xff]  }
 0x9ec   : > { %v1541_v11 = vpack.c.bf16 %v1540_v9, %v1540_v9 }
 0x9ee   : > { %2873 = vmatmul.mubr.msk.bf16.vlgmr.msra.gmra.mxu0 %vm1010_vm3, %v1541_v11 }
 0x9ef   : > { %1934 = vmatprep.mubr.bf16.mxu0 %v3456_v23  ;;  %1903 = vmatpush1.bf16.msra.mxu0 %v3041_v24  ;;  %v3103_v24 = vld [vmem:[#allocation12 + $0x20] sm:$0xff]  }
 0xaae   : > { %v1584_v5 = vpop.f32.mrf.mxu0 }
 0xaaf   : > { %v1590_v10 = vpack.c.bf16 %v1584_v5, %v1584_v5  ;;  %v3090_v5 = vld [vmem:[#allocation12 + $0xf8] sm:$0xff]  }
 0xab0   : > { %v2874_v13 = vpop.f32.mrf.mxu0 }
 0xab1   : > { %2881 = vmatmul.mubr.msk.bf16.vlgmr.msra.gmra.mxu1 %vm955_vm2, %v1590_v10  ;;  %v3091_v10 = vld [vmem:[#allocation12 + $0x38] sm:$0xff]  }
 0xab2   : > { %v1587_v14 = vpop.f32.mrf.mxu0  ;;  %1975 = vmatprep.mubr.bf16.mxu1 %v3456_v23  ;;  %v3044_v23 = vld [vmem:[%s4049_s10 + $0xe8] ss:$16 sps:$4 sm:$0xff]  }
 0xab3   : > { %1944 = vmatpush1.bf16.msra.mxu1 %v3044_v23  ;;  %v3092_v13 = vld [vmem:[#allocation12 + $0xb8] sm:$0xff]   ;;  %v3093_v14 = vld [vmem:[#allocation12 + $0x70] sm:$0xff]  }
 0xab4   : > { %v2875_v4 = vpop.f32.mrf.mxu0  ;;  %1945 = vmatprep.subr.bf16.mxu1 %v3052_v27  ;;  %v3105_v23 = vld [vmem:[#allocation12 + $0x58] sm:$0xff]  }
 0xab5   : > { %v3094_v4 = vld [vmem:[#allocation12 + $0xf0] sm:$0xff]   ;;  %v3108_v27 = vld [vmem:[#allocation12 + $0x98] sm:$0xff]  }
 0xab7   : > { %1946 = vmatpush1.bf16.msra.mxu1 %v3050_v29  ;;  %v3110_v29 = vld [vmem:[#allocation12 + $0xd0] sm:$0xff]  }
 0xab8   : > { %1947 = vmatprep.subr.bf16.mxu1 %v3058_v34  ;;  %v3116_v34 = vld [vmem:[#allocation12 + $0x88] sm:$0xff]  }
 0xabb   : > { %1948 = vmatpush1.bf16.msra.mxu1 %v3056_v35  ;;  %v3118_v35 = vld [vmem:[#allocation12 + $0xc0] sm:$0xff]  }
 0xabc   : > { %1949 = vmatprep.subr.bf16.mxu1 %v3064_v39  ;;  %v1736_v39 = vsub.s32 3, %v3804_v43 }
 0xabf   : > { %1950 = vmatpush1.bf16.msra.mxu1 %v3062_v38  ;;  %v1720_v38 = vld [vmem:[#allocation10] sm:$0xf] }
 0xac0   : > { %1951 = vmatprep.subr.bf16.mxu1 %v3070_v42  ;;  %v1733_v42 = vrot.slane %v1720_v38, %v737_v44 }
 0xac3   : > { %1952 = vmatpush1.bf16.msra.mxu1 %v3068_v48  ;;  %v1737_v48 = vrot.slane %v1720_v38, %v1736_v39 }
 0xac4   : > { %1953 = vmatprep.subr.bf16.mxu1 %v3076_v50 }
 0xac7   : > { %1954 = vmatpush1.bf16.msra.mxu1 %v3074_v52 }
 0xac8   : > { %1955 = vmatprep.subr.bf16.mxu1 %v3082_v54 }
 0xacb   : > { %1956 = vmatpush1.bf16.msra.mxu1 %v3080_v57 }
 0xacc   : > { %1957 = vmatprep.subr.bf16.mxu1 %v3088_v59 }
 0xacf   : > { %1958 = vmatpush1.bf16.msra.mxu1 %v3086_v8 }
 0xad0   : > { %2762 = vmatprep.subr.bf16.mxu1 %v3090_v5 }
 0xb71   : > { %v1644_v15 = vpop.f32.mrf.mxu1 }
 0xb72   : > { %v1650_v17 = vadd.f32 %v1644_v15, %v1477_v63  ;;  %v3095_v15 = vld [vmem:[#allocation12 + $0x30] sm:$0xff]  }
 0xb73   : > { %v2882_v18 = vpop.f32.mrf.mxu1 }
 0xb74   : > { %v1658_v19 = vadd.f32 %v2631_v16, %v1650_v17  ;;  %v3096_v16 = vld [vmem:[#allocation12 + $0xb0] sm:$0xff]   ;;  %v3097_v17 = vld [vmem:[#allocation12 + $0x68] sm:$0xff]  }
 0xb75   : > { %v1647_v20 = vpop.f32.mrf.mxu1  ;;  %v3098_v18 = vld [vmem:[#allocation12 + $0xe8] sm:$0xff]  }
 0xb76   : > { %v1659_v21 = vadd.f32 %v1658_v19, %v3796_v40  ;;  %v3049_v40 = vld [vmem:[%s4049_s10 + $0xc4] ss:$16 sps:$4 sm:$0xff]  }
 0xb77   : > { %v2883_v22 = vpop.f32.mrf.mxu1  ;;  %1904 = vmatprep.subr.bf16.mxu0 %v3049_v40  ;;  %v3099_v19 = vld [vmem:[#allocation12 + $0x28] sm:$0xff]   ;;  %v3107_v40 = vld [vmem:[#allocation12 + $0x18] sm:$0xff]  }
 0xb78   : > { %1662 = vadd.xlane.f32.xlu1 %v1659_v21  ;;  %1905 = vmatpush1.bf16.msra.mxu0 %v3047_v28  ;;  %v3100_v20 = vld [vmem:[#allocation12 + $0xa8] sm:$0xff]   ;;  %v3102_v22 = vld [vmem:[#allocation12 + $0xe0] sm:$0xff]   ;;  %v3109_v28 = vld [vmem:[#allocation12 + $0x50] sm:$0xff]  }
 0xb79   : > { %1906 = vmatprep.subr.bf16.mxu0 %v3055_v33  ;;  %v3115_v33 = vld [vmem:[#allocation12 + $0x8] sm:$0xff]  }
 0xb7c   : > { %1907 = vmatpush1.bf16.msra.mxu0 %v3053_v61  ;;  %v3117_v61 = vld [vmem:[#allocation12 + $0x40] sm:$0xff]  }
 0xb7d   : > { %1908 = vmatprep.subr.bf16.mxu0 %v3061_v37  ;;  %v3120_v37 = vld [vmem:[#allocation12 + $0x80] sm:$0xff]  }
 0xb80   : > { %1909 = vmatpush1.bf16.msra.mxu0 %v3059_v36  ;;  %v3119_v36 = vld [vmem:[#allocation12] sm:$0xff]  }
 0xb81   : > { %1910 = vmatprep.subr.bf16.mxu0 %v3067_v41  ;;  %v1725_v41 = vrot.slane %v1720_v38, %v729_v47 }
 0xb84   : > { %1911 = vmatpush1.bf16.msra.mxu0 %v3065_v45  ;;  %v1729_v45 = vrot.slane %v1720_v38, %v733_v46 }
 0xb85   : > { %1912 = vmatprep.subr.bf16.mxu0 %v3073_v49 }
 0xb88   : > { %1913 = vmatpush1.bf16.msra.mxu0 %v3071_v51 }
 0xb89   : > { %1914 = vmatprep.subr.bf16.mxu0 %v3079_v53 }
 0xb8c   : > { %1915 = vmatpush1.bf16.msra.mxu0 %v3077_v55 }
 0xb8d   : > { %1916 = vmatprep.subr.bf16.mxu0 %v3085_v58 }
 0xb90   : > { %1917 = vmatpush1.bf16.msra.mxu0 %v3083_v60 }
 0xb91   : > { %2740 = vmatprep.subr.bf16.mxu0 %v3089_v12 }
 0xc01   : > { %v1663_v2 = vpop.xlane.xlu1 %1662 }
 0xc02   : > { %v1664_v30 = vmul.f32 0.0078125, %v1663_v2  ;;  %v3111_v2 = vld [vmem:[#allocation12 + $0x10] sm:$0xff]  }
 0xc04   : > { %v1665_v31 = vsub.f32 %v1659_v21, %v1664_v30  ;;  %v3101_v21 = vld [vmem:[#allocation12 + $0x60] sm:$0xff]   ;;  %v3112_v30 = vld [vmem:[#allocation12 + $0x90] sm:$0xff]  }
 0xc06   : > { %v1666_v32 = vmul.f32 %v1665_v31, %v1665_v31 }
 0xc08   : > { %1667 = vadd.xlane.f32.xlu1 %v1666_v32  ;;  %v3114_v32 = vld [vmem:[#allocation12 + $0xc8] sm:$0xff]  }
 0xc91   : > { %v1668_v62 = vpop.xlane.xlu1 %1667 }
 0xc92   : > { %v1669_v63 = vmul.f32 0.0078125, %v1668_v62 }
 0xc94   : > { %v1670_v0 = vadd.f32 1e-12, %v1669_v63 }
 0xc96   : > { %3139 = vrsqrt.f32 %v1670_v0 }
 0xca3   : > { %v3140_v1 = vpop.eup %3139 }
 0xca4   : > { %v1672_v3 = vmul.f32 %v3140_v1, %v1665_v31  ;;  %v3113_v31 = vld [vmem:[#allocation12 + $0x48] sm:$0xff]  }
 0xca6   : > { %v1679_v7 = vmul.f32 %v2632_v56, %v1672_v3 }
 0xca8   : > { %v4019_v9 = vadd.f32 %v2633_v6, %v1679_v7 }
 0xcaa   : > { %v1687_v11 = vpack.c.bf16 %v4019_v9, %v4019_v9 }
 0xcac   : > { %1935 = vmatmul.mubr.bf16.vlgmr.msra.gmra.mxu0 %v1687_v11  ;;  %1976 = vmatmul.mubr.bf16.vlgmr.msra.gmra.mxu1 %v1687_v11 }
 0xcad   : > { %2741 = vmatpush3.bf16.msra.mxu0 %v3091_v10  ;;  %2763 = vmatpush3.bf16.msra.mxu1 %v3092_v13 }
 0xcae   : > { %2742 = vmatprep.subr.bf16.mxu0 %v3093_v14  ;;  %2764 = vmatprep.subr.bf16.mxu1 %v3094_v4 }
 0xcb1   : > { %2743 = vmatpush3.bf16.msra.mxu0 %v3095_v15  ;;  %2765 = vmatpush3.bf16.msra.mxu1 %v3096_v16 }
 0xcb2   : > { %2744 = vmatprep.subr.bf16.mxu0 %v3097_v17  ;;  %2766 = vmatprep.subr.bf16.mxu1 %v3098_v18 }
 0xcb5   : > { %2745 = vmatpush3.bf16.msra.mxu0 %v3099_v19  ;;  %2767 = vmatpush3.bf16.msra.mxu1 %v3100_v20 }
 0xcb6   : > { %2746 = vmatprep.subr.bf16.mxu0 %v3101_v21  ;;  %2768 = vmatprep.subr.bf16.mxu1 %v3102_v22 }
 0xcb9   : > { %2747 = vmatpush3.bf16.msra.mxu0 %v3103_v24  ;;  %2769 = vmatpush3.bf16.msra.mxu1 %v3104_v25 }
 0xcba   : > { %2748 = vmatprep.subr.bf16.mxu0 %v3105_v23  ;;  %2770 = vmatprep.subr.bf16.mxu1 %v3106_v26 }
 0xcbd   : > { %2749 = vmatpush3.bf16.msra.mxu0 %v3107_v40  ;;  %2771 = vmatpush3.bf16.msra.mxu1 %v3108_v27 }
 0xcbe   : > { %2750 = vmatprep.subr.bf16.mxu0 %v3109_v28  ;;  %2772 = vmatprep.subr.bf16.mxu1 %v3110_v29 }
 0xcc1   : > { %2751 = vmatpush3.bf16.msra.mxu0 %v3111_v2  ;;  %2773 = vmatpush3.bf16.msra.mxu1 %v3112_v30 }
 0xcc2   : > { %2752 = vmatprep.subr.bf16.mxu0 %v3113_v31  ;;  %2774 = vmatprep.subr.bf16.mxu1 %v3114_v32 }
 0xcc5   : > { %2753 = vmatpush3.bf16.msra.mxu0 %v3115_v33  ;;  %2775 = vmatpush3.bf16.msra.mxu1 %v3116_v34 }
 0xcc6   : > { %2754 = vmatprep.subr.bf16.mxu0 %v3117_v61  ;;  %2776 = vmatprep.subr.bf16.mxu1 %v3118_v35  ;;  %v2666_v35 = vld [vmem:[#allocation13] ss:$0 sm:$0xff] }
 0xcc9   : > { %2755 = vmatpush3.bf16.msra.mxu0 %v3119_v36  ;;  %2777 = vmatpush3.bf16.msra.mxu1 %v3120_v37 }
 0xd6c   : > { %v1936_v49 = vpop.f32.mrf.mxu0  ;;  %v1977_v50 = vpop.f32.mrf.mxu1 }
 0xd6d   : > { %v1937_v51 = vadd.f32 %v1936_v49, %v1725_v41  ;;  %v1978_v52 = vadd.f32 %v1977_v50, %v1733_v42 }
 0xd6e   : > { %v1938_v53 = vpop.f32.mrf.mxu0  ;;  %v1979_v54 = vpop.f32.mrf.mxu1 }
 0xd6f   : > { %v1988_v55 = vmul.f32 0.044715, %v1937_v51  ;;  %v1990_v57 = vmul.f32 0.044715, %v1978_v52  ;;  %v1939_v58 = vadd.f32 %v1938_v53, %v1729_v45  ;;  %v1980_v59 = vadd.f32 %v1979_v54, %v1737_v48 }
 0xd70   : > { %v1940_v60 = vpop.f32.mrf.mxu0  ;;  %v1981_v8 = vpop.f32.mrf.mxu1  ;;  %v1984_v20 = vmul.f32 0.5, %v1937_v51  ;;  %v1986_v23 = vmul.f32 0.5, %v1978_v52 }
 0xd71   : > { %v1992_v47 = vmul.f32 %v1988_v55, %v1937_v51  ;;  %v1994_v62 = vmul.f32 %v1990_v57, %v1978_v52  ;;  %v1989_v63 = vmul.f32 0.044715, %v1939_v58  ;;  %v1991_v44 = vmul.f32 0.044715, %v1980_v59  ;;  %v2699_v8 = vld [vmem:[#allocation15] ss:$0 sm:$0xff] }
 0xd72   : > { %v1941_v0 = vpop.f32.mrf.mxu0  ;;  %v1982_v43 = vpop.f32.mrf.mxu1  ;;  %v1985_v24 = vmul.f32 0.5, %v1939_v58  ;;  %v1987_v26 = vmul.f32 0.5, %v1980_v59 }
 0xd73   : > { %v1996_v46 = vmul.f32 %v1992_v47, %v1937_v51  ;;  %v1998_v1 = vmul.f32 %v1994_v62, %v1978_v52  ;;  %v1993_v56 = vmul.f32 %v1989_v63, %v1939_v58  ;;  %v1995_v3 = vmul.f32 %v1991_v44, %v1980_v59  ;;  %v2700_v62 = vld [vmem:[#allocation16] ss:$0 sm:$0xff] }
 0xd75   : > { %v2000_v6 = vadd.f32 %v1996_v46, %v1937_v51  ;;  %v2002_v7 = vadd.f32 %v1998_v1, %v1978_v52  ;;  %v1997_v11 = vmul.f32 %v1993_v56, %v1939_v58  ;;  %v1999_v12 = vmul.f32 %v1995_v3, %v1980_v59 }
 0xd77   : > { %v2004_v5 = vmul.f32 0.7978846, %v2000_v6  ;;  %v2006_v10 = vmul.f32 0.7978846, %v2002_v7  ;;  %v2001_v13 = vadd.f32 %v1997_v11, %v1939_v58  ;;  %v2003_v14 = vadd.f32 %v1999_v12, %v1980_v59 }
 0xd79   : > { %v2005_v4 = vmul.f32 0.7978846, %v2001_v13  ;;  %v2007_v15 = vmul.f32 0.7978846, %v2003_v14  ;;  %3141 = vtanh.f32 %v2004_v5 }
 0xd7a   : > { %3143 = vtanh.f32 %v2006_v10 }
 0xd7b   : > { %3145 = vtanh.f32 %v2005_v4 }
 0xd7c   : > { %3147 = vtanh.f32 %v2007_v15 }
 0xd86   : > { %v3142_v16 = vpop.eup %3141 }
 0xd87   : > { %v3144_v17 = vpop.eup %3143  ;;  %v2012_v18 = vadd.f32 1.0, %v3142_v16 }
 0xd88   : > { %v3146_v19 = vpop.eup %3145  ;;  %v2014_v21 = vadd.f32 1.0, %v3144_v17 }
 0xd89   : > { %v3148_v22 = vpop.eup %3147  ;;  %v2013_v25 = vadd.f32 1.0, %v3146_v19  ;;  %v2016_v27 = vmul.f32 %v2012_v18, %v1984_v20 }
 0xd8a   : > { %v2015_v40 = vadd.f32 1.0, %v3148_v22  ;;  %v2018_v29 = vmul.f32 %v2014_v21, %v1986_v23 }
 0xd8b   : > { %v2017_v28 = vmul.f32 %v2013_v25, %v1985_v24  ;;  %v2020_v32 = vpack.c.bf16 %v2016_v27, %v2016_v27 }
 0xd8c   : > { %v2019_v2 = vmul.f32 %v2015_v40, %v1987_v26  ;;  %v2022_v33 = vpack.c.bf16 %v2018_v29, %v2018_v29 }
 0xd8d   : > { %v2021_v30 = vpack.c.bf16 %v2017_v28, %v2017_v28 }
 0xd8e   : > { %v2023_v31 = vpack.c.bf16 %v2019_v2, %v2019_v2 }
 0xd8f   : > { %2319 = vmatprep.mubr.bf16.mxu0 %v2021_v30 }
 0xd90   : > { %2359 = vmatprep.mubr.bf16.mxu1 %v2023_v31  ;;  %2320 = vmatmul.mubr.bf16.vlgmr.msra.gmra.mxu0 %v2020_v32 }
 0xd91   : > { %2360 = vmatmul.mubr.bf16.vlgmr.msra.gmra.mxu1 %v2022_v33 }
 0xe50   : > { %v2756_v34 = vpop.f32.mrf.mxu0 }
 0xe51   : > { %v2778_v61 = vpop.f32.mrf.mxu1 }
 0xe52   : > { %v2757_v36 = vpop.f32.mrf.mxu0 }
 0xe53   : > { %v2758_v37 = vadd.f32 %v2757_v36, %v2756_v34  ;;  %v2779_v38 = vpop.f32.mrf.mxu1 }
 0xe54   : > { %v2759_v39 = vpop.f32.mrf.mxu0  ;;  %v2780_v42 = vadd.f32 %v2779_v38, %v2778_v61 }
 0xe55   : > { %v2322_v41 = vadd.f32 %v2758_v37, %v2666_v35  ;;  %v2781_v45 = vpop.f32.mrf.mxu1 }
 0xe56   : > { %v2760_v48 = vpop.f32.mrf.mxu0 }
 0xe57   : > { %v2362_v49 = vadd.f32 %v2780_v42, %v2322_v41  ;;  %v2782_v50 = vpop.f32.mrf.mxu1 }
 0xe59   : > { %v2367_v51 = vadd.f32 %v2362_v49, %v4019_v9 }
 0xe5b   : > { %2370 = vadd.xlane.f32.xlu0 %v2367_v51 }
 0xee4   : > { %v2371_v52 = vpop.xlane.xlu0 %2370 }
 0xee5   : > { %v2372_v53 = vmul.f32 0.0078125, %v2371_v52 }
 0xee7   : > { %v2373_v54 = vsub.f32 %v2367_v51, %v2372_v53 }
 0xee9   : > { %v2374_v55 = vmul.f32 %v2373_v54, %v2373_v54 }
 0xeeb   : > { %2375 = vadd.xlane.f32.xlu1 %v2374_v55 }
 0xf74   : > { %v2376_v57 = vpop.xlane.xlu1 %2375 }
 0xf75   : > { %v2377_v58 = vmul.f32 0.0078125, %v2376_v57 }
 0xf77   : > { %v2378_v59 = vadd.f32 1e-12, %v2377_v58 }
 0xf79   : > { %3149 = vrsqrt.f32 %v2378_v59 }
 0xf86   : > { %v3150_v60 = vpop.eup %3149 }
 0xf87   : > { %v2380_v47 = vmul.f32 %v3150_v60, %v2373_v54 }
 0xf89   : > { %v2387_v63 = vmul.f32 %v2699_v8, %v2380_v47 }
 0xf8b   : > { %v2394_v44 = vadd.f32 %v2700_v62, %v2387_v63 }
 0xf8d   : > { %v2395_v9 = vpack.c.bf16 %v2394_v44, %v2394_v44 }
 0xf8f   : > { %2396 = vst [vmem:[%s660_s27] sm:$0xf] %v2395_v9 }
 0xf90 PF: > { %s4080_s17 = sld [smem:[#allocation24_spill]] }
 0xf96   : > { %s32_s21 = sadd.s32 1, %s4080_s17  }
 0xf97   : > { %p29_p3 = scmp.ge.s32.totalorder %s32_s21, 4  }
 0xf99   :  { %31 = sbr.rel (!%p29_p3) target bundleno = 9 (0x9), region = 158 }
 0xf9e   :  { %2416 = vsyncpa [#allocation3], 1 }
 0xf9f   :  { %2418 = vsyncpa [#allocation3 + $0x1], 1 }
 0xfa0   :  { %2419 = vsyncpa [#allocation5], 1 }
 0xfa1   :  { %2420 = vsyncpa [#allocation8], 1 }
 0xfa2   :  { %2421 = vsyncpa [#allocation11], 1 }
 0xfa3   :  { %2422 = vsyncpa [#allocation14], 1 }
 0xfa4   :  { %2423 = vsyncpa [#allocation17], 1 }

// kernel: forward.3
= control target key start
LH: loop header
LB: loop body
LE: loop exit
PB: predicated region body
PF: predicated region fallthrough
CT: control target
= control target key end

     0   :  { %s4271_s0 = inlined_call_operand.vmem [shape: f32[2,1,8], index: 0, kind: input, shape index: {}]   ;;  %s4272_s1 = inlined_call_operand.vmem [shape: bf16[16,128], index: 1, kind: input, shape index: {}]   ;;  %s4273_s2 = inlined_call_operand.vmem [shape: bf16[128,384], index: 2, kind: input, shape index: {}]   ;;  %s4274_s3 = inlined_call_operand.vmem [shape: f32[1,384], index: 3, kind: input, shape index: {}]   ;;  %s4275_s4 = inlined_call_operand.vmem [shape: bf16[128,128], index: 4, kind: input, shape index: {}]   ;;  %s4276_s5 = inlined_call_operand.vmem [shape: f32[1,128], index: 5, kind: input, shape index: {}]   ;;  %s4277_s6 = inlined_call_operand.vmem [shape: f32[1,128], index: 6, kind: input, shape index: {}]   ;;  %s4278_s7 = inlined_call_operand.vmem [shape: f32[1,128], index: 7, kind: input, shape index: {}]   ;;  %s4279_s8 = inlined_call_operand.vmem [shape: bf16[128,512], index: 8, kind: input, shape index: {}]   ;;  %s4280_s9 = inlined_call_operand.vmem [shape: f32[1,512], index: 9, kind: input, shape index: {}]   ;;  %s4281_s10 = inlined_call_operand.vmem [shape: bf16[512,128], index: 10, kind: input, shape index: {}]   ;;  %s4282_s11 = inlined_call_operand.vmem [shape: f32[1,128], index: 11, kind: input, shape index: {}]   ;;  %s4283_s12 = inlined_call_operand.vmem [shape: f32[1,128], index: 12, kind: input, shape index: {}]   ;;  %s4284_s13 = inlined_call_operand.vmem [shape: f32[1,128], index: 13, kind: input, shape index: {}]   ;;  %s4285_s14 = inlined_call_operand.hbm [shape: bf16[128,128], index: 14, kind: input, shape index: {}]   ;;  %s4286_s15 = inlined_call_operand.vmem [shape: f32[1,128], index: 15, kind: input, shape index: {}]   ;;  %s4287_s16 = inlined_call_operand.hbm [shape: bf16[128,128], index: 16, kind: input, shape index: {}]   ;;  %s4288_s17 = inlined_call_operand.vmem [shape: f32[1,128], index: 17, kind: input, shape index: {}]   ;;  %s4289_s18 = inlined_call_operand.hbm [shape: bf16[16,128], index: 18, kind: output, shape index: {0}]   ;;  %s4290_s19 = inlined_call_operand.hbm [shape: f32[2,1,128], index: 19, kind: output, shape index: {1}]  }
   0x1   :  { %4299 = sst [smem:[#allocation19_spill]] %s4271_s0 }
   0x2   :  { %4300 = sst [smem:[#allocation20_spill]] %s4272_s1 }
   0x3   :  { %4301 = sst [smem:[#allocation21_spill]] %s4273_s2 }
   0x4   :  { %4302 = sst [smem:[#allocation22_spill]] %s4274_s3 }
   0x5   :  { %4303 = sst [smem:[#allocation23_spill]] %s4275_s4 }
   0x6   :  { %4304 = sst [smem:[#allocation24_spill]] %s4285_s14 }
   0x7   :  { %4305 = sst [smem:[#allocation25_spill]] %s4287_s16 }
   0x8   :  { %25 = vsyncpa [#allocation3], 0 }
   0x9   :  { %26 = vsyncpa [#allocation6], 0 }
   0xa   :  { %27 = vsyncpa [#allocation4], 0 }
   0xb   :  { %29 = vsyncpa [#allocation4 + $0x1], 0 }
   0xc   :  { %30 = vsyncpa [#allocation9], 0 }
   0xd   :  { %32 = vsyncpa [#allocation9 + $0x1], 0  ;;  %s3610_s0 = smov 0   ;;  %s3612_s30 = smov 0  }
   0xe   :  { %s3614_s20 = smov 0   ;;  %s3616_s21 = smov 0  }
   0xf LB: > { %4306 = sst [smem:[#allocation14_spill]] %s3484_s0  ;;  %s3631_s1 = sadd.s32 4294967295, %s3496_s21   ;;  %s3496_s21 = sphi %s3616_s21, %s4329_s21   ;;  %s3492_s20 = sphi %s3614_s20, %s4331_s20   ;;  %s3488_s30 = sphi %s3612_s30, %s4333_s30   ;;  %s3484_s0 = sphi %s3610_s0, %s4332_s0  }
  0x10   : > { %4307 = sst [smem:[#allocation15_spill]] %s3492_s20  ;;  %s2722_s22 = sadd.s32 4294967294, %s3496_s21  }
  0x11   : > { %s3635_s2 = sadd.s32 1, %s3496_s21   ;;  %s433_s23 = sadd.s32 1, %s3492_s20 }
  0x12   : > { %4308 = sst [smem:[#allocation16_spill]] %s3635_s2  ;;  %s430_s24 = ssub.s32 %s3496_s21, %s3635_s2 }
  0x13   : > { %p443_p0 = scmp.ne.s32.totalorder %s3492_s20, %s3488_s30  ;;  %p431_p1 = scmp.eq.s32.totalorder %s430_s24, 0 }
  0x14   : > { %p444_p2 = scmp.eq.s32.totalorder %s3631_s1, 1  ;;  %p449_p3 = scmp.ne.s32.totalorder %s3488_s30, %s3484_s0 }
  0x15   : > { %p450_p4 = scmp.eq.s32.totalorder %s2722_s22, 1  ;;  %p2723_p7 = scmp.ge.s32.totalorder %s3496_s21, 1 }
  0x16   : > { %s3646_s25 = scalar_select %p431_p1, %s3492_s20, %s433_s23  }
  0x17   : > { %p3648_p5 = por %p444_p2, %p443_p0  ;;  %p3652_p6 = por %p450_p4, %p449_p3 }
  0x18   : > { %4309 = sst [smem:[#allocation17_spill]] %s3646_s25  ;;  %p483_p8 = scmp.lt.s32.totalorder %s3496_s21, 3 }
  0x19   : > { %s4311_s26 = scalar_select %p3652_p6, 1, 0 }
  0x1a   : > { %p4296_p9 = scmp.eq.s32.totalorder %s3631_s1, 0  ;;  %p3659_p10 = pnand %p2723_p7, %p483_p8 }
  0x1b   : > { %4312 = sst [smem:[#allocation18_spill]] %s4311_s26  ;;  %s3498_s28 = smov [#allocation2]  }
  0x1c   : > { %s531_s29 = sshll.u32 %s3498_s28, 4  ;;  %p3119_p11 = pneg %p3659_p10  ;;  %s532_s29 = int_to_ptr.vmem [resolvable:$true] %s531_s29 }
  0x1d   : > { %s3499_s23 = smov [#allocation5]   ;;  %s3357_s25 = scalar_lea.vmem %s532_s29, 1024 }
  0x1e   : > { %p3667_p12 = pnand %p4296_p9, %p3119_p11  ;;  %s547_s24 = sshll.u32 %s3499_s23, 4  ;;  %s548_s24 = int_to_ptr.vmem [resolvable:$true] %s547_s24 }
  0x1f   : > { %p3358_p0 = scmp.ne.s32.totalorder %s532_s29, %s3357_s25  ;;  %p3365_p3 = scmp.lt.s32.totalorder %s532_s29, %s532_s29 }
  0x20   : > { %p3348_p13 = pneg %p3667_p12  ;;  %p3366_p4 = scmp.lt.s32.totalorder %s3357_s25, %s3357_s25 }
  0x22   : > { %p3360_p1 = pnand %p3358_p0, %p3348_p13  ;;  %p3367_p7 = por %p3366_p4, %p3365_p3 }
  0x24   : > { %p3361_p2 = pneg %p3360_p1 }
  0x26   : > { %p3368_p8 = pnand %p3367_p7, %p3361_p2 }
  0x28   : > { %3371 = shalt.err (!%p3368_p8)
}
  0x29   : > { %s3500_s28 = smov 64   ;;  %s3501_s20 = smov 4  }
  0x2a   : > { %s4315_s14 = sld [smem:[#allocation24_spill]]  ;;  %s3383_s26 = scalar_lea.vmem %s548_s24, 1024 }
  0x2b   : > { %p3384_p11 = scmp.ne.s32.totalorder %s548_s24, %s3383_s26  ;;  %p3391_p9 = scmp.lt.s32.totalorder %s548_s24, %s548_s24 }
  0x2c   : > { %p3392_p6 = scmp.lt.s32.totalorder %s3383_s26, %s3383_s26 }
  0x2d   : > { %p3386_p0 = pnand %p3384_p11, %p3348_p13 }
  0x2e   : > { %p3393_p3 = por %p3392_p6, %p3391_p9 }
  0x2f   : > { %p3387_p1 = pneg %p3386_p0 }
  0x30   : > { %3122 = dma.hbm_to_vmem [thread:$0]  (!%p3667_p12), %s4315_s14, 1024, %s532_s29, [#allocation3], %s3500_s28, %s3500_s28, %s3501_s20  }
  0x31   : > { %p3394_p2 = pnand %p3393_p3, %p3387_p1 }
  0x33   : > { %3397 = shalt.err (!%p3394_p2)
}
  0x34   : > { %s4316_s16 = sld [smem:[#allocation25_spill]]  ;;  %p4317_p4 = scmp.eq.s32.totalorder (!%p3659_p10), %s3631_s1, 0 }
  0x36   : > { %579 = sbr.rel (%p3659_p10) target bundleno = 4029 (0xfbd), region = 92 }
  0x3a   : > { %3125 = dma.hbm_to_vmem [thread:$0]  (!%p3667_p12), %s4316_s16, 1024, %s548_s24, [#allocation6], %s3500_s28, %s3500_s28, %s3501_s20  }
  0x3b   : > { %3467 = dma.done.wait (%p4317_p4), [#allocation3], 1024   ;;  %p4318_p13 = pmov %p4317_p4 }
  0x3c   : > { %p4319_p7 = pmov %p4317_p4 }
  0x3d   : > { %3469 = vsyncadd (%p4318_p13), [#allocation3], 4294966272 }
  0x3e   : > { %3471 = dma.done.wait (%p4319_p7), [#allocation6], 1024   ;;  %p4320_p6 = pmov %p4317_p4 }
  0x3f   : > { %v3502_v0 = vmov 0   ;;  %s4321_s2 = sld [smem:[#allocation21_spill]]  ;;  %p645_p9 = scmp.lt.s32.totalorder %s3631_s1, 1  ;;  %v3503_v18 = vmov 0.0   ;;  %vm3504_vm0 = vmmov 0   ;;  %v689_v19 = vlaneseq }
  0x40   : > { %3473 = vsyncadd (%p4320_p6), [#allocation6], 4294966272  ;;  %864 = vmatprep.mubr.bf16.mxu0 %v3502_v0  ;;  %s4322_s22 = sld [smem:[#allocation20_spill]]  ;;  %2967 = vmatprep.subr.bf16.mxu1 %v3503_v18  ;;  %vm917_vm1 = vcmask 261120   ;;  %s3505_s25 = smov 96   ;;  %vm972_vm2 = vcmask 64512  }
  0x41   : > { %s3726_s24 = scalar_select %p645_p9, %s3631_s1, 1  ;;  %2983 = vmatprep.mubr.msk.bf16.mxu1 %vm3504_vm0, %v3503_v18  ;;  %v3765_v20 = vshrl.u32 %v689_v19, 7  ;;  %vm988_vm3 = vcmask 1043456  }
  0x42   : > { %s4323_s23 = sld [smem:[#allocation22_spill]] }
  0x43   : > { %s2731_s20 = sshll.u32 %s3726_s24, 2  ;;  %v695_v21 = vsub.s32 1, %v3765_v20  ;;  %v691_v22 = vsub.s32 0, %v3765_v20  ;;  %s4324_s28 = sld [smem:[#allocation19_spill]] }
  0x44   : > { %s4325_s4 = sld [smem:[#allocation23_spill]] }
  0x45   : > { %v3180_v1 = vld [vmem:[%s4321_s2 + $0xac] ss:$12 sps:$4 sm:$0xff]   ;;  %v3182_v2 = vld [vmem:[%s4321_s2 + $0xa8] ss:$12 sps:$4 sm:$0xff]   ;;  %v3185_v4 = vld [vmem:[%s4321_s2 + $0x90] ss:$12 sps:$4 sm:$0xff]  }
  0x46   : > { %832 = vmatprep.subr.bf16.mxu0 %v3180_v1  ;;  %v3183_v3 = vld [vmem:[%s4321_s2 + $0x94] ss:$12 sps:$4 sm:$0xff]   ;;  %v3186_v5 = vld [vmem:[%s4321_s2 + $0x7c] ss:$12 sps:$4 sm:$0xff]   ;;  %v3188_v6 = vld [vmem:[%s4321_s2 + $0x78] ss:$12 sps:$4 sm:$0xff]   ;;  %s651_s16 = scalar_lea.vmem %s4322_s22, %s2731_s20 }
  0x47   : > { %833 = vmatpush1.bf16.msra.mxu0 %v3182_v2  ;;  %v3189_v7 = vld [vmem:[%s4321_s2 + $0x64] ss:$12 sps:$4 sm:$0xff]   ;;  %v3191_v8 = vld [vmem:[%s4321_s2 + $0x60] ss:$12 sps:$4 sm:$0xff]   ;;  %v3194_v10 = vld [vmem:[%s4321_s2 + $0x48] ss:$12 sps:$4 sm:$0xff]  }
  0x48   : > { %834 = vmatprep.subr.bf16.mxu0 %v3183_v3  ;;  %v3192_v9 = vld [vmem:[%s4321_s2 + $0x4c] ss:$12 sps:$4 sm:$0xff]   ;;  %v3195_v11 = vld [vmem:[%s4321_s2 + $0x34] ss:$12 sps:$4 sm:$0xff]   ;;  %v3197_v12 = vld [vmem:[%s4321_s2 + $0x30] ss:$12 sps:$4 sm:$0xff]  }
  0x49   : > { %v3198_v13 = vld [vmem:[%s4321_s2 + $0x1c] ss:$12 sps:$4 sm:$0xff]   ;;  %v3200_v14 = vld [vmem:[%s4321_s2 + $0x18] ss:$12 sps:$4 sm:$0xff]   ;;  %v3203_v16 = vld [vmem:[%s4321_s2] ss:$12 sps:$4 sm:$0xff]  }
  0x4a   : > { %v3201_v15 = vld [vmem:[%s4321_s2 + $0x4] ss:$12 sps:$4 sm:$0xff]   ;;  %v3756_v17 = vld [vmem:[%s651_s16] sm:$0xf]  ;;  %v3207_v38 = vld [vmem:[%s4321_s2 + $0x68] ss:$12 sps:$4 sm:$0xff]  }
  0x4b   : > { %835 = vmatpush1.bf16.msra.mxu0 %v3185_v4  ;;  %v3772_v23 = vld [vmem:[%s4323_s23] sm:$0x7]  ;;  %v3204_v35 = vld [vmem:[%s4321_s2 + $0xb0] ss:$12 sps:$4 sm:$0xff]   ;;  %v3205_v36 = vld [vmem:[%s4321_s2 + $0x98] ss:$12 sps:$4 sm:$0xff]   ;;  %s647_s23 = scalar_lea.vmem %s4324_s28, %s3726_s24 }
  0x4c   : > { %836 = vmatprep.subr.bf16.mxu0 %v3186_v5  ;;  %v696_v24 = vrot.slane %v3772_v23, %v695_v21  ;;  %v692_v26 = vrot.slane %v3772_v23, %v691_v22  ;;  %2968 = vmatpush3.bf16.msra.mxu1 %v3204_v35  ;;  %v3206_v37 = vld [vmem:[%s4321_s2 + $0x80] ss:$12 sps:$4 sm:$0xff]   ;;  %v3208_v39 = vld [vmem:[%s4321_s2 + $0x50] ss:$12 sps:$4 sm:$0xff]   ;;  %v3209_v40 = vld [vmem:[%s4321_s2 + $0x38] ss:$12 sps:$4 sm:$0xff]  }
  0x4d   : > { %2969 = vmatprep.subr.bf16.mxu1 %v3503_v18  ;;  %v3210_v41 = vld [vmem:[%s4321_s2 + $0x20] ss:$12 sps:$4 sm:$0xff]   ;;  %v3211_v42 = vld [vmem:[%s4321_s2 + $0x8] ss:$12 sps:$4 sm:$0xff]   ;;  %s3506_s24 = smov 64   ;;  %s3507_s16 = smov 32  }
  0x4e   : > { %v3839_v47 = vld [vmem:[%s647_s23] ss:$0 sm:$0xff]  ;;  %v3212_v35 = vld [vmem:[%s4325_s4 + $0x8] sm:$0xff]   ;;  %s4187_s20 = sand.u32 1, %s3488_s30  }
  0x4f   : > { %837 = vmatpush1.bf16.msra.mxu0 %v3188_v6  ;;  %s2730_s27 = sshll.u32 %s4187_s20, 2 }
  0x50   : > { %838 = vmatprep.subr.bf16.mxu0 %v3189_v7  ;;  %2970 = vmatpush3.bf16.msra.mxu1 %v3205_v36  ;;  %v699_v7 = vsub.s32 2, %v3765_v20  ;;  %s4193_s29 = scalar_lea.vmem [#allocation7], %s2730_s27  ;;  %s3508_s27 = smov [#allocation7]  }
  0x51   : > { %2971 = vmatprep.subr.bf16.mxu1 %v3503_v18  ;;  %s2591_s28 = sshll.u32 %s4193_s29, 4  ;;  %s3402_s14 = sshll.u32 %s3508_s27, 4  ;;  %s2592_s28 = int_to_ptr.vmem [resolvable:$true] %s2591_s28  ;;  %s3403_s14 = int_to_ptr.vmem [resolvable:$false] %s3402_s14 }
  0x52   : > { %s3398_s26 = scalar_lea.vmem %s2592_s28, 64  ;;  %s3404_s22 = scalar_lea.vmem %s3403_s14, 128 }
  0x53   : > { %839 = vmatpush1.bf16.msra.mxu0 %v3191_v8  ;;  %v700_v8 = vrot.slane %v3772_v23, %v699_v7  ;;  %p3399_p10 = scmp.ne.s32.totalorder %s2592_s28, %s3398_s26  ;;  %p3405_p11 = scmp.lt.s32.totalorder %s2592_s28, %s3403_s14 }
  0x54   : > { %840 = vmatprep.subr.bf16.mxu0 %v3192_v9  ;;  %2972 = vmatpush3.bf16.msra.mxu1 %v3206_v37  ;;  %v3213_v37 = vld [vmem:[%s4325_s4] sm:$0xff]   ;;  %p3406_p0 = scmp.lt.s32.totalorder %s3404_s22, %s3398_s26 }
  0x55   : > { %2973 = vmatprep.subr.bf16.mxu1 %v3503_v18  ;;  %p3400_p12 = pnand %p3399_p10, %p3648_p5 }
  0x56   : > { %p3407_p1 = por %p3406_p0, %p3405_p11 }
  0x57   : > { %841 = vmatpush1.bf16.msra.mxu0 %v3194_v10  ;;  %p3401_p8 = pneg %p3400_p12 }
  0x58   : > { %842 = vmatprep.subr.bf16.mxu0 %v3195_v11  ;;  %2974 = vmatpush3.bf16.msra.mxu1 %v3207_v38 }
  0x59   : > { %2975 = vmatprep.subr.bf16.mxu1 %v3503_v18  ;;  %p3408_p3 = pnand %p3407_p1, %p3401_p8 }
  0x5b   : > { %843 = vmatpush1.bf16.msra.mxu0 %v3197_v12 }
  0x5c   : > { %844 = vmatprep.subr.bf16.mxu0 %v3198_v13  ;;  %2976 = vmatpush3.bf16.msra.mxu1 %v3208_v39 }
  0x5d   : > { %2977 = vmatprep.subr.bf16.mxu1 %v3503_v18 }
  0x5f   : > { %845 = vmatpush1.bf16.msra.mxu0 %v3200_v14 }
  0x60   : > { %846 = vmatprep.subr.bf16.mxu0 %v3201_v15  ;;  %2978 = vmatpush3.bf16.msra.mxu1 %v3209_v40 }
  0x61   : > { %2979 = vmatprep.subr.bf16.mxu1 %v3503_v18 }
  0x63   : > { %847 = vmatpush1.bf16.msra.mxu0 %v3203_v16 }
  0x64   : > { %2987 = vmatprep.subr.bf16.mxu0 %v3503_v18  ;;  %2980 = vmatpush3.bf16.msra.mxu1 %v3210_v41 }
  0x65   : > { %2981 = vmatprep.subr.bf16.mxu1 %v3503_v18 }
  0x66   : > { %865 = vmatmul.mubr.bf16.vlgmr.msra.gmra.mxu0 %v3756_v17 }
  0x67   : > { %2989 = vmatprep.mubr.msk.bf16.mxu0 %vm3504_vm0, %v3503_v18 }
  0x68   : > { %2982 = vmatpush3.bf16.msra.mxu1 %v3211_v42 }
  0x69   : > { %2993 = vmatprep.subr.bf16.mxu1 %v3503_v18 }
  0x6b   : > { %2984 = vmatmul.mubr.bf16.vlgmr.msra.gmra.mxu1 %v3756_v17 }
  0x6c   : > { %2995 = vmatprep.mubr.msk.bf16.mxu1 %vm3504_vm0, %v3503_v18 }
 0x126   : > { %v866_v25 = vpop.f32.mrf.mxu0 }
 0x127   : > { %v867_v30 = vadd.f32 %v866_v25, %v692_v26  ;;  %v3214_v26 = vld [vmem:[%s4325_s4 + $0x18] sm:$0xff]  }
 0x128   : > { %v868_v27 = vpop.f32.mrf.mxu0 }
 0x129   : > { %v869_v28 = vadd.f32 %v868_v27, %v696_v24  ;;  %v3786_v34 = vpack.c.bf16 %v867_v30, %v867_v30  ;;  %v3215_v27 = vld [vmem:[%s4325_s4 + $0x10] sm:$0xff]  }
 0x12a   : > { %v870_v29 = vpop.f32.mrf.mxu0 }
 0x12b   : > { %v3780_v31 = vpack.c.bf16 %v869_v28, %v869_v28  ;;  %v907_v1 = vpop.f32.mrf.mxu1 }
 0x12c   : > { %v871_v32 = vpop.f32.mrf.mxu0  ;;  %v908_v9 = vadd.f32 %v907_v1, %v700_v8 }
 0x12d   : > { %1041 = vrot.lane.b32.xlu0 %v3780_v31, %s3505_s25  ;;  %v922_v33 = vsel %vm917_vm1, %v3780_v31, 0  ;;  %v2985_v2 = vpop.f32.mrf.mxu1 }
 0x12e   : > { %2988 = vmatpush3.bf16.xpose.msra.mxu0 %v922_v33  ;;  %v3850_v10 = vpack.c.bf16 %v908_v9, %v908_v9 }
 0x12f   : > { %2999 = vmatprep.subr.bf16.mxu0 %v3503_v18  ;;  %v910_v3 = vpop.f32.mrf.mxu1 }
 0x130   : > { %v990_v11 = vsel %vm988_vm3, %v3850_v10, 0 }
 0x131   : > { %1038 = vrot.lane.b32.xlu0 %v3786_v34, %s3505_s25  ;;  %v2986_v4 = vpop.f32.mrf.mxu1  ;;  %2994 = vmatpush3.bf16.msra.mxu1 %v990_v11 }
 0x132   : > { %3005 = vmatprep.subr.bf16.mxu1 %v3503_v18 }
 0x135   : > { %2990 = vmatmul.mubr.msk.bf16.vlgmr.msra.gmra.mxu0 %vm917_vm1, %v3786_v34 }
 0x136   : > { %3001 = vmatprep.mubr.msk.bf16.mxu0 %vm3504_vm0, %v3503_v18 }
 0x19f   : > { %v1042_v43 = vpop.permute.xlu0 %1041 }
 0x1a0   : > { %v1047_v44 = vsel %vm917_vm1, %v1042_v43, 0 }
 0x1a1   : > { %3000 = vmatpush3.bf16.xpose.msra.mxu0 %v1047_v44 }
 0x1a2   : > { %3011 = vmatprep.subr.bf16.mxu0 %v3503_v18 }
 0x1a3   : > { %v1039_v45 = vpop.permute.xlu0 %1038 }
 0x1a8   : > { %3002 = vmatmul.mubr.msk.bf16.vlgmr.msra.gmra.mxu0 %vm917_vm1, %v1039_v45 }
 0x1a9   : > { %3015 = vmatprep.mubr.msk.bf16.mxu0 %vm3504_vm0, %v3503_v18  ;;  %3012 = vmatpush3.bf16.msra.mxu0 %v3214_v26 }
 0x1aa   : > { %3013 = vmatprep.subr.bf16.mxu0 %v3503_v18 }
 0x1ad   : > { %3014 = vmatpush3.bf16.msra.mxu0 %v3215_v27 }
 0x1ae   : > { %3027 = vmatprep.subr.bf16.mxu0 %v3503_v18 }
 0x1f5   : > { %v958_v46 = vpop.f32.mrf.mxu0 }
 0x1f6   : > { %v964_v48 = vmul.f32 0.17677669, %v958_v46 }
 0x1f7   : > { %v2991_v49 = vpop.f32.mrf.mxu0 }
 0x1f8   : > { %v971_v50 = vadd.f32 %v3839_v47, %v964_v48 }
 0x1f9   : > { %v961_v51 = vpop.f32.mrf.mxu0 }
 0x1fa   : > { %v973_v52 = vsel %vm972_vm2, %v971_v50, -inf }
 0x1fb   : > { %974 = vmax.xlane.f32.xlu1 %v973_v52  ;;  %v2992_v53 = vpop.f32.mrf.mxu0 }
 0x268   : > { %v1083_v54 = vpop.f32.mrf.mxu0 }
 0x269   : > { %v1089_v55 = vmul.f32 0.17677669, %v1083_v54 }
 0x26a   : > { %v3003_v56 = vpop.f32.mrf.mxu0 }
 0x26b   : > { %v1090_v57 = vadd.f32 %v3839_v47, %v1089_v55 }
 0x26c   : > { %v1086_v58 = vpop.f32.mrf.mxu0 }
 0x26d   : > { %v1091_v59 = vsel %vm972_vm2, %v1090_v57, -inf }
 0x26e   : > { %1092 = vmax.xlane.f32.xlu1 %v1091_v59  ;;  %v3004_v60 = vpop.f32.mrf.mxu0 }
 0x284   : > { %v975_v61 = vpop.xlane.xlu1 %974 }
 0x285   : > { %v976_v62 = vsub.f32 %v971_v50, %v975_v61 }
 0x287   : > { %v977_v63 = vmul.f32 1.442695, %v976_v62 }
 0x289   : > { %3316 = vpow2.f32 %v977_v63 }
 0x296   : > { %v3317_v5 = vpop.eup %3316 }
 0x297   : > { %v979_v6 = vsel %vm972_vm2, %v3317_v5, 0.0 }
 0x298   : > { %980 = vadd.xlane.f32.xlu0 %v979_v6 }
 0x2ae   : > { %1331 = vrot.lane.b32.xlu0 %v3850_v10, %s3506_s24 }
 0x2f7   : > { %v1093_v12 = vpop.xlane.xlu1 %1092 }
 0x2f8   : > { %v1094_v13 = vsub.f32 %v1090_v57, %v1093_v12 }
 0x2fa   : > { %v1095_v14 = vmul.f32 1.442695, %v1094_v13  ;;  %v3216_v13 = vld [vmem:[%s4325_s4 + $0x28] sm:$0xff]  }
 0x2fc   : > { %3318 = vpow2.f32 %v1095_v14 }
 0x309   : > { %v3319_v15 = vpop.eup %3318 }
 0x30a   : > { %v1097_v16 = vsel %vm972_vm2, %v3319_v15, 0.0 }
 0x30b   : > { %1098 = vadd.xlane.f32.xlu1 %v1097_v16 }
 0x31c   : > { %1104 = vrot.lane.b32.xlu1 %v3850_v10, %s3505_s25  ;;  %s2574_s25 = scalar_lea.sflag [#allocation4], %s4187_s20 }
 0x320   : > { %1269 = vrot.lane.b32.xlu1 %v3780_v31, %s3506_s24 }
 0x321   : > { %v981_v19 = vpop.xlane.xlu0 %980 }
 0x322   : > { %3320 = vrcp.f32 %v981_v19 }
 0x324   : > { %1267 = vrot.lane.b32.xlu1 %v3786_v34, %s3506_s24 }
 0x325   : > { %v1332_v38 = vpop.permute.xlu0 %1331 }
 0x326   : > { %v1337_v42 = vsel %vm988_vm3, %v1332_v38, 0 }
 0x32f   : > { %v3321_v23 = vpop.eup %3320 }
 0x330   : > { %v983_v24 = vmul.f32 %v3321_v23, %v3317_v5 }
 0x332   : > { %v984_v25 = vpack.c.bf16 %v983_v24, %v983_v24 }
 0x334   : > { %2996 = vmatmul.mubr.msk.bf16.vlgmr.msra.gmra.mxu1 %vm972_vm2, %v984_v25 }
 0x335   : > { %3007 = vmatprep.mubr.msk.bf16.mxu1 %vm3504_vm0, %v3503_v18 }
 0x394   : > { %v1099_v28 = vpop.xlane.xlu1 %1098 }
 0x395   : > { %3322 = vrcp.f32 %v1099_v28 }
 0x398   : > { %v1105_v29 = vpop.permute.xlu1 %1104 }
 0x399   : > { %v1110_v30 = vsel %vm988_vm3, %v1105_v29, 0 }
 0x39a   : > { %3006 = vmatpush3.bf16.msra.mxu1 %v1110_v30 }
 0x39b   : > { %3019 = vmatprep.subr.bf16.mxu1 %v3503_v18 }
 0x39c   : > { %v1270_v45 = vpop.permute.xlu1 %1269 }
 0x39d   : > { %v1275_v50 = vsel %vm917_vm1, %v1270_v45, 0 }
 0x3a0   : > { %v1268_v53 = vpop.permute.xlu1 %1267 }
 0x3a2   : > { %v3323_v32 = vpop.eup %3322 }
 0x3a3   : > { %v1101_v33 = vmul.f32 %v3323_v32, %v3319_v15 }
 0x3a5   : > { %v1102_v36 = vpack.c.bf16 %v1101_v33, %v1101_v33 }
 0x3a7   : > { %3008 = vmatmul.mubr.msk.bf16.vlgmr.msra.gmra.mxu1 %vm972_vm2, %v1102_v36 }
 0x3a8   : > { %3020 = vmatpush3.bf16.msra.mxu1 %v3212_v35  ;;  %3023 = vmatprep.mubr.msk.bf16.mxu1 %vm3504_vm0, %v3503_v18 }
 0x3a9   : > { %3021 = vmatprep.subr.bf16.mxu1 %v3503_v18 }
 0x3ac   : > { %3022 = vmatpush3.bf16.msra.mxu1 %v3213_v37 }
 0x3ad   : > { %3033 = vmatprep.subr.bf16.mxu1 %v3503_v18 }
 0x3f4   : > { %v1026_v39 = vpop.f32.mrf.mxu1 }
 0x3f5   : > { %v1032_v40 = vpack.c.bf16 %v1026_v39, %v1026_v39 }
 0x3f6   : > { %v2997_v41 = vpop.f32.mrf.mxu1 }
 0x3f7   : > { %3024 = vmatmul.mubr.msk.bf16.vlgmr.msra.gmra.mxu1 %vm917_vm1, %v1032_v40 }
 0x3f8   : > { %3034 = vmatpush3.bf16.msra.mxu1 %v1337_v42  ;;  %v1029_v43 = vpop.f32.mrf.mxu1  ;;  %3035 = vmatprep.mubr.msk.bf16.mxu1 %vm3504_vm0, %v3503_v18 }
 0x3f9   : > { %3047 = vmatprep.subr.bf16.mxu1 %v3503_v18 }
 0x3fa   : > { %v2998_v44 = vpop.f32.mrf.mxu1 }
 0x467   : > { %v1146_v46 = vpop.f32.mrf.mxu1 }
 0x468   : > { %v1152_v48 = vpack.c.bf16 %v1146_v46, %v1146_v46 }
 0x469   : > { %v3009_v49 = vpop.f32.mrf.mxu1 }
 0x46a   : > { %3016 = vmatmul.mubr.msk.bf16.vlgmr.msra.gmra.mxu0 %vm917_vm1, %v1152_v48  ;;  %v3218_v49 = vld [vmem:[%s4325_s4 + $0x38] sm:$0xff]  }
 0x46b   : > { %3028 = vmatpush3.bf16.xpose.msra.mxu0 %v1275_v50  ;;  %v1149_v51 = vpop.f32.mrf.mxu1  ;;  %3029 = vmatprep.mubr.msk.bf16.mxu0 %vm3504_vm0, %v3503_v18 }
 0x46c   : > { %3039 = vmatprep.subr.bf16.mxu0 %v3503_v18 }
 0x46d   : > { %v3010_v52 = vpop.f32.mrf.mxu1 }
 0x472   : > { %3030 = vmatmul.mubr.msk.bf16.vlgmr.msra.gmra.mxu0 %vm917_vm1, %v1268_v53 }
 0x473   : > { %3043 = vmatprep.mubr.msk.bf16.mxu0 %vm3504_vm0, %v3503_v18  ;;  %3040 = vmatpush3.bf16.msra.mxu0 %v3216_v13  ;;  %v3231_v13 = vld [vmem:[%s4279_s8 + $0xcc] ss:$16 sps:$4 sm:$0xff]  }
 0x474   : > { %3041 = vmatprep.subr.bf16.mxu0 %v3503_v18 }
 0x4b7   : > { %v3898_v54 = vpop.f32.mrf.mxu1 }
 0x4b9   : > { %v3025_v55 = vpop.f32.mrf.mxu1 }
 0x4bb   : > { %v1264_v56 = vpop.f32.mrf.mxu1 }
 0x4bc   : > { %v3219_v56 = vld [vmem:[%s4325_s4 + $0x30] sm:$0xff]  }
 0x4bd   : > { %v3026_v57 = vpop.f32.mrf.mxu1 }
 0x52a   : > { %v3900_v58 = vpop.f32.mrf.mxu0 }
 0x52b   : > { %v1262_v44 = vadd.f32 %v3898_v54, %v3900_v58 }
 0x52c   : > { %v3017_v59 = vpop.f32.mrf.mxu0 }
 0x52e   : > { %v1209_v60 = vpop.f32.mrf.mxu0 }
 0x530   : > { %v3018_v61 = vpop.f32.mrf.mxu0 }
 0x532   : > { %v1311_v62 = vpop.f32.mrf.mxu0 }
 0x533   : > { %v1317_v63 = vmul.f32 0.17677669, %v1311_v62 }
 0x534   : > { %v3031_v1 = vpop.f32.mrf.mxu0 }
 0x535   : > { %v1318_v2 = vadd.f32 %v3839_v47, %v1317_v63  ;;  %v2777_v63 = vld [vmem:[%s4276_s5] ss:$0 sm:$0xff] }
 0x536   : > { %v1314_v3 = vpop.f32.mrf.mxu0 }
 0x537   : > { %v1319_v4 = vsel %vm972_vm2, %v1318_v2, -inf }
 0x538   : > { %1320 = vmax.xlane.f32.xlu1 %v1319_v4  ;;  %v3032_v5 = vpop.f32.mrf.mxu0 }
 0x5c1   : > { %v1321_v6 = vpop.xlane.xlu1 %1320 }
 0x5c2   : > { %v1322_v8 = vsub.f32 %v1318_v2, %v1321_v6  ;;  %v654_v2 = vunpack.c.l.bf16 %v3756_v17  ;;  %v3225_v17 = vld [vmem:[%s4279_s8 + $0xec] ss:$16 sps:$4 sm:$0xff]  }
 0x5c4   : > { %v1323_v9 = vmul.f32 1.442695, %v1322_v8 }
 0x5c6   : > { %3324 = vpow2.f32 %v1323_v9  ;;  %v3220_v9 = vld [vmem:[%s4279_s8 + $0xe0] ss:$16 sps:$4 sm:$0xff]  }
 0x5d3   : > { %v3325_v11 = vpop.eup %3324 }
 0x5d4   : > { %v1325_v12 = vsel %vm972_vm2, %v3325_v11, 0.0 }
 0x5d5   : > { %1326 = vadd.xlane.f32.xlu0 %v1325_v12  ;;  %v3228_v12 = vld [vmem:[%s4279_s8 + $0xc4] ss:$16 sps:$4 sm:$0xff]  }
 0x5eb   : > { %1442 = vrot.lane.b32.xlu0 %v3780_v31, %s3507_s16 }
 0x5ef   : > { %1440 = vrot.lane.b32.xlu0 %v3786_v34, %s3507_s16  ;;  %v3217_v34 = vld [vmem:[%s4325_s4 + $0x20] sm:$0xff]  }
 0x5f0   : > { %3042 = vmatpush3.bf16.msra.mxu0 %v3217_v34  ;;  %v3237_v34 = vld [vmem:[%s4279_s8 + $0xac] ss:$16 sps:$4 sm:$0xff]  }
 0x5f1   : > { %3053 = vmatprep.subr.bf16.mxu0 %v3503_v18 }
 0x65e   : > { %v1327_v14 = vpop.xlane.xlu0 %1326 }
 0x65f   : > { %3326 = vrcp.f32 %v1327_v14  ;;  %v3226_v14 = vld [vmem:[%s4279_s8 + $0xc0] ss:$16 sps:$4 sm:$0xff]  }
 0x662   : > { %v1443_v19 = vpop.permute.xlu0 %1442 }
 0x663   : > { %v1448_v24 = vsel %vm917_vm1, %v1443_v19, 0 }
 0x666   : > { %v1441_v31 = vpop.permute.xlu0 %1440 }
 0x66c   : > { %v3327_v15 = vpop.eup %3326 }
 0x66d   : > { %v1329_v16 = vmul.f32 %v3327_v15, %v3325_v11  ;;  %v3223_v11 = vld [vmem:[%s4279_s8 + $0xe8] ss:$16 sps:$4 sm:$0xff]  }
 0x66e   : > { %v3229_v15 = vld [vmem:[%s4279_s8 + $0xc8] ss:$16 sps:$4 sm:$0xff]  }
 0x66f   : > { %v1330_v23 = vpack.c.bf16 %v1329_v16, %v1329_v16 }
 0x671   : > { %3036 = vmatmul.mubr.msk.bf16.vlgmr.msra.gmra.mxu1 %vm972_vm2, %v1330_v23 }
 0x672   : > { %3048 = vmatpush3.bf16.xpose.msra.mxu1 %v1448_v24  ;;  %3049 = vmatprep.mubr.msk.bf16.mxu1 %vm3504_vm0, %v3503_v18 }
 0x673   : > { %3059 = vmatprep.subr.bf16.mxu1 %v3503_v18 }
 0x679   : > { %3050 = vmatmul.mubr.msk.bf16.vlgmr.msra.gmra.mxu1 %vm917_vm1, %v1441_v31  ;;  %v3234_v31 = vld [vmem:[%s4279_s8 + $0xa4] ss:$16 sps:$4 sm:$0xff]  }
 0x67a   : > { %3063 = vmatprep.mubr.msk.bf16.mxu1 %vm3504_vm0, %v3503_v18  ;;  %3060 = vmatpush3.bf16.msra.mxu1 %v3218_v49 }
 0x67b   : > { %3061 = vmatprep.subr.bf16.mxu1 %v3503_v18 }
 0x67e   : > { %3062 = vmatpush3.bf16.msra.mxu1 %v3219_v56 }
 0x67f   : > { %1906 = vmatprep.subr.bf16.mxu1 %v3225_v17  ;;  %v3284_v17 = vld [vmem:[%s4281_s10 + $0x58] sm:$0xff]  }
 0x731   : > { %v1373_v25 = vpop.f32.mrf.mxu1 }
 0x732   : > { %v1379_v26 = vpack.c.bf16 %v1373_v25, %v1373_v25  ;;  %v3232_v25 = vld [vmem:[%s4279_s8 + $0xa0] ss:$16 sps:$4 sm:$0xff]  }
 0x733   : > { %v3037_v27 = vpop.f32.mrf.mxu1 }
 0x734   : > { %3044 = vmatmul.mubr.msk.bf16.vlgmr.msra.gmra.mxu0 %vm917_vm1, %v1379_v26  ;;  %v3235_v26 = vld [vmem:[%s4279_s8 + $0xa8] ss:$16 sps:$4 sm:$0xff]   ;;  %v3238_v27 = vld [vmem:[%s4279_s8 + $0x80] ss:$16 sps:$4 sm:$0xff]  }
 0x735   : > { %v1376_v28 = vpop.f32.mrf.mxu1  ;;  %3055 = vmatprep.mubr.msk.bf16.mxu0 %vm3504_vm0, %v3503_v18 }
 0x736   : > { %v3240_v28 = vld [vmem:[%s4279_s8 + $0x84] ss:$16 sps:$4 sm:$0xff]  }
 0x737   : > { %v3038_v29 = vpop.f32.mrf.mxu1 }
 0x738   : > { %v3241_v29 = vld [vmem:[%s4279_s8 + $0x88] ss:$16 sps:$4 sm:$0xff]  }
 0x739   : > { %v1484_v30 = vpop.f32.mrf.mxu1 }
 0x73a   : > { %v1490_v32 = vmul.f32 0.17677669, %v1484_v30  ;;  %v3243_v30 = vld [vmem:[%s4279_s8 + $0x8c] ss:$16 sps:$4 sm:$0xff]  }
 0x73b   : > { %v3051_v33 = vpop.f32.mrf.mxu1 }
 0x73c   : > { %v1491_v35 = vadd.f32 %v3839_v47, %v1490_v32  ;;  %v3246_v32 = vld [vmem:[%s4279_s8 + $0x64] ss:$16 sps:$4 sm:$0xff]   ;;  %v3249_v33 = vld [vmem:[%s4279_s8 + $0x6c] ss:$16 sps:$4 sm:$0xff]  }
 0x73d   : > { %v1487_v36 = vpop.f32.mrf.mxu1 }
 0x73e   : > { %v1492_v37 = vsel %vm972_vm2, %v1491_v35, -inf  ;;  %v3247_v36 = vld [vmem:[%s4279_s8 + $0x68] ss:$16 sps:$4 sm:$0xff]  }
 0x73f   : > { %1493 = vmax.xlane.f32.xlu0 %v1492_v37  ;;  %v3052_v38 = vpop.f32.mrf.mxu1  ;;  %v3252_v37 = vld [vmem:[%s4279_s8 + $0x44] ss:$16 sps:$4 sm:$0xff]  }
 0x740   : > { %v3255_v38 = vld [vmem:[%s4279_s8 + $0x4c] ss:$16 sps:$4 sm:$0xff]  }
 0x7c8   : > { %v1494_v39 = vpop.xlane.xlu0 %1493 }
 0x7c9   : > { %v1495_v40 = vsub.f32 %v1491_v35, %v1494_v39  ;;  %v3244_v35 = vld [vmem:[%s4279_s8 + $0x60] ss:$16 sps:$4 sm:$0xff]  }
 0x7ca   : > { %v3250_v39 = vld [vmem:[%s4279_s8 + $0x40] ss:$16 sps:$4 sm:$0xff]  }
 0x7cb   : > { %v1496_v41 = vmul.f32 1.442695, %v1495_v40  ;;  %v3253_v40 = vld [vmem:[%s4279_s8 + $0x48] ss:$16 sps:$4 sm:$0xff]  }
 0x7cd   : > { %3328 = vpow2.f32 %v1496_v41  ;;  %v3258_v41 = vld [vmem:[%s4279_s8 + $0x24] ss:$16 sps:$4 sm:$0xff]  }
 0x7da   : > { %v3329_v42 = vpop.eup %3328 }
 0x7db   : > { %v1498_v43 = vsel %vm972_vm2, %v3329_v42, 0.0 }
 0x7dc   : > { %1499 = vadd.xlane.f32.xlu1 %v1498_v43  ;;  %v3256_v43 = vld [vmem:[%s4279_s8 + $0x20] ss:$16 sps:$4 sm:$0xff]  }
 0x7ed   : > { %1504 = vrot.lane.b32.xlu1 %v3850_v10, %s3507_s16  ;;  %s2864_s16 = sshll.u32 %s3631_s1, 6 }
 0x7ee   : > { %s2589_s0 = scalar_lea.hbm %s4289_s18, %s2864_s16 }
 0x7f4   : > { %v1433_v47 = vpop.f32.mrf.mxu0 }
 0x7f5   : > { %v1439_v45 = vadd.f32 %v1433_v47, %v1262_v44  ;;  %v3259_v44 = vld [vmem:[%s4279_s8 + $0x28] ss:$16 sps:$4 sm:$0xff]   ;;  %v3264_v47 = vld [vmem:[%s4279_s8 + $0x4] ss:$16 sps:$4 sm:$0xff]  }
 0x7f6   : > { %v3045_v46 = vpop.f32.mrf.mxu0 }
 0x7f7   : > { %v3262_v46 = vld [vmem:[%s4279_s8] ss:$16 sps:$4 sm:$0xff]  }
 0x7f8   : > { %v1436_v48 = vpop.f32.mrf.mxu0 }
 0x7f9   : > { %v3265_v48 = vld [vmem:[%s4279_s8 + $0x8] ss:$16 sps:$4 sm:$0xff]  }
 0x7fa   : > { %v3046_v50 = vpop.f32.mrf.mxu0 }
 0x865   : > { %v1500_v51 = vpop.xlane.xlu1 %1499 }
 0x866   : > { %3330 = vrcp.f32 %v1500_v51 }
 0x869   : > { %v1505_v52 = vpop.permute.xlu1 %1504 }
 0x86a   : > { %v1510_v10 = vsel %vm988_vm3, %v1505_v52, 0 }
 0x86b   : > { %3054 = vmatpush3.bf16.msra.mxu0 %v1510_v10  ;;  %v2778_v10 = vld [vmem:[%s4277_s6] ss:$0 sm:$0xff] }
 0x873   : > { %v3331_v53 = vpop.eup %3330 }
 0x874   : > { %v1502_v54 = vmul.f32 %v3331_v53, %v3329_v42  ;;  %v3261_v42 = vld [vmem:[%s4279_s8 + $0x2c] ss:$16 sps:$4 sm:$0xff]  }
 0x876   : > { %v1503_v55 = vpack.c.bf16 %v1502_v54, %v1502_v54  ;;  %v2779_v54 = vld [vmem:[%s4278_s7] ss:$0 sm:$0xff] }
 0x878   : > { %3056 = vmatmul.mubr.msk.bf16.vlgmr.msra.gmra.mxu0 %vm972_vm2, %v1503_v55 }
 0x879   : > { %1897 = vmatprep.mubr.bf16.mxu0 %v3502_v0 }
 0x938   : > { %v1546_v57 = vpop.f32.mrf.mxu0 }
 0x939   : > { %v1552_v58 = vpack.c.bf16 %v1546_v57, %v1546_v57 }
 0x93a   : > { %v3057_v59 = vpop.f32.mrf.mxu0 }
 0x93b   : > { %3064 = vmatmul.mubr.msk.bf16.vlgmr.msra.gmra.mxu1 %vm917_vm1, %v1552_v58  ;;  %v3268_v58 = vld [vmem:[%s4281_s10 + $0x78] sm:$0xff]  }
 0x93c   : > { %v1549_v60 = vpop.f32.mrf.mxu0  ;;  %1938 = vmatprep.mubr.bf16.mxu1 %v3502_v0  ;;  %v3222_v0 = vld [vmem:[%s4279_s8 + $0xe4] ss:$16 sps:$4 sm:$0xff]   ;;  %1907 = vmatpush1.bf16.msra.mxu1 %v3223_v11  ;;  %v3269_v59 = vld [vmem:[%s4281_s10 + $0xf8] sm:$0xff]  }
 0x93d   : > { %1865 = vmatprep.subr.bf16.mxu0 %v3222_v0  ;;  %1908 = vmatprep.subr.bf16.mxu1 %v3231_v13  ;;  %v3270_v60 = vld [vmem:[%s4281_s10 + $0x38] sm:$0xff]   ;;  %v3282_v0 = vld [vmem:[%s4281_s10 + $0x20] sm:$0xff]  }
 0x93e   : > { %v3058_v61 = vpop.f32.mrf.mxu0  ;;  %1866 = vmatpush1.bf16.msra.mxu0 %v3220_v9  ;;  %v3281_v9 = vld [vmem:[%s4281_s10 + $0xe0] sm:$0xff]   ;;  %v3286_v13 = vld [vmem:[%s4281_s10 + $0x18] sm:$0xff]  }
 0x93f   : > { %1867 = vmatprep.subr.bf16.mxu0 %v3228_v12  ;;  %v3271_v61 = vld [vmem:[%s4281_s10 + $0xb8] sm:$0xff]   ;;  %v3283_v11 = vld [vmem:[%s4281_s10 + $0xa0] sm:$0xff]  }
 0x940   : > { %1909 = vmatpush1.bf16.msra.mxu1 %v3229_v15  ;;  %v3285_v12 = vld [vmem:[%s4281_s10 + $0xd8] sm:$0xff]   ;;  %v3288_v15 = vld [vmem:[%s4281_s10 + $0x50] sm:$0xff]  }
 0x941   : > { %1910 = vmatprep.subr.bf16.mxu1 %v3237_v34  ;;  %v3294_v34 = vld [vmem:[%s4281_s10 + $0x8] sm:$0xff]  }
 0x942   : > { %1868 = vmatpush1.bf16.msra.mxu0 %v3226_v14  ;;  %v3287_v14 = vld [vmem:[%s4281_s10 + $0x98] sm:$0xff]  }
 0x943   : > { %1869 = vmatprep.subr.bf16.mxu0 %v3234_v31  ;;  %v3293_v31 = vld [vmem:[%s4281_s10 + $0xc8] sm:$0xff]  }
 0x944   : > { %1911 = vmatpush1.bf16.msra.mxu1 %v3235_v26  ;;  %v3296_v26 = vld [vmem:[%s4281_s10 + $0x40] sm:$0xff]  }
 0x945   : > { %1912 = vmatprep.subr.bf16.mxu1 %v3243_v30  ;;  %v1683_v30 = vld [vmem:[%s4280_s9] sm:$0xf] }
 0x946   : > { %1870 = vmatpush1.bf16.msra.mxu0 %v3232_v25  ;;  %v3295_v25 = vld [vmem:[%s4281_s10 + $0x88] sm:$0xff]  }
 0x947   : > { %1871 = vmatprep.subr.bf16.mxu0 %v3240_v28  ;;  %v3298_v28 = vld [vmem:[%s4281_s10] sm:$0xff]  }
 0x948   : > { %1913 = vmatpush1.bf16.msra.mxu1 %v3241_v29  ;;  %v3299_v29 = vld [vmem:[%s4281_s10 + $0x80] sm:$0xff]  }
 0x949   : > { %1914 = vmatprep.subr.bf16.mxu1 %v3249_v33  ;;  %v1688_v33 = vrot.slane %v1683_v30, %v691_v22 }
 0x94a   : > { %1872 = vmatpush1.bf16.msra.mxu0 %v3238_v27  ;;  %v3297_v27 = vld [vmem:[%s4281_s10 + $0xc0] sm:$0xff]  }
 0x94b   : > { %1873 = vmatprep.subr.bf16.mxu0 %v3246_v32  ;;  %v1699_v32 = vsub.s32 3, %v3765_v20 }
 0x94c   : > { %1915 = vmatpush1.bf16.msra.mxu1 %v3247_v36  ;;  %v1692_v36 = vrot.slane %v1683_v30, %v695_v21 }
 0x94d   : > { %1916 = vmatprep.subr.bf16.mxu1 %v3255_v38 }
 0x94e   : > { %1874 = vmatpush1.bf16.msra.mxu0 %v3244_v35  ;;  %v1696_v35 = vrot.slane %v1683_v30, %v699_v7 }
 0x94f   : > { %1875 = vmatprep.subr.bf16.mxu0 %v3252_v37  ;;  %v1700_v37 = vrot.slane %v1683_v30, %v1699_v32 }
 0x950   : > { %1917 = vmatpush1.bf16.msra.mxu1 %v3253_v40 }
 0x951   : > { %1918 = vmatprep.subr.bf16.mxu1 %v3261_v42 }
 0x952   : > { %1876 = vmatpush1.bf16.msra.mxu0 %v3250_v39 }
 0x953   : > { %1877 = vmatprep.subr.bf16.mxu0 %v3258_v41 }
 0x954   : > { %1919 = vmatpush1.bf16.msra.mxu1 %v3259_v44 }
 0x956   : > { %1878 = vmatpush1.bf16.msra.mxu0 %v3256_v43 }
 0x957   : > { %1879 = vmatprep.subr.bf16.mxu0 %v3264_v47 }
 0x95a   : > { %1880 = vmatpush1.bf16.msra.mxu0 %v3262_v46 }
 0x95b   : > { %2905 = vmatprep.subr.bf16.mxu0 %v3268_v58 }
 0x9fb   : > { %v1606_v62 = vpop.f32.mrf.mxu1 }
 0x9fc   : > { %v1612_v1 = vadd.f32 %v1606_v62, %v1439_v45  ;;  %v3267_v45 = vld [vmem:[%s4279_s8 + $0xc] ss:$16 sps:$4 sm:$0xff]   ;;  %v3272_v62 = vld [vmem:[%s4281_s10 + $0x70] sm:$0xff]  }
 0x9fd   : > { %v3065_v3 = vpop.f32.mrf.mxu1  ;;  %1920 = vmatprep.subr.bf16.mxu1 %v3267_v45 }
 0x9fe   : > { %v1620_v4 = vadd.f32 %v2777_v63, %v1612_v1  ;;  %1921 = vmatpush1.bf16.msra.mxu1 %v3265_v48  ;;  %v3273_v63 = vld [vmem:[%s4281_s10 + $0xf0] sm:$0xff]   ;;  %v3276_v3 = vld [vmem:[%s4281_s10 + $0x68] sm:$0xff]  }
 0x9ff   : > { %v1609_v5 = vpop.f32.mrf.mxu1  ;;  %2927 = vmatprep.subr.bf16.mxu1 %v3269_v59  ;;  %v3274_v1 = vld [vmem:[%s4281_s10 + $0x30] sm:$0xff]  }
 0xa00   : > { %v1621_v6 = vadd.f32 %v1620_v4, %v654_v2  ;;  %v3275_v2 = vld [vmem:[%s4281_s10 + $0xb0] sm:$0xff]   ;;  %v3277_v4 = vld [vmem:[%s4281_s10 + $0xe8] sm:$0xff]  }
 0xa01   : > { %v3066_v8 = vpop.f32.mrf.mxu1  ;;  %v3278_v5 = vld [vmem:[%s4281_s10 + $0x28] sm:$0xff]  }
 0xa02   : > { %1624 = vadd.xlane.f32.xlu1 %v1621_v6  ;;  %v3280_v8 = vld [vmem:[%s4281_s10 + $0x60] sm:$0xff]  }
 0xa8b   : > { %v1625_v16 = vpop.xlane.xlu1 %1624 }
 0xa8c   : > { %v1627_v19 = vmul.f32 0.0078125, %v1625_v16  ;;  %v3289_v16 = vld [vmem:[%s4281_s10 + $0xd0] sm:$0xff]  }
 0xa8e   : > { %v1628_v23 = vsub.f32 %v1621_v6, %v1627_v19  ;;  %v3279_v6 = vld [vmem:[%s4281_s10 + $0xa8] sm:$0xff]   ;;  %v3290_v19 = vld [vmem:[%s4281_s10 + $0x10] sm:$0xff]  }
 0xa90   : > { %v1629_v24 = vmul.f32 %v1628_v23, %v1628_v23 }
 0xa92   : > { %1630 = vadd.xlane.f32.xlu0 %v1629_v24  ;;  %v3292_v24 = vld [vmem:[%s4281_s10 + $0x48] sm:$0xff]  }
 0xb1b   : > { %v1631_v49 = vpop.xlane.xlu0 %1630 }
 0xb1c   : > { %v1632_v50 = vmul.f32 0.0078125, %v1631_v49 }
 0xb1e   : > { %v1633_v51 = vadd.f32 1e-12, %v1632_v50 }
 0xb20   : > { %3332 = vrsqrt.f32 %v1633_v51 }
 0xb2d   : > { %v3333_v52 = vpop.eup %3332 }
 0xb2e   : > { %v1635_v53 = vmul.f32 %v3333_v52, %v1628_v23  ;;  %v3291_v23 = vld [vmem:[%s4281_s10 + $0x90] sm:$0xff]  }
 0xb30   : > { %v1642_v55 = vmul.f32 %v2778_v10, %v1635_v53 }
 0xb32   : > { %v4053_v56 = vadd.f32 %v2779_v54, %v1642_v55 }
 0xb34   : > { %v1650_v57 = vpack.c.bf16 %v4053_v56, %v4053_v56 }
 0xb36   : > { %1898 = vmatmul.mubr.bf16.vlgmr.msra.gmra.mxu0 %v1650_v57  ;;  %1939 = vmatmul.mubr.bf16.vlgmr.msra.gmra.mxu1 %v1650_v57 }
 0xb37   : > { %2906 = vmatpush3.bf16.msra.mxu0 %v3270_v60  ;;  %2928 = vmatpush3.bf16.msra.mxu1 %v3271_v61 }
 0xb38   : > { %2907 = vmatprep.subr.bf16.mxu0 %v3272_v62  ;;  %2929 = vmatprep.subr.bf16.mxu1 %v3273_v63 }
 0xb3b   : > { %2908 = vmatpush3.bf16.msra.mxu0 %v3274_v1  ;;  %2930 = vmatpush3.bf16.msra.mxu1 %v3275_v2 }
 0xb3c   : > { %2909 = vmatprep.subr.bf16.mxu0 %v3276_v3  ;;  %2931 = vmatprep.subr.bf16.mxu1 %v3277_v4 }
 0xb3f   : > { %2910 = vmatpush3.bf16.msra.mxu0 %v3278_v5  ;;  %2932 = vmatpush3.bf16.msra.mxu1 %v3279_v6 }
 0xb40   : > { %2911 = vmatprep.subr.bf16.mxu0 %v3280_v8  ;;  %2933 = vmatprep.subr.bf16.mxu1 %v3281_v9 }
 0xb43   : > { %2912 = vmatpush3.bf16.msra.mxu0 %v3282_v0  ;;  %2934 = vmatpush3.bf16.msra.mxu1 %v3283_v11 }
 0xb44   : > { %2913 = vmatprep.subr.bf16.mxu0 %v3284_v17  ;;  %2935 = vmatprep.subr.bf16.mxu1 %v3285_v12 }
 0xb47   : > { %2914 = vmatpush3.bf16.msra.mxu0 %v3286_v13  ;;  %2936 = vmatpush3.bf16.msra.mxu1 %v3287_v14 }
 0xb48   : > { %2915 = vmatprep.subr.bf16.mxu0 %v3288_v15  ;;  %2937 = vmatprep.subr.bf16.mxu1 %v3289_v16 }
 0xb4b   : > { %2916 = vmatpush3.bf16.msra.mxu0 %v3290_v19  ;;  %2938 = vmatpush3.bf16.msra.mxu1 %v3291_v23 }
 0xb4c   : > { %2917 = vmatprep.subr.bf16.mxu0 %v3292_v24  ;;  %2939 = vmatprep.subr.bf16.mxu1 %v3293_v31 }
 0xb4f   : > { %2918 = vmatpush3.bf16.msra.mxu0 %v3294_v34  ;;  %2940 = vmatpush3.bf16.msra.mxu1 %v3295_v25 }
 0xb50   : > { %2919 = vmatprep.subr.bf16.mxu0 %v3296_v26  ;;  %2941 = vmatprep.subr.bf16.mxu1 %v3297_v27 }
 0xb53   : > { %2920 = vmatpush3.bf16.msra.mxu0 %v3298_v28  ;;  %2942 = vmatpush3.bf16.msra.mxu1 %v3299_v29  ;;  %v2812_v28 = vld [vmem:[%s4282_s11] ss:$0 sm:$0xff] }
 0xb54   : > { %3067 = vmatprep.subr.bf16.mxu0 %v3503_v18  ;;  %3087 = vmatprep.subr.bf16.mxu1 %v3503_v18 }
 0xbf6   : > { %v1899_v38 = vpop.f32.mrf.mxu0  ;;  %v1940_v39 = vpop.f32.mrf.mxu1 }
 0xbf7   : > { %v1900_v40 = vadd.f32 %v1899_v38, %v1688_v33  ;;  %v1941_v41 = vadd.f32 %v1940_v39, %v1696_v35 }
 0xbf8   : > { %v1901_v42 = vpop.f32.mrf.mxu0  ;;  %v1942_v43 = vpop.f32.mrf.mxu1 }
 0xbf9   : > { %v1951_v44 = vmul.f32 0.044715, %v1900_v40  ;;  %v1953_v47 = vmul.f32 0.044715, %v1941_v41  ;;  %v1902_v45 = vadd.f32 %v1901_v42, %v1692_v36  ;;  %v1943_v46 = vadd.f32 %v1942_v43, %v1700_v37  ;;  %v3300_v42 = vld [vmem:[#allocation2 + $0x38] sm:$0xff]   ;;  %v3301_v43 = vld [vmem:[#allocation2 + $0x30] sm:$0xff]  }
 0xbfa   : > { %v1903_v48 = vpop.f32.mrf.mxu0  ;;  %v1944_v49 = vpop.f32.mrf.mxu1  ;;  %v1947_v8 = vmul.f32 0.5, %v1900_v40  ;;  %v1949_v12 = vmul.f32 0.5, %v1941_v41 }
 0xbfb   : > { %v1955_v22 = vmul.f32 %v1951_v44, %v1900_v40  ;;  %v1957_v50 = vmul.f32 %v1953_v47, %v1941_v41  ;;  %v1952_v51 = vmul.f32 0.044715, %v1902_v45  ;;  %v1954_v7 = vmul.f32 0.044715, %v1943_v46  ;;  %v3302_v48 = vld [vmem:[#allocation2 + $0x28] sm:$0xff]   ;;  %v3303_v49 = vld [vmem:[#allocation2 + $0x20] sm:$0xff]  }
 0xbfc   : > { %v1904_v52 = vpop.f32.mrf.mxu0  ;;  %v1945_v20 = vpop.f32.mrf.mxu1  ;;  %v1948_v11 = vmul.f32 0.5, %v1902_v45  ;;  %v1950_v13 = vmul.f32 0.5, %v1943_v46 }
 0xbfd   : > { %v1959_v21 = vmul.f32 %v1955_v22, %v1900_v40  ;;  %v1961_v10 = vmul.f32 %v1957_v50, %v1941_v41  ;;  %v1956_v53 = vmul.f32 %v1952_v51, %v1902_v45  ;;  %v1958_v54 = vmul.f32 %v1954_v7, %v1943_v46  ;;  %v3305_v22 = vld [vmem:[#allocation2 + $0x10] sm:$0xff]   ;;  %v3306_v50 = vld [vmem:[#allocation2 + $0x8] sm:$0xff]   ;;  %v3307_v51 = vld [vmem:[#allocation2] sm:$0xff]  }
 0xbfe   : > { %v3308_v7 = vld [vmem:[#allocation5 + $0x38] sm:$0xff]   ;;  %v3309_v52 = vld [vmem:[#allocation5 + $0x30] sm:$0xff]   ;;  %v3310_v20 = vld [vmem:[#allocation5 + $0x28] sm:$0xff]  }
 0xbff   : > { %v1963_v55 = vadd.f32 %v1959_v21, %v1900_v40  ;;  %v1965_v57 = vadd.f32 %v1961_v10, %v1941_v41  ;;  %v1960_v58 = vmul.f32 %v1956_v53, %v1902_v45  ;;  %v1962_v59 = vmul.f32 %v1958_v54, %v1943_v46 }
 0xc01   : > { %v1967_v60 = vmul.f32 0.7978846, %v1963_v55  ;;  %v1969_v61 = vmul.f32 0.7978846, %v1965_v57  ;;  %v1964_v62 = vadd.f32 %v1960_v58, %v1902_v45  ;;  %v1966_v63 = vadd.f32 %v1962_v59, %v1943_v46  ;;  %v2845_v55 = vld [vmem:[%s4283_s12] ss:$0 sm:$0xff] }
 0xc02   : > { %v2846_v58 = vld [vmem:[%s4284_s13] ss:$0 sm:$0xff] }
 0xc03   : > { %v1968_v1 = vmul.f32 0.7978846, %v1964_v62  ;;  %v1970_v2 = vmul.f32 0.7978846, %v1966_v63  ;;  %3334 = vtanh.f32 %v1967_v60  ;;  %v3311_v62 = vld [vmem:[#allocation5 + $0x20] sm:$0xff]   ;;  %v3312_v63 = vld [vmem:[#allocation5 + $0x18] sm:$0xff]  }
 0xc04   : > { %3336 = vtanh.f32 %v1969_v61 }
 0xc05   : > { %3338 = vtanh.f32 %v1968_v1  ;;  %v3313_v1 = vld [vmem:[#allocation5 + $0x10] sm:$0xff]  }
 0xc06   : > { %3340 = vtanh.f32 %v1970_v2  ;;  %v3314_v2 = vld [vmem:[#allocation5 + $0x8] sm:$0xff]  }
 0xc10   : > { %v3335_v3 = vpop.eup %3334 }
 0xc11   : > { %v3337_v4 = vpop.eup %3336  ;;  %v1975_v5 = vadd.f32 1.0, %v3335_v3  ;;  %v3315_v3 = vld [vmem:[#allocation5] sm:$0xff]  }
 0xc12   : > { %v3339_v6 = vpop.eup %3338  ;;  %v1977_v9 = vadd.f32 1.0, %v3337_v4  ;;  %v2376_v4 = vld [vmem:[%s4286_s15] sm:$0x1] }
 0xc13   : > { %v3341_v0 = vpop.eup %3340  ;;  %v1976_v17 = vadd.f32 1.0, %v3339_v6  ;;  %v1979_v15 = vmul.f32 %v1975_v5, %v1947_v8 }
 0xc14   : > { %v1978_v14 = vadd.f32 1.0, %v3341_v0  ;;  %v1981_v19 = vmul.f32 %v1977_v9, %v1949_v12 }
 0xc15   : > { %v1980_v16 = vmul.f32 %v1976_v17, %v1948_v11  ;;  %v1983_v34 = vpack.c.bf16 %v1979_v15, %v1979_v15 }
 0xc16   : > { %v1982_v23 = vmul.f32 %v1978_v14, %v1950_v13  ;;  %v1985_v25 = vpack.c.bf16 %v1981_v19, %v1981_v19 }
 0xc17   : > { %v1984_v24 = vpack.c.bf16 %v1980_v16, %v1980_v16 }
 0xc18   : > { %v1986_v31 = vpack.c.bf16 %v1982_v23, %v1982_v23 }
 0xc19   : > { %2282 = vmatprep.mubr.bf16.mxu0 %v1984_v24 }
 0xc1a   : > { %2322 = vmatprep.mubr.bf16.mxu1 %v1986_v31  ;;  %2283 = vmatmul.mubr.bf16.vlgmr.msra.gmra.mxu0 %v1983_v34 }
 0xc1b   : > { %2323 = vmatmul.mubr.bf16.vlgmr.msra.gmra.mxu1 %v1985_v25  ;;  %3083 = vmatprep.mubr.msk.bf16.mxu0 %vm3504_vm0, %v3503_v18 }
 0xc1c   : > { %3103 = vmatprep.mubr.msk.bf16.mxu1 %vm3504_vm0, %v3503_v18  ;;  %3068 = vmatpush3.bf16.msra.mxu0 %v3300_v42 }
 0xc1d   : > { %3069 = vmatprep.subr.bf16.mxu0 %v3503_v18  ;;  %3088 = vmatpush3.bf16.msra.mxu1 %v3308_v7 }
 0xc1e   : > { %3089 = vmatprep.subr.bf16.mxu1 %v3503_v18 }
 0xc20   : > { %3070 = vmatpush3.bf16.msra.mxu0 %v3301_v43 }
 0xc21   : > { %3071 = vmatprep.subr.bf16.mxu0 %v3503_v18  ;;  %3090 = vmatpush3.bf16.msra.mxu1 %v3309_v52 }
 0xc22   : > { %3091 = vmatprep.subr.bf16.mxu1 %v3503_v18 }
 0xc24   : > { %3072 = vmatpush3.bf16.msra.mxu0 %v3302_v48 }
 0xc25   : > { %3073 = vmatprep.subr.bf16.mxu0 %v3503_v18  ;;  %3092 = vmatpush3.bf16.msra.mxu1 %v3310_v20 }
 0xc26   : > { %3093 = vmatprep.subr.bf16.mxu1 %v3503_v18 }
 0xc28   : > { %3074 = vmatpush3.bf16.msra.mxu0 %v3303_v49 }
 0xc29   : > { %3075 = vmatprep.subr.bf16.mxu0 %v3503_v18  ;;  %3094 = vmatpush3.bf16.msra.mxu1 %v3311_v62 }
 0xc2a   : > { %3095 = vmatprep.subr.bf16.mxu1 %v3503_v18 }
 0xc2d   : > { %3096 = vmatpush3.bf16.msra.mxu1 %v3312_v63 }
 0xc2e   : > { %3097 = vmatprep.subr.bf16.mxu1 %v3503_v18 }
 0xc31   : > { %3098 = vmatpush3.bf16.msra.mxu1 %v3313_v1 }
 0xc32   : > { %3099 = vmatprep.subr.bf16.mxu1 %v3503_v18 }
 0xc35   : > { %3100 = vmatpush3.bf16.msra.mxu1 %v3314_v2 }
 0xc36   : > { %3101 = vmatprep.subr.bf16.mxu1 %v3503_v18 }
 0xc39   : > { %3102 = vmatpush3.bf16.msra.mxu1 %v3315_v3 }
 0xcda   : > { %v2921_v26 = vpop.f32.mrf.mxu0 }
 0xcdb   : > { %v2943_v27 = vpop.f32.mrf.mxu1 }
 0xcdc   : > { %v2922_v29 = vpop.f32.mrf.mxu0 }
 0xcdd   : > { %v2923_v30 = vadd.f32 %v2922_v29, %v2921_v26  ;;  %v2944_v32 = vpop.f32.mrf.mxu1 }
 0xcde   : > { %v2924_v33 = vpop.f32.mrf.mxu0  ;;  %v2945_v36 = vadd.f32 %v2944_v32, %v2943_v27 }
 0xcdf   : > { %v2285_v35 = vadd.f32 %v2923_v30, %v2812_v28  ;;  %v2946_v37 = vpop.f32.mrf.mxu1 }
 0xce0   : > { %v2925_v38 = vpop.f32.mrf.mxu0 }
 0xce1   : > { %v2325_v39 = vadd.f32 %v2945_v36, %v2285_v35  ;;  %v2947_v40 = vpop.f32.mrf.mxu1 }
 0xce3   : > { %v2330_v41 = vadd.f32 %v2325_v39, %v4053_v56  ;;  %v3304_v56 = vld [vmem:[#allocation2 + $0x18] sm:$0xff]  }
 0xce4   : > { %3076 = vmatpush3.bf16.msra.mxu0 %v3304_v56 }
 0xce5   : > { %2333 = vadd.xlane.f32.xlu0 %v2330_v41  ;;  %3077 = vmatprep.subr.bf16.mxu0 %v3503_v18 }
 0xce8   : > { %3078 = vmatpush3.bf16.msra.mxu0 %v3305_v22 }
 0xce9   : > { %3079 = vmatprep.subr.bf16.mxu0 %v3503_v18 }
 0xcec   : > { %3080 = vmatpush3.bf16.msra.mxu0 %v3306_v50 }
 0xced   : > { %3081 = vmatprep.subr.bf16.mxu0 %v3503_v18 }
 0xcf0   : > { %3082 = vmatpush3.bf16.msra.mxu0 %v3307_v51 }
 0xd6e   : > { %v2334_v44 = vpop.xlane.xlu0 %2333 }
 0xd6f   : > { %v2335_v47 = vmul.f32 0.0078125, %v2334_v44 }
 0xd71   : > { %v2336_v45 = vsub.f32 %v2330_v41, %v2335_v47 }
 0xd73   : > { %v2337_v46 = vmul.f32 %v2336_v45, %v2336_v45 }
 0xd75   : > { %2338 = vadd.xlane.f32.xlu0 %v2337_v46 }
 0xdfe   : > { %v2339_v21 = vpop.xlane.xlu0 %2338 }
 0xdff   : > { %v2340_v10 = vmul.f32 0.0078125, %v2339_v21 }
 0xe01   : > { %v2341_v53 = vadd.f32 1e-12, %v2340_v10 }
 0xe03   : > { %3342 = vrsqrt.f32 %v2341_v53 }
 0xe10   : > { %v3343_v54 = vpop.eup %3342 }
 0xe11   : > { %v2343_v57 = vmul.f32 %v3343_v54, %v2336_v45 }
 0xe13   : > { %v2350_v59 = vmul.f32 %v2845_v55, %v2343_v57 }
 0xe15   : > { %v2357_v60 = vadd.f32 %v2846_v58, %v2350_v59 }
 0xe17   : > { %v2358_v61 = vpack.c.bf16 %v2357_v60, %v2357_v60 }
 0xe19   : > { %3084 = vmatmul.mubr.bf16.vlgmr.msra.gmra.mxu0 %v2358_v61  ;;  %2359 = vst [vmem:[%s4193_s29] sm:$0xf] %v2358_v61 }
 0xed9   : > { %v2459_v5 = vpop.f32.mrf.mxu0 }
 0xeda   : > { %v2460_v6 = vadd.f32 %v2459_v5, %v2376_v4 }
 0xedb   : > { %v3085_v8 = vpop.f32.mrf.mxu0 }
 0xedc   : > { %3344 = vtanh.f32 %v2460_v6 }
 0xedd   : > { %v2462_v9 = vpop.f32.mrf.mxu0 }
 0xedf   : > { %v3086_v0 = vpop.f32.mrf.mxu0 }
 0xee9   : > { %v3345_v11 = vpop.eup %3344 }
 0xeea   : > { %v2466_v17 = vpack.c.bf16 %v3345_v11, %v3345_v11 }
 0xeec   : > { %3104 = vmatmul.mubr.bf16.vlgmr.msra.gmra.mxu1 %v2466_v17 }
 0xeed   : > { %3411 = shalt.err (!%p3408_p3)
}
 0xeee   : > { %s3412_s29 = scalar_lea.hbm %s2589_s0, 64  ;;  %s3416_s24 = scalar_lea.hbm %s4289_s18, 128 }
 0xeef   : > { %p3413_p2 = scmp.ne.s32.totalorder %s2589_s0, %s3412_s29  ;;  %p3417_p7 = scmp.lt.s32.totalorder %s2589_s0, %s4289_s18 }
 0xef0   : > { %p3418_p6 = scmp.lt.s32.totalorder %s3416_s24, %s3412_s29 }
 0xef1   : > { %p3414_p4 = pnand %p3413_p2, %p3648_p5 }
 0xef2   : > { %p3419_p9 = por %p3418_p6, %p3417_p7 }
 0xef3   : > { %p3415_p13 = pneg %p3414_p4 }
 0xef5   : > { %p3420_p10 = pnand %p3419_p9, %p3415_p13 }
 0xef7   : > { %3423 = shalt.err (!%p3420_p10)
}
 0xef8   : > { %3115 = dma.vmem_to_hbm [thread:$0]  (%p3648_p5), %s2592_s28, 64, %s2589_s0, %s2574_s25   ;;  %v2483_v18 = vld [vmem:[%s4288_s17] sm:$0x1] }
 0xef9   : > { %s2865_s14 = sshll.u32 %s3631_s1, 4  ;;  %s644_s22 = scalar_lea.vmem [#allocation8], %s4187_s20 }
 0xefa   : > { %s2604_s16 = sshll.u32 %s644_s22, 4  ;;  %s4229_s29 = scalar_lea.hbm %s4290_s19, %s2865_s14  ;;  %s4231_s16 = int_to_ptr.vmem [resolvable:$true] %s2604_s16 }
 0xefb   : > { %s2579_s28 = scalar_lea.sflag [#allocation9], %s4187_s20  ;;  %s3424_s0 = scalar_lea.vmem %s4231_s16, 16 }
 0xefc   : > { %p3425_p12 = scmp.ne.s32.totalorder %s4231_s16, %s3424_s0  ;;  %s3509_s1 = smov [#allocation8]  }
 0xefd   : > { %s3428_s25 = sshll.u32 %s3509_s1, 4  ;;  %s3429_s25 = int_to_ptr.vmem [resolvable:$false] %s3428_s25 }
 0xefe   : > { %p3426_p8 = pnand %p3425_p12, %p3648_p5  ;;  %s3430_s23 = scalar_lea.vmem %s3429_s25, 32 }
 0xeff   : > { %p3431_p0 = scmp.lt.s32.totalorder %s4231_s16, %s3429_s25  ;;  %p3432_p1 = scmp.lt.s32.totalorder %s3430_s23, %s3424_s0 }
 0xf00   : > { %p3427_p11 = pneg %p3426_p8 }
 0xf01   : > { %p3433_p3 = por %p3432_p1, %p3431_p0 }
 0xf03   : > { %p3434_p2 = pnand %p3433_p3, %p3427_p11 }
 0xfac   : > { %v2566_v12 = vpop.f32.mrf.mxu1 }
 0xfad   : > { %v2567_v13 = vadd.f32 %v2566_v12, %v2483_v18 }
 0xfae   : > { %v3105_v14 = vpop.f32.mrf.mxu1 }
 0xfaf   : > { %2572 = vst [vmem:[%s644_s22] sm:$0x1] %v2567_v13 }
 0xfb0   : > { %v2569_v15 = vpop.f32.mrf.mxu1 }
 0xfb1   : > { %3437 = shalt.err (!%p3434_p2)
}
 0xfb2   : > { %s3438_s24 = scalar_lea.hbm %s4229_s29, 16  ;;  %s3442_s27 = scalar_lea.hbm %s4290_s19, 32 }
 0xfb3   : > { %p3439_p4 = scmp.ne.s32.totalorder %s4229_s29, %s3438_s24  ;;  %p3443_p6 = scmp.lt.s32.totalorder %s4229_s29, %s4290_s19 }
 0xfb4   : > { %p3444_p9 = scmp.lt.s32.totalorder %s3442_s27, %s3438_s24 }
 0xfb5   : > { %p3440_p13 = pnand %p3439_p4, %p3648_p5 }
 0xfb6   : > { %p3445_p10 = por %p3444_p9, %p3443_p6 }
 0xfb7   : > { %p3441_p7 = pneg %p3440_p13 }
 0xfb9   : > { %p3446_p12 = pnand %p3445_p10, %p3441_p7 }
 0xfbb   : > { %3449 = shalt.err (!%p3446_p12)
}
 0xfbc   : > { %3116 = dma.vmem_to_hbm [thread:$0]  (%p3648_p5), %s4231_s16, 16, %s4229_s29, %s2579_s28   ;;  %v3106_v16 = vpop.f32.mrf.mxu1 }
 0xfbd PF: > { %s4326_s4 = sld [smem:[#allocation14_spill]]  ;;  %p3137_p8 = scmp.ge.s32.totalorder %s3496_s21, 2 }
 0xfbe   : > { %s4327_s2 = sld [smem:[#allocation18_spill]] }
 0xfc3   : > { %s2616_s0 = sand.u32 1, %s4326_s4  }
 0xfc4   : > { %p4328_p11 = scmp.ne.s32.totalorder %s4327_s2, 0  ;;  %s2617_s1 = scalar_lea.sflag [#allocation4], %s2616_s0 }
 0xfc6   : > { %p3127_p0 = pnand %p3137_p8, %p4328_p11 }
 0xfc8   : > { %p3128_p1 = pneg %p3127_p0 }
 0xfca   : > { %3475 = dma.done.wait (%p3128_p1), %s2617_s1, 64  }
 0xfcb   : > { %3477 = vsyncadd (%p3128_p1), %s2617_s1, 4294967232  ;;  %s2626_s25 = scalar_lea.sflag [#allocation9], %s2616_s0 }
 0xfcc   : > { %3479 = dma.done.wait (%p3128_p1), %s2626_s25, 16  }
 0xfcd   : > { %3481 = vsyncadd (%p3128_p1), %s2626_s25, 4294967280  ;;  %s4329_s21 = sld [smem:[#allocation16_spill]]  ;;  %s4332_s0 = smov %s3488_s30 }
 0xfce   : > { %s4330_s3 = sld [smem:[#allocation15_spill]] }
 0xfcf   : > { %s4331_s20 = sld [smem:[#allocation17_spill]] }
 0xfd3   : > { %p35_p5 = scmp.ge.s32.totalorder %s4329_s21, 4  }
 0xfd4   : > { %s4333_s30 = smov %s4330_s3 }
 0xfd5   :  { %37 = sbr.rel (!%p35_p5) target bundleno = 15 (0xf), region = 156 }
 0xfda   :  { %2630 = vsyncpa [#allocation3], 1 }
 0xfdb   :  { %2632 = vsyncpa [#allocation3 + $0x1], 1 }
 0xfdc   :  { %2633 = vsyncpa [#allocation6], 1 }
 0xfdd   :  { %2634 = vsyncpa [#allocation4], 1 }
 0xfde   :  { %2636 = vsyncpa [#allocation4 + $0x1], 1 }
 0xfdf   :  { %2637 = vsyncpa [#allocation9], 1 }
 0xfe0   :  { %2639 = vsyncpa [#allocation9 + $0x1], 1 }

</bundles_post_ra>
